<compile_context>
chip_gen: v5e
topology: v5e:2x2
jax: 0.10.0
libtpu: 0.0.40
codegen_flags: <defaults>
</compile_context>

<pallas_src>
import functools

import jax
import jax.numpy as jnp
from jax.experimental import pallas as pl
from jax.experimental.pallas import tpu as pltpu


# Layer sizes (in, out) exactly as in the PyTorch module.
LAYER_SIZES = ((2, 5), (5, 10), (10, 15), (15, 5), (5, 1))

CHUNK_SUB = 8                 # sublanes per in-kernel chunk -> 1 vreg per channel slab
CHUNK_B = CHUNK_SUB * 128     # 1024 batch elements per chunk
TARGET_TILE_B = 8192          # default batch tile; keeps >=2 grid steps at large B (v7x)


# ----------------------------- param packing --------------------------------
def _make_layout(sizes):
    """Static layout of the flattened weight table: (offset, cout, cin) per layer."""
    layout, off = [], 0
    for cin, cout in sizes:
        layout.append((off, cout, cin))
        off += cout * (cin + 1)
    return tuple(layout), off


PACK_LAYOUT, PACK_LEN = _make_layout(LAYER_SIZES)


def pack_params(params):
    """Flatten [(W(out,in), b(out,)), ...] into one 1-D f32 vector for SMEM.

    Per layer, output-row o stores [w[o, 0..cin-1], b[o]] contiguously.
    Call this ONCE and reuse the packed vector across forward calls.
    """
    chunks = []
    for w, b in params:
        wb = jnp.concatenate(
            [w.astype(jnp.float32), b.astype(jnp.float32)[:, None]], axis=1
        )
        chunks.append(wb.reshape(-1))
    packed = jnp.concatenate(chunks)
    assert packed.shape == (PACK_LEN,)
    return packed


# ----------------------------- kernel ----------------------------------------
def _make_mlp_kernel(tile_sub):
    n_layers = len(PACK_LAYOUT)
    n_chunks = tile_sub // CHUNK_SUB
    fin = LAYER_SIZES[0][0]

    def kernel(x_ref, p_ref, o_ref):
        # x_ref: (fin, tile_sub, 128)  VMEM  - batch on (sublane, lane)
        # p_ref: (PACK_LEN,)           SMEM  - scalar weight/bias table
        # o_ref: (tile_sub, 128)       VMEM  - lane+sublane dense output

        def chunk_body(c):
            s = c * CHUNK_SUB
            if not isinstance(s, int):
                s = pl.multiple_of(s, CHUNK_SUB)
            # One (8,128) = 1 vreg slab per feature channel.
            h = [x_ref[i, pl.ds(s, CHUNK_SUB), :] for i in range(fin)]
            for li, (off, cout, cin) in enumerate(PACK_LAYOUT):
                stride = cin + 1
                nxt = []
                for o in range(cout):
                    base = off + o * stride
                    # bias splat + scalar-weight multiply-adds; scalars come
                    # from SMEM on the (idle) scalar slots, vector work is
                    # pure VALU with no cross-lane traffic.
                    acc = jnp.full((CHUNK_SUB, 128), p_ref[base + cin], jnp.float32)
                    for i in range(cin):
                        acc = acc + p_ref[base + i] * h[i]
                    if li < n_layers - 1:
                        acc = jnp.maximum(acc, 0.0)
                    nxt.append(acc)
                h = nxt
            o_ref[pl.ds(s, CHUNK_SUB), :] = h[0]

        if n_chunks == 1:
            chunk_body(0)
        else:
            # scf.for over 1024-element chunks bounds live ranges so the big
            # batch tile never spills the (<=15 x chunk) intermediates.
            @pl.loop(0, n_chunks)
            def _(c):
                chunk_body(c)

    return kernel


# ----------------------------- wrapper ----------------------------------------
def _pick_tile_b(B):
    b_ceil = pl.cdiv(B, CHUNK_B) * CHUNK_B
    if b_ceil <= TARGET_TILE_B:
        return b_ceil          # small batch: minimal padding, single/few steps
    return TARGET_TILE_B       # large batch: >=2 grid steps (v7x megacore)


@functools.partial(jax.jit, static_argnames=("tile_b",))
def mlp_forward(x, packed, tile_b=None):
    """x: (B, 2) f32.  packed: (PACK_LEN,) f32 from pack_params().  Returns (B, 1)."""
    B, fin = x.shape
    assert fin == LAYER_SIZES[0][0]
    if tile_b is None:
        tile_b = _pick_tile_b(B)
    assert tile_b % CHUNK_B == 0
    tile_sub = tile_b // 128

    n_tiles = pl.cdiv(B, tile_b)
    b_pad = n_tiles * tile_b
    n_sub = b_pad // 128

    # Feature-major + pad in one fused XLA op, then a free row-major reshape so
    # the batch lands on dense (8,128) tiles. (Output un-reshape is trivial.)
    x_k = jnp.pad(x.T, ((0, 0), (0, b_pad - B))).reshape(fin, n_sub, 128)

    out = pl.pallas_call(
        _make_mlp_kernel(tile_sub),
        out_shape=jax.ShapeDtypeStruct((n_sub, 128), jnp.float32),
        grid=(n_tiles,),
        in_specs=[
            # batch tile of the input, walks along the batch (sublane-block) axis
            pl.BlockSpec((fin, tile_sub, 128), lambda i: (0, i, 0)),
            # tiny scalar weight table -> SMEM, resident across all grid steps
            pl.BlockSpec(memory_space=pltpu.MemorySpace.SMEM),
        ],
        out_specs=pl.BlockSpec((tile_sub, 128), lambda i: (i, 0)),
        compiler_params=pltpu.CompilerParams(
            dimension_semantics=("parallel",),   # megacore sharding on v7x
        ),
    )(x_k, packed)

    return out.reshape(b_pad)[:B].reshape(B, 1)


# ----------------------------- params / reference -----------------------------
def init_params(key):
    """Deterministic init mimicking torch.nn.Linear's U(-1/sqrt(in), 1/sqrt(in)).

    W is stored (out, in) exactly like PyTorch; b is (out,)."""
    params = []
    for fan_in, fan_out in LAYER_SIZES:
        key, kw, kb = jax.random.split(key, 3)
        bound = 1.0 / jnp.sqrt(fan_in)
        w = jax.random.uniform(kw, (fan_out, fan_in), jnp.float32, -bound, bound)
        b = jax.random.uniform(kb, (fan_out,), jnp.float32, -bound, bound)
        params.append((w, b))
    return params


def reference_forward(x, params):
    h = x
    for i, (w, b) in enumerate(params):
        h = jnp.dot(h, w.T, precision="highest") + b
        if i < len(params) - 1:
            h = jnp.maximum(h, 0.0)
    return h


# ----------------------------- main --------------------------------------------
if __name__ == "__main__":
    key = jax.random.PRNGKey(0)
    kx, kx2, kp = jax.random.split(key, 3)
    params = init_params(kp)
    packed = pack_params(params)     # packed once, reused for every forward call

    # Small shape consistent with the module: (batch, 2) input.
    B = 8
    x = jax.random.normal(kx, (B, 2), jnp.float32)
    out = jax.block_until_ready(mlp_forward(x, packed))
    ref = reference_forward(x, params)
    assert out.shape == (B, 1), out.shape
    assert jnp.allclose(out, ref, atol=1e-5, rtol=1e-5), (out, ref)

    # Larger batch: exercises padding, the in-kernel chunk loop, and (with the
    # explicit tile_b) multiple grid steps / the output index_map.
    B2 = 1200  # deliberately not a multiple of the chunk size
    x2 = jax.random.normal(kx2, (B2, 2), jnp.float32)
    out2 = jax.block_until_ready(mlp_forward(x2, packed))                # 1 step, 2 chunks
    out3 = jax.block_until_ready(mlp_forward(x2, packed, tile_b=1024))   # 2 grid steps
    ref2 = reference_forward(x2, params)
    assert out2.shape == (B2, 1), out2.shape
    assert jnp.allclose(out2, ref2, atol=1e-5, rtol=1e-5)
    assert jnp.allclose(out3, ref2, atol=1e-5, rtol=1e-5)

    print("KERNEL_OK")
</pallas_src>

<mosaic_0001>
module attributes {stable_mosaic.version = 11 : i64} {
  func.func @kernel(%arg0: i32, %arg1: memref<2x8x128xf32, #tpu.memory_space<vmem>>, %arg2: memref<326xf32, #tpu.memory_space<smem>>, %arg3: memref<8x128xf32, #tpu.memory_space<vmem>>) attributes {dimension_semantics = [#tpu.dimension_semantics<parallel>], iteration_bounds = array<i64: 1>, scalar_prefetch = 0 : i64, scratch_operands = 0 : i64, tpu.core_type = #tpu.core_type<tc>, window_params = [{transform_indices = @transform_0, window_bounds = array<i64: 2, 8, 128>}, {transform_indices = @transform_1, window_bounds = array<i64: 326>}, {transform_indices = @transform_2, window_bounds = array<i64: 8, 128>}]} {
    %c0 = arith.constant 0 : index
    %c0_0 = arith.constant 0 : index
    %c0_1 = arith.constant 0 : index
    %0 = vector.load %arg1[%c0, %c0_0, %c0_1] : memref<2x8x128xf32, #tpu.memory_space<vmem>>, vector<1x8x128xf32>
    %1 = vector.shape_cast %0 : vector<1x8x128xf32> to vector<8x128xf32>
    %c1 = arith.constant 1 : index
    %c0_2 = arith.constant 0 : index
    %c0_3 = arith.constant 0 : index
    %2 = vector.load %arg1[%c1, %c0_2, %c0_3] : memref<2x8x128xf32, #tpu.memory_space<vmem>>, vector<1x8x128xf32>
    %3 = vector.shape_cast %2 : vector<1x8x128xf32> to vector<8x128xf32>
    %c2 = arith.constant 2 : index
    %4 = memref.load %arg2[%c2] : memref<326xf32, #tpu.memory_space<smem>>
    %5 = vector.broadcast %4 : f32 to vector<8x128xf32>
    %c0_4 = arith.constant 0 : index
    %6 = memref.load %arg2[%c0_4] : memref<326xf32, #tpu.memory_space<smem>>
    %7 = vector.broadcast %6 : f32 to vector<8x128xf32>
    %8 = arith.mulf %7, %1 : vector<8x128xf32>
    %9 = arith.addf %5, %8 : vector<8x128xf32>
    %c1_5 = arith.constant 1 : index
    %10 = memref.load %arg2[%c1_5] : memref<326xf32, #tpu.memory_space<smem>>
    %11 = vector.broadcast %10 : f32 to vector<8x128xf32>
    %12 = arith.mulf %11, %3 : vector<8x128xf32>
    %13 = arith.addf %9, %12 : vector<8x128xf32>
    %cst = arith.constant 0.000000e+00 : f32
    %14 = vector.broadcast %cst : f32 to vector<8x128xf32>
    %15 = arith.maximumf %13, %14 : vector<8x128xf32>
    %c5 = arith.constant 5 : index
    %16 = memref.load %arg2[%c5] : memref<326xf32, #tpu.memory_space<smem>>
    %17 = vector.broadcast %16 : f32 to vector<8x128xf32>
    %c3 = arith.constant 3 : index
    %18 = memref.load %arg2[%c3] : memref<326xf32, #tpu.memory_space<smem>>
    %19 = vector.broadcast %18 : f32 to vector<8x128xf32>
    %20 = arith.mulf %19, %1 : vector<8x128xf32>
    %21 = arith.addf %17, %20 : vector<8x128xf32>
    %c4 = arith.constant 4 : index
    %22 = memref.load %arg2[%c4] : memref<326xf32, #tpu.memory_space<smem>>
    %23 = vector.broadcast %22 : f32 to vector<8x128xf32>
    %24 = arith.mulf %23, %3 : vector<8x128xf32>
    %25 = arith.addf %21, %24 : vector<8x128xf32>
    %cst_6 = arith.constant 0.000000e+00 : f32
    %26 = vector.broadcast %cst_6 : f32 to vector<8x128xf32>
    %27 = arith.maximumf %25, %26 : vector<8x128xf32>
    %c8 = arith.constant 8 : index
    %28 = memref.load %arg2[%c8] : memref<326xf32, #tpu.memory_space<smem>>
    %29 = vector.broadcast %28 : f32 to vector<8x128xf32>
    %c6 = arith.constant 6 : index
    %30 = memref.load %arg2[%c6] : memref<326xf32, #tpu.memory_space<smem>>
    %31 = vector.broadcast %30 : f32 to vector<8x128xf32>
    %32 = arith.mulf %31, %1 : vector<8x128xf32>
    %33 = arith.addf %29, %32 : vector<8x128xf32>
    %c7 = arith.constant 7 : index
    %34 = memref.load %arg2[%c7] : memref<326xf32, #tpu.memory_space<smem>>
    %35 = vector.broadcast %34 : f32 to vector<8x128xf32>
    %36 = arith.mulf %35, %3 : vector<8x128xf32>
    %37 = arith.addf %33, %36 : vector<8x128xf32>
    %cst_7 = arith.constant 0.000000e+00 : f32
    %38 = vector.broadcast %cst_7 : f32 to vector<8x128xf32>
    %39 = arith.maximumf %37, %38 : vector<8x128xf32>
    %c11 = arith.constant 11 : index
    %40 = memref.load %arg2[%c11] : memref<326xf32, #tpu.memory_space<smem>>
    %41 = vector.broadcast %40 : f32 to vector<8x128xf32>
    %c9 = arith.constant 9 : index
    %42 = memref.load %arg2[%c9] : memref<326xf32, #tpu.memory_space<smem>>
    %43 = vector.broadcast %42 : f32 to vector<8x128xf32>
    %44 = arith.mulf %43, %1 : vector<8x128xf32>
    %45 = arith.addf %41, %44 : vector<8x128xf32>
    %c10 = arith.constant 10 : index
    %46 = memref.load %arg2[%c10] : memref<326xf32, #tpu.memory_space<smem>>
    %47 = vector.broadcast %46 : f32 to vector<8x128xf32>
    %48 = arith.mulf %47, %3 : vector<8x128xf32>
    %49 = arith.addf %45, %48 : vector<8x128xf32>
    %cst_8 = arith.constant 0.000000e+00 : f32
    %50 = vector.broadcast %cst_8 : f32 to vector<8x128xf32>
    %51 = arith.maximumf %49, %50 : vector<8x128xf32>
    %c14 = arith.constant 14 : index
    %52 = memref.load %arg2[%c14] : memref<326xf32, #tpu.memory_space<smem>>
    %53 = vector.broadcast %52 : f32 to vector<8x128xf32>
    %c12 = arith.constant 12 : index
    %54 = memref.load %arg2[%c12] : memref<326xf32, #tpu.memory_space<smem>>
    %55 = vector.broadcast %54 : f32 to vector<8x128xf32>
    %56 = arith.mulf %55, %1 : vector<8x128xf32>
    %57 = arith.addf %53, %56 : vector<8x128xf32>
    %c13 = arith.constant 13 : index
    %58 = memref.load %arg2[%c13] : memref<326xf32, #tpu.memory_space<smem>>
    %59 = vector.broadcast %58 : f32 to vector<8x128xf32>
    %60 = arith.mulf %59, %3 : vector<8x128xf32>
    %61 = arith.addf %57, %60 : vector<8x128xf32>
    %cst_9 = arith.constant 0.000000e+00 : f32
    %62 = vector.broadcast %cst_9 : f32 to vector<8x128xf32>
    %63 = arith.maximumf %61, %62 : vector<8x128xf32>
    %c20 = arith.constant 20 : index
    %64 = memref.load %arg2[%c20] : memref<326xf32, #tpu.memory_space<smem>>
    %65 = vector.broadcast %64 : f32 to vector<8x128xf32>
    %c15 = arith.constant 15 : index
    %66 = memref.load %arg2[%c15] : memref<326xf32, #tpu.memory_space<smem>>
    %67 = vector.broadcast %66 : f32 to vector<8x128xf32>
    %68 = arith.mulf %67, %15 : vector<8x128xf32>
    %69 = arith.addf %65, %68 : vector<8x128xf32>
    %c16 = arith.constant 16 : index
    %70 = memref.load %arg2[%c16] : memref<326xf32, #tpu.memory_space<smem>>
    %71 = vector.broadcast %70 : f32 to vector<8x128xf32>
    %72 = arith.mulf %71, %27 : vector<8x128xf32>
    %73 = arith.addf %69, %72 : vector<8x128xf32>
    %c17 = arith.constant 17 : index
    %74 = memref.load %arg2[%c17] : memref<326xf32, #tpu.memory_space<smem>>
    %75 = vector.broadcast %74 : f32 to vector<8x128xf32>
    %76 = arith.mulf %75, %39 : vector<8x128xf32>
    %77 = arith.addf %73, %76 : vector<8x128xf32>
    %c18 = arith.constant 18 : index
    %78 = memref.load %arg2[%c18] : memref<326xf32, #tpu.memory_space<smem>>
    %79 = vector.broadcast %78 : f32 to vector<8x128xf32>
    %80 = arith.mulf %79, %51 : vector<8x128xf32>
    %81 = arith.addf %77, %80 : vector<8x128xf32>
    %c19 = arith.constant 19 : index
    %82 = memref.load %arg2[%c19] : memref<326xf32, #tpu.memory_space<smem>>
    %83 = vector.broadcast %82 : f32 to vector<8x128xf32>
    %84 = arith.mulf %83, %63 : vector<8x128xf32>
    %85 = arith.addf %81, %84 : vector<8x128xf32>
    %cst_10 = arith.constant 0.000000e+00 : f32
    %86 = vector.broadcast %cst_10 : f32 to vector<8x128xf32>
    %87 = arith.maximumf %85, %86 : vector<8x128xf32>
    %c26 = arith.constant 26 : index
    %88 = memref.load %arg2[%c26] : memref<326xf32, #tpu.memory_space<smem>>
    %89 = vector.broadcast %88 : f32 to vector<8x128xf32>
    %c21 = arith.constant 21 : index
    %90 = memref.load %arg2[%c21] : memref<326xf32, #tpu.memory_space<smem>>
    %91 = vector.broadcast %90 : f32 to vector<8x128xf32>
    %92 = arith.mulf %91, %15 : vector<8x128xf32>
    %93 = arith.addf %89, %92 : vector<8x128xf32>
    %c22 = arith.constant 22 : index
    %94 = memref.load %arg2[%c22] : memref<326xf32, #tpu.memory_space<smem>>
    %95 = vector.broadcast %94 : f32 to vector<8x128xf32>
    %96 = arith.mulf %95, %27 : vector<8x128xf32>
    %97 = arith.addf %93, %96 : vector<8x128xf32>
    %c23 = arith.constant 23 : index
    %98 = memref.load %arg2[%c23] : memref<326xf32, #tpu.memory_space<smem>>
    %99 = vector.broadcast %98 : f32 to vector<8x128xf32>
    %100 = arith.mulf %99, %39 : vector<8x128xf32>
    %101 = arith.addf %97, %100 : vector<8x128xf32>
    %c24 = arith.constant 24 : index
    %102 = memref.load %arg2[%c24] : memref<326xf32, #tpu.memory_space<smem>>
    %103 = vector.broadcast %102 : f32 to vector<8x128xf32>
    %104 = arith.mulf %103, %51 : vector<8x128xf32>
    %105 = arith.addf %101, %104 : vector<8x128xf32>
    %c25 = arith.constant 25 : index
    %106 = memref.load %arg2[%c25] : memref<326xf32, #tpu.memory_space<smem>>
    %107 = vector.broadcast %106 : f32 to vector<8x128xf32>
    %108 = arith.mulf %107, %63 : vector<8x128xf32>
    %109 = arith.addf %105, %108 : vector<8x128xf32>
    %cst_11 = arith.constant 0.000000e+00 : f32
    %110 = vector.broadcast %cst_11 : f32 to vector<8x128xf32>
    %111 = arith.maximumf %109, %110 : vector<8x128xf32>
    %c32 = arith.constant 32 : index
    %112 = memref.load %arg2[%c32] : memref<326xf32, #tpu.memory_space<smem>>
    %113 = vector.broadcast %112 : f32 to vector<8x128xf32>
    %c27 = arith.constant 27 : index
    %114 = memref.load %arg2[%c27] : memref<326xf32, #tpu.memory_space<smem>>
    %115 = vector.broadcast %114 : f32 to vector<8x128xf32>
    %116 = arith.mulf %115, %15 : vector<8x128xf32>
    %117 = arith.addf %113, %116 : vector<8x128xf32>
    %c28 = arith.constant 28 : index
    %118 = memref.load %arg2[%c28] : memref<326xf32, #tpu.memory_space<smem>>
    %119 = vector.broadcast %118 : f32 to vector<8x128xf32>
    %120 = arith.mulf %119, %27 : vector<8x128xf32>
    %121 = arith.addf %117, %120 : vector<8x128xf32>
    %c29 = arith.constant 29 : index
    %122 = memref.load %arg2[%c29] : memref<326xf32, #tpu.memory_space<smem>>
    %123 = vector.broadcast %122 : f32 to vector<8x128xf32>
    %124 = arith.mulf %123, %39 : vector<8x128xf32>
    %125 = arith.addf %121, %124 : vector<8x128xf32>
    %c30 = arith.constant 30 : index
    %126 = memref.load %arg2[%c30] : memref<326xf32, #tpu.memory_space<smem>>
    %127 = vector.broadcast %126 : f32 to vector<8x128xf32>
    %128 = arith.mulf %127, %51 : vector<8x128xf32>
    %129 = arith.addf %125, %128 : vector<8x128xf32>
    %c31 = arith.constant 31 : index
    %130 = memref.load %arg2[%c31] : memref<326xf32, #tpu.memory_space<smem>>
    %131 = vector.broadcast %130 : f32 to vector<8x128xf32>
    %132 = arith.mulf %131, %63 : vector<8x128xf32>
    %133 = arith.addf %129, %132 : vector<8x128xf32>
    %cst_12 = arith.constant 0.000000e+00 : f32
    %134 = vector.broadcast %cst_12 : f32 to vector<8x128xf32>
    %135 = arith.maximumf %133, %134 : vector<8x128xf32>
    %c38 = arith.constant 38 : index
    %136 = memref.load %arg2[%c38] : memref<326xf32, #tpu.memory_space<smem>>
    %137 = vector.broadcast %136 : f32 to vector<8x128xf32>
    %c33 = arith.constant 33 : index
    %138 = memref.load %arg2[%c33] : memref<326xf32, #tpu.memory_space<smem>>
    %139 = vector.broadcast %138 : f32 to vector<8x128xf32>
    %140 = arith.mulf %139, %15 : vector<8x128xf32>
    %141 = arith.addf %137, %140 : vector<8x128xf32>
    %c34 = arith.constant 34 : index
    %142 = memref.load %arg2[%c34] : memref<326xf32, #tpu.memory_space<smem>>
    %143 = vector.broadcast %142 : f32 to vector<8x128xf32>
    %144 = arith.mulf %143, %27 : vector<8x128xf32>
    %145 = arith.addf %141, %144 : vector<8x128xf32>
    %c35 = arith.constant 35 : index
    %146 = memref.load %arg2[%c35] : memref<326xf32, #tpu.memory_space<smem>>
    %147 = vector.broadcast %146 : f32 to vector<8x128xf32>
    %148 = arith.mulf %147, %39 : vector<8x128xf32>
    %149 = arith.addf %145, %148 : vector<8x128xf32>
    %c36 = arith.constant 36 : index
    %150 = memref.load %arg2[%c36] : memref<326xf32, #tpu.memory_space<smem>>
    %151 = vector.broadcast %150 : f32 to vector<8x128xf32>
    %152 = arith.mulf %151, %51 : vector<8x128xf32>
    %153 = arith.addf %149, %152 : vector<8x128xf32>
    %c37 = arith.constant 37 : index
    %154 = memref.load %arg2[%c37] : memref<326xf32, #tpu.memory_space<smem>>
    %155 = vector.broadcast %154 : f32 to vector<8x128xf32>
    %156 = arith.mulf %155, %63 : vector<8x128xf32>
    %157 = arith.addf %153, %156 : vector<8x128xf32>
    %cst_13 = arith.constant 0.000000e+00 : f32
    %158 = vector.broadcast %cst_13 : f32 to vector<8x128xf32>
    %159 = arith.maximumf %157, %158 : vector<8x128xf32>
    %c44 = arith.constant 44 : index
    %160 = memref.load %arg2[%c44] : memref<326xf32, #tpu.memory_space<smem>>
    %161 = vector.broadcast %160 : f32 to vector<8x128xf32>
    %c39 = arith.constant 39 : index
    %162 = memref.load %arg2[%c39] : memref<326xf32, #tpu.memory_space<smem>>
    %163 = vector.broadcast %162 : f32 to vector<8x128xf32>
    %164 = arith.mulf %163, %15 : vector<8x128xf32>
    %165 = arith.addf %161, %164 : vector<8x128xf32>
    %c40 = arith.constant 40 : index
    %166 = memref.load %arg2[%c40] : memref<326xf32, #tpu.memory_space<smem>>
    %167 = vector.broadcast %166 : f32 to vector<8x128xf32>
    %168 = arith.mulf %167, %27 : vector<8x128xf32>
    %169 = arith.addf %165, %168 : vector<8x128xf32>
    %c41 = arith.constant 41 : index
    %170 = memref.load %arg2[%c41] : memref<326xf32, #tpu.memory_space<smem>>
    %171 = vector.broadcast %170 : f32 to vector<8x128xf32>
    %172 = arith.mulf %171, %39 : vector<8x128xf32>
    %173 = arith.addf %169, %172 : vector<8x128xf32>
    %c42 = arith.constant 42 : index
    %174 = memref.load %arg2[%c42] : memref<326xf32, #tpu.memory_space<smem>>
    %175 = vector.broadcast %174 : f32 to vector<8x128xf32>
    %176 = arith.mulf %175, %51 : vector<8x128xf32>
    %177 = arith.addf %173, %176 : vector<8x128xf32>
    %c43 = arith.constant 43 : index
    %178 = memref.load %arg2[%c43] : memref<326xf32, #tpu.memory_space<smem>>
    %179 = vector.broadcast %178 : f32 to vector<8x128xf32>
    %180 = arith.mulf %179, %63 : vector<8x128xf32>
    %181 = arith.addf %177, %180 : vector<8x128xf32>
    %cst_14 = arith.constant 0.000000e+00 : f32
    %182 = vector.broadcast %cst_14 : f32 to vector<8x128xf32>
    %183 = arith.maximumf %181, %182 : vector<8x128xf32>
    %c50 = arith.constant 50 : index
    %184 = memref.load %arg2[%c50] : memref<326xf32, #tpu.memory_space<smem>>
    %185 = vector.broadcast %184 : f32 to vector<8x128xf32>
    %c45 = arith.constant 45 : index
    %186 = memref.load %arg2[%c45] : memref<326xf32, #tpu.memory_space<smem>>
    %187 = vector.broadcast %186 : f32 to vector<8x128xf32>
    %188 = arith.mulf %187, %15 : vector<8x128xf32>
    %189 = arith.addf %185, %188 : vector<8x128xf32>
    %c46 = arith.constant 46 : index
    %190 = memref.load %arg2[%c46] : memref<326xf32, #tpu.memory_space<smem>>
    %191 = vector.broadcast %190 : f32 to vector<8x128xf32>
    %192 = arith.mulf %191, %27 : vector<8x128xf32>
    %193 = arith.addf %189, %192 : vector<8x128xf32>
    %c47 = arith.constant 47 : index
    %194 = memref.load %arg2[%c47] : memref<326xf32, #tpu.memory_space<smem>>
    %195 = vector.broadcast %194 : f32 to vector<8x128xf32>
    %196 = arith.mulf %195, %39 : vector<8x128xf32>
    %197 = arith.addf %193, %196 : vector<8x128xf32>
    %c48 = arith.constant 48 : index
    %198 = memref.load %arg2[%c48] : memref<326xf32, #tpu.memory_space<smem>>
    %199 = vector.broadcast %198 : f32 to vector<8x128xf32>
    %200 = arith.mulf %199, %51 : vector<8x128xf32>
    %201 = arith.addf %197, %200 : vector<8x128xf32>
    %c49 = arith.constant 49 : index
    %202 = memref.load %arg2[%c49] : memref<326xf32, #tpu.memory_space<smem>>
    %203 = vector.broadcast %202 : f32 to vector<8x128xf32>
    %204 = arith.mulf %203, %63 : vector<8x128xf32>
    %205 = arith.addf %201, %204 : vector<8x128xf32>
    %cst_15 = arith.constant 0.000000e+00 : f32
    %206 = vector.broadcast %cst_15 : f32 to vector<8x128xf32>
    %207 = arith.maximumf %205, %206 : vector<8x128xf32>
    %c56 = arith.constant 56 : index
    %208 = memref.load %arg2[%c56] : memref<326xf32, #tpu.memory_space<smem>>
    %209 = vector.broadcast %208 : f32 to vector<8x128xf32>
    %c51 = arith.constant 51 : index
    %210 = memref.load %arg2[%c51] : memref<326xf32, #tpu.memory_space<smem>>
    %211 = vector.broadcast %210 : f32 to vector<8x128xf32>
    %212 = arith.mulf %211, %15 : vector<8x128xf32>
    %213 = arith.addf %209, %212 : vector<8x128xf32>
    %c52 = arith.constant 52 : index
    %214 = memref.load %arg2[%c52] : memref<326xf32, #tpu.memory_space<smem>>
    %215 = vector.broadcast %214 : f32 to vector<8x128xf32>
    %216 = arith.mulf %215, %27 : vector<8x128xf32>
    %217 = arith.addf %213, %216 : vector<8x128xf32>
    %c53 = arith.constant 53 : index
    %218 = memref.load %arg2[%c53] : memref<326xf32, #tpu.memory_space<smem>>
    %219 = vector.broadcast %218 : f32 to vector<8x128xf32>
    %220 = arith.mulf %219, %39 : vector<8x128xf32>
    %221 = arith.addf %217, %220 : vector<8x128xf32>
    %c54 = arith.constant 54 : index
    %222 = memref.load %arg2[%c54] : memref<326xf32, #tpu.memory_space<smem>>
    %223 = vector.broadcast %222 : f32 to vector<8x128xf32>
    %224 = arith.mulf %223, %51 : vector<8x128xf32>
    %225 = arith.addf %221, %224 : vector<8x128xf32>
    %c55 = arith.constant 55 : index
    %226 = memref.load %arg2[%c55] : memref<326xf32, #tpu.memory_space<smem>>
    %227 = vector.broadcast %226 : f32 to vector<8x128xf32>
    %228 = arith.mulf %227, %63 : vector<8x128xf32>
    %229 = arith.addf %225, %228 : vector<8x128xf32>
    %cst_16 = arith.constant 0.000000e+00 : f32
    %230 = vector.broadcast %cst_16 : f32 to vector<8x128xf32>
    %231 = arith.maximumf %229, %230 : vector<8x128xf32>
    %c62 = arith.constant 62 : index
    %232 = memref.load %arg2[%c62] : memref<326xf32, #tpu.memory_space<smem>>
    %233 = vector.broadcast %232 : f32 to vector<8x128xf32>
    %c57 = arith.constant 57 : index
    %234 = memref.load %arg2[%c57] : memref<326xf32, #tpu.memory_space<smem>>
    %235 = vector.broadcast %234 : f32 to vector<8x128xf32>
    %236 = arith.mulf %235, %15 : vector<8x128xf32>
    %237 = arith.addf %233, %236 : vector<8x128xf32>
    %c58 = arith.constant 58 : index
    %238 = memref.load %arg2[%c58] : memref<326xf32, #tpu.memory_space<smem>>
    %239 = vector.broadcast %238 : f32 to vector<8x128xf32>
    %240 = arith.mulf %239, %27 : vector<8x128xf32>
    %241 = arith.addf %237, %240 : vector<8x128xf32>
    %c59 = arith.constant 59 : index
    %242 = memref.load %arg2[%c59] : memref<326xf32, #tpu.memory_space<smem>>
    %243 = vector.broadcast %242 : f32 to vector<8x128xf32>
    %244 = arith.mulf %243, %39 : vector<8x128xf32>
    %245 = arith.addf %241, %244 : vector<8x128xf32>
    %c60 = arith.constant 60 : index
    %246 = memref.load %arg2[%c60] : memref<326xf32, #tpu.memory_space<smem>>
    %247 = vector.broadcast %246 : f32 to vector<8x128xf32>
    %248 = arith.mulf %247, %51 : vector<8x128xf32>
    %249 = arith.addf %245, %248 : vector<8x128xf32>
    %c61 = arith.constant 61 : index
    %250 = memref.load %arg2[%c61] : memref<326xf32, #tpu.memory_space<smem>>
    %251 = vector.broadcast %250 : f32 to vector<8x128xf32>
    %252 = arith.mulf %251, %63 : vector<8x128xf32>
    %253 = arith.addf %249, %252 : vector<8x128xf32>
    %cst_17 = arith.constant 0.000000e+00 : f32
    %254 = vector.broadcast %cst_17 : f32 to vector<8x128xf32>
    %255 = arith.maximumf %253, %254 : vector<8x128xf32>
    %c68 = arith.constant 68 : index
    %256 = memref.load %arg2[%c68] : memref<326xf32, #tpu.memory_space<smem>>
    %257 = vector.broadcast %256 : f32 to vector<8x128xf32>
    %c63 = arith.constant 63 : index
    %258 = memref.load %arg2[%c63] : memref<326xf32, #tpu.memory_space<smem>>
    %259 = vector.broadcast %258 : f32 to vector<8x128xf32>
    %260 = arith.mulf %259, %15 : vector<8x128xf32>
    %261 = arith.addf %257, %260 : vector<8x128xf32>
    %c64 = arith.constant 64 : index
    %262 = memref.load %arg2[%c64] : memref<326xf32, #tpu.memory_space<smem>>
    %263 = vector.broadcast %262 : f32 to vector<8x128xf32>
    %264 = arith.mulf %263, %27 : vector<8x128xf32>
    %265 = arith.addf %261, %264 : vector<8x128xf32>
    %c65 = arith.constant 65 : index
    %266 = memref.load %arg2[%c65] : memref<326xf32, #tpu.memory_space<smem>>
    %267 = vector.broadcast %266 : f32 to vector<8x128xf32>
    %268 = arith.mulf %267, %39 : vector<8x128xf32>
    %269 = arith.addf %265, %268 : vector<8x128xf32>
    %c66 = arith.constant 66 : index
    %270 = memref.load %arg2[%c66] : memref<326xf32, #tpu.memory_space<smem>>
    %271 = vector.broadcast %270 : f32 to vector<8x128xf32>
    %272 = arith.mulf %271, %51 : vector<8x128xf32>
    %273 = arith.addf %269, %272 : vector<8x128xf32>
    %c67 = arith.constant 67 : index
    %274 = memref.load %arg2[%c67] : memref<326xf32, #tpu.memory_space<smem>>
    %275 = vector.broadcast %274 : f32 to vector<8x128xf32>
    %276 = arith.mulf %275, %63 : vector<8x128xf32>
    %277 = arith.addf %273, %276 : vector<8x128xf32>
    %cst_18 = arith.constant 0.000000e+00 : f32
    %278 = vector.broadcast %cst_18 : f32 to vector<8x128xf32>
    %279 = arith.maximumf %277, %278 : vector<8x128xf32>
    %c74 = arith.constant 74 : index
    %280 = memref.load %arg2[%c74] : memref<326xf32, #tpu.memory_space<smem>>
    %281 = vector.broadcast %280 : f32 to vector<8x128xf32>
    %c69 = arith.constant 69 : index
    %282 = memref.load %arg2[%c69] : memref<326xf32, #tpu.memory_space<smem>>
    %283 = vector.broadcast %282 : f32 to vector<8x128xf32>
    %284 = arith.mulf %283, %15 : vector<8x128xf32>
    %285 = arith.addf %281, %284 : vector<8x128xf32>
    %c70 = arith.constant 70 : index
    %286 = memref.load %arg2[%c70] : memref<326xf32, #tpu.memory_space<smem>>
    %287 = vector.broadcast %286 : f32 to vector<8x128xf32>
    %288 = arith.mulf %287, %27 : vector<8x128xf32>
    %289 = arith.addf %285, %288 : vector<8x128xf32>
    %c71 = arith.constant 71 : index
    %290 = memref.load %arg2[%c71] : memref<326xf32, #tpu.memory_space<smem>>
    %291 = vector.broadcast %290 : f32 to vector<8x128xf32>
    %292 = arith.mulf %291, %39 : vector<8x128xf32>
    %293 = arith.addf %289, %292 : vector<8x128xf32>
    %c72 = arith.constant 72 : index
    %294 = memref.load %arg2[%c72] : memref<326xf32, #tpu.memory_space<smem>>
    %295 = vector.broadcast %294 : f32 to vector<8x128xf32>
    %296 = arith.mulf %295, %51 : vector<8x128xf32>
    %297 = arith.addf %293, %296 : vector<8x128xf32>
    %c73 = arith.constant 73 : index
    %298 = memref.load %arg2[%c73] : memref<326xf32, #tpu.memory_space<smem>>
    %299 = vector.broadcast %298 : f32 to vector<8x128xf32>
    %300 = arith.mulf %299, %63 : vector<8x128xf32>
    %301 = arith.addf %297, %300 : vector<8x128xf32>
    %cst_19 = arith.constant 0.000000e+00 : f32
    %302 = vector.broadcast %cst_19 : f32 to vector<8x128xf32>
    %303 = arith.maximumf %301, %302 : vector<8x128xf32>
    %c85 = arith.constant 85 : index
    %304 = memref.load %arg2[%c85] : memref<326xf32, #tpu.memory_space<smem>>
    %305 = vector.broadcast %304 : f32 to vector<8x128xf32>
    %c75 = arith.constant 75 : index
    %306 = memref.load %arg2[%c75] : memref<326xf32, #tpu.memory_space<smem>>
    %307 = vector.broadcast %306 : f32 to vector<8x128xf32>
    %308 = arith.mulf %307, %87 : vector<8x128xf32>
    %309 = arith.addf %305, %308 : vector<8x128xf32>
    %c76 = arith.constant 76 : index
    %310 = memref.load %arg2[%c76] : memref<326xf32, #tpu.memory_space<smem>>
    %311 = vector.broadcast %310 : f32 to vector<8x128xf32>
    %312 = arith.mulf %311, %111 : vector<8x128xf32>
    %313 = arith.addf %309, %312 : vector<8x128xf32>
    %c77 = arith.constant 77 : index
    %314 = memref.load %arg2[%c77] : memref<326xf32, #tpu.memory_space<smem>>
    %315 = vector.broadcast %314 : f32 to vector<8x128xf32>
    %316 = arith.mulf %315, %135 : vector<8x128xf32>
    %317 = arith.addf %313, %316 : vector<8x128xf32>
    %c78 = arith.constant 78 : index
    %318 = memref.load %arg2[%c78] : memref<326xf32, #tpu.memory_space<smem>>
    %319 = vector.broadcast %318 : f32 to vector<8x128xf32>
    %320 = arith.mulf %319, %159 : vector<8x128xf32>
    %321 = arith.addf %317, %320 : vector<8x128xf32>
    %c79 = arith.constant 79 : index
    %322 = memref.load %arg2[%c79] : memref<326xf32, #tpu.memory_space<smem>>
    %323 = vector.broadcast %322 : f32 to vector<8x128xf32>
    %324 = arith.mulf %323, %183 : vector<8x128xf32>
    %325 = arith.addf %321, %324 : vector<8x128xf32>
    %c80 = arith.constant 80 : index
    %326 = memref.load %arg2[%c80] : memref<326xf32, #tpu.memory_space<smem>>
    %327 = vector.broadcast %326 : f32 to vector<8x128xf32>
    %328 = arith.mulf %327, %207 : vector<8x128xf32>
    %329 = arith.addf %325, %328 : vector<8x128xf32>
    %c81 = arith.constant 81 : index
    %330 = memref.load %arg2[%c81] : memref<326xf32, #tpu.memory_space<smem>>
    %331 = vector.broadcast %330 : f32 to vector<8x128xf32>
    %332 = arith.mulf %331, %231 : vector<8x128xf32>
    %333 = arith.addf %329, %332 : vector<8x128xf32>
    %c82 = arith.constant 82 : index
    %334 = memref.load %arg2[%c82] : memref<326xf32, #tpu.memory_space<smem>>
    %335 = vector.broadcast %334 : f32 to vector<8x128xf32>
    %336 = arith.mulf %335, %255 : vector<8x128xf32>
    %337 = arith.addf %333, %336 : vector<8x128xf32>
    %c83 = arith.constant 83 : index
    %338 = memref.load %arg2[%c83] : memref<326xf32, #tpu.memory_space<smem>>
    %339 = vector.broadcast %338 : f32 to vector<8x128xf32>
    %340 = arith.mulf %339, %279 : vector<8x128xf32>
    %341 = arith.addf %337, %340 : vector<8x128xf32>
    %c84 = arith.constant 84 : index
    %342 = memref.load %arg2[%c84] : memref<326xf32, #tpu.memory_space<smem>>
    %343 = vector.broadcast %342 : f32 to vector<8x128xf32>
    %344 = arith.mulf %343, %303 : vector<8x128xf32>
    %345 = arith.addf %341, %344 : vector<8x128xf32>
    %cst_20 = arith.constant 0.000000e+00 : f32
    %346 = vector.broadcast %cst_20 : f32 to vector<8x128xf32>
    %347 = arith.maximumf %345, %346 : vector<8x128xf32>
    %c96 = arith.constant 96 : index
    %348 = memref.load %arg2[%c96] : memref<326xf32, #tpu.memory_space<smem>>
    %349 = vector.broadcast %348 : f32 to vector<8x128xf32>
    %c86 = arith.constant 86 : index
    %350 = memref.load %arg2[%c86] : memref<326xf32, #tpu.memory_space<smem>>
    %351 = vector.broadcast %350 : f32 to vector<8x128xf32>
    %352 = arith.mulf %351, %87 : vector<8x128xf32>
    %353 = arith.addf %349, %352 : vector<8x128xf32>
    %c87 = arith.constant 87 : index
    %354 = memref.load %arg2[%c87] : memref<326xf32, #tpu.memory_space<smem>>
    %355 = vector.broadcast %354 : f32 to vector<8x128xf32>
    %356 = arith.mulf %355, %111 : vector<8x128xf32>
    %357 = arith.addf %353, %356 : vector<8x128xf32>
    %c88 = arith.constant 88 : index
    %358 = memref.load %arg2[%c88] : memref<326xf32, #tpu.memory_space<smem>>
    %359 = vector.broadcast %358 : f32 to vector<8x128xf32>
    %360 = arith.mulf %359, %135 : vector<8x128xf32>
    %361 = arith.addf %357, %360 : vector<8x128xf32>
    %c89 = arith.constant 89 : index
    %362 = memref.load %arg2[%c89] : memref<326xf32, #tpu.memory_space<smem>>
    %363 = vector.broadcast %362 : f32 to vector<8x128xf32>
    %364 = arith.mulf %363, %159 : vector<8x128xf32>
    %365 = arith.addf %361, %364 : vector<8x128xf32>
    %c90 = arith.constant 90 : index
    %366 = memref.load %arg2[%c90] : memref<326xf32, #tpu.memory_space<smem>>
    %367 = vector.broadcast %366 : f32 to vector<8x128xf32>
    %368 = arith.mulf %367, %183 : vector<8x128xf32>
    %369 = arith.addf %365, %368 : vector<8x128xf32>
    %c91 = arith.constant 91 : index
    %370 = memref.load %arg2[%c91] : memref<326xf32, #tpu.memory_space<smem>>
    %371 = vector.broadcast %370 : f32 to vector<8x128xf32>
    %372 = arith.mulf %371, %207 : vector<8x128xf32>
    %373 = arith.addf %369, %372 : vector<8x128xf32>
    %c92 = arith.constant 92 : index
    %374 = memref.load %arg2[%c92] : memref<326xf32, #tpu.memory_space<smem>>
    %375 = vector.broadcast %374 : f32 to vector<8x128xf32>
    %376 = arith.mulf %375, %231 : vector<8x128xf32>
    %377 = arith.addf %373, %376 : vector<8x128xf32>
    %c93 = arith.constant 93 : index
    %378 = memref.load %arg2[%c93] : memref<326xf32, #tpu.memory_space<smem>>
    %379 = vector.broadcast %378 : f32 to vector<8x128xf32>
    %380 = arith.mulf %379, %255 : vector<8x128xf32>
    %381 = arith.addf %377, %380 : vector<8x128xf32>
    %c94 = arith.constant 94 : index
    %382 = memref.load %arg2[%c94] : memref<326xf32, #tpu.memory_space<smem>>
    %383 = vector.broadcast %382 : f32 to vector<8x128xf32>
    %384 = arith.mulf %383, %279 : vector<8x128xf32>
    %385 = arith.addf %381, %384 : vector<8x128xf32>
    %c95 = arith.constant 95 : index
    %386 = memref.load %arg2[%c95] : memref<326xf32, #tpu.memory_space<smem>>
    %387 = vector.broadcast %386 : f32 to vector<8x128xf32>
    %388 = arith.mulf %387, %303 : vector<8x128xf32>
    %389 = arith.addf %385, %388 : vector<8x128xf32>
    %cst_21 = arith.constant 0.000000e+00 : f32
    %390 = vector.broadcast %cst_21 : f32 to vector<8x128xf32>
    %391 = arith.maximumf %389, %390 : vector<8x128xf32>
    %c107 = arith.constant 107 : index
    %392 = memref.load %arg2[%c107] : memref<326xf32, #tpu.memory_space<smem>>
    %393 = vector.broadcast %392 : f32 to vector<8x128xf32>
    %c97 = arith.constant 97 : index
    %394 = memref.load %arg2[%c97] : memref<326xf32, #tpu.memory_space<smem>>
    %395 = vector.broadcast %394 : f32 to vector<8x128xf32>
    %396 = arith.mulf %395, %87 : vector<8x128xf32>
    %397 = arith.addf %393, %396 : vector<8x128xf32>
    %c98 = arith.constant 98 : index
    %398 = memref.load %arg2[%c98] : memref<326xf32, #tpu.memory_space<smem>>
    %399 = vector.broadcast %398 : f32 to vector<8x128xf32>
    %400 = arith.mulf %399, %111 : vector<8x128xf32>
    %401 = arith.addf %397, %400 : vector<8x128xf32>
    %c99 = arith.constant 99 : index
    %402 = memref.load %arg2[%c99] : memref<326xf32, #tpu.memory_space<smem>>
    %403 = vector.broadcast %402 : f32 to vector<8x128xf32>
    %404 = arith.mulf %403, %135 : vector<8x128xf32>
    %405 = arith.addf %401, %404 : vector<8x128xf32>
    %c100 = arith.constant 100 : index
    %406 = memref.load %arg2[%c100] : memref<326xf32, #tpu.memory_space<smem>>
    %407 = vector.broadcast %406 : f32 to vector<8x128xf32>
    %408 = arith.mulf %407, %159 : vector<8x128xf32>
    %409 = arith.addf %405, %408 : vector<8x128xf32>
    %c101 = arith.constant 101 : index
    %410 = memref.load %arg2[%c101] : memref<326xf32, #tpu.memory_space<smem>>
    %411 = vector.broadcast %410 : f32 to vector<8x128xf32>
    %412 = arith.mulf %411, %183 : vector<8x128xf32>
    %413 = arith.addf %409, %412 : vector<8x128xf32>
    %c102 = arith.constant 102 : index
    %414 = memref.load %arg2[%c102] : memref<326xf32, #tpu.memory_space<smem>>
    %415 = vector.broadcast %414 : f32 to vector<8x128xf32>
    %416 = arith.mulf %415, %207 : vector<8x128xf32>
    %417 = arith.addf %413, %416 : vector<8x128xf32>
    %c103 = arith.constant 103 : index
    %418 = memref.load %arg2[%c103] : memref<326xf32, #tpu.memory_space<smem>>
    %419 = vector.broadcast %418 : f32 to vector<8x128xf32>
    %420 = arith.mulf %419, %231 : vector<8x128xf32>
    %421 = arith.addf %417, %420 : vector<8x128xf32>
    %c104 = arith.constant 104 : index
    %422 = memref.load %arg2[%c104] : memref<326xf32, #tpu.memory_space<smem>>
    %423 = vector.broadcast %422 : f32 to vector<8x128xf32>
    %424 = arith.mulf %423, %255 : vector<8x128xf32>
    %425 = arith.addf %421, %424 : vector<8x128xf32>
    %c105 = arith.constant 105 : index
    %426 = memref.load %arg2[%c105] : memref<326xf32, #tpu.memory_space<smem>>
    %427 = vector.broadcast %426 : f32 to vector<8x128xf32>
    %428 = arith.mulf %427, %279 : vector<8x128xf32>
    %429 = arith.addf %425, %428 : vector<8x128xf32>
    %c106 = arith.constant 106 : index
    %430 = memref.load %arg2[%c106] : memref<326xf32, #tpu.memory_space<smem>>
    %431 = vector.broadcast %430 : f32 to vector<8x128xf32>
    %432 = arith.mulf %431, %303 : vector<8x128xf32>
    %433 = arith.addf %429, %432 : vector<8x128xf32>
    %cst_22 = arith.constant 0.000000e+00 : f32
    %434 = vector.broadcast %cst_22 : f32 to vector<8x128xf32>
    %435 = arith.maximumf %433, %434 : vector<8x128xf32>
    %c118 = arith.constant 118 : index
    %436 = memref.load %arg2[%c118] : memref<326xf32, #tpu.memory_space<smem>>
    %437 = vector.broadcast %436 : f32 to vector<8x128xf32>
    %c108 = arith.constant 108 : index
    %438 = memref.load %arg2[%c108] : memref<326xf32, #tpu.memory_space<smem>>
    %439 = vector.broadcast %438 : f32 to vector<8x128xf32>
    %440 = arith.mulf %439, %87 : vector<8x128xf32>
    %441 = arith.addf %437, %440 : vector<8x128xf32>
    %c109 = arith.constant 109 : index
    %442 = memref.load %arg2[%c109] : memref<326xf32, #tpu.memory_space<smem>>
    %443 = vector.broadcast %442 : f32 to vector<8x128xf32>
    %444 = arith.mulf %443, %111 : vector<8x128xf32>
    %445 = arith.addf %441, %444 : vector<8x128xf32>
    %c110 = arith.constant 110 : index
    %446 = memref.load %arg2[%c110] : memref<326xf32, #tpu.memory_space<smem>>
    %447 = vector.broadcast %446 : f32 to vector<8x128xf32>
    %448 = arith.mulf %447, %135 : vector<8x128xf32>
    %449 = arith.addf %445, %448 : vector<8x128xf32>
    %c111 = arith.constant 111 : index
    %450 = memref.load %arg2[%c111] : memref<326xf32, #tpu.memory_space<smem>>
    %451 = vector.broadcast %450 : f32 to vector<8x128xf32>
    %452 = arith.mulf %451, %159 : vector<8x128xf32>
    %453 = arith.addf %449, %452 : vector<8x128xf32>
    %c112 = arith.constant 112 : index
    %454 = memref.load %arg2[%c112] : memref<326xf32, #tpu.memory_space<smem>>
    %455 = vector.broadcast %454 : f32 to vector<8x128xf32>
    %456 = arith.mulf %455, %183 : vector<8x128xf32>
    %457 = arith.addf %453, %456 : vector<8x128xf32>
    %c113 = arith.constant 113 : index
    %458 = memref.load %arg2[%c113] : memref<326xf32, #tpu.memory_space<smem>>
    %459 = vector.broadcast %458 : f32 to vector<8x128xf32>
    %460 = arith.mulf %459, %207 : vector<8x128xf32>
    %461 = arith.addf %457, %460 : vector<8x128xf32>
    %c114 = arith.constant 114 : index
    %462 = memref.load %arg2[%c114] : memref<326xf32, #tpu.memory_space<smem>>
    %463 = vector.broadcast %462 : f32 to vector<8x128xf32>
    %464 = arith.mulf %463, %231 : vector<8x128xf32>
    %465 = arith.addf %461, %464 : vector<8x128xf32>
    %c115 = arith.constant 115 : index
    %466 = memref.load %arg2[%c115] : memref<326xf32, #tpu.memory_space<smem>>
    %467 = vector.broadcast %466 : f32 to vector<8x128xf32>
    %468 = arith.mulf %467, %255 : vector<8x128xf32>
    %469 = arith.addf %465, %468 : vector<8x128xf32>
    %c116 = arith.constant 116 : index
    %470 = memref.load %arg2[%c116] : memref<326xf32, #tpu.memory_space<smem>>
    %471 = vector.broadcast %470 : f32 to vector<8x128xf32>
    %472 = arith.mulf %471, %279 : vector<8x128xf32>
    %473 = arith.addf %469, %472 : vector<8x128xf32>
    %c117 = arith.constant 117 : index
    %474 = memref.load %arg2[%c117] : memref<326xf32, #tpu.memory_space<smem>>
    %475 = vector.broadcast %474 : f32 to vector<8x128xf32>
    %476 = arith.mulf %475, %303 : vector<8x128xf32>
    %477 = arith.addf %473, %476 : vector<8x128xf32>
    %cst_23 = arith.constant 0.000000e+00 : f32
    %478 = vector.broadcast %cst_23 : f32 to vector<8x128xf32>
    %479 = arith.maximumf %477, %478 : vector<8x128xf32>
    %c129 = arith.constant 129 : index
    %480 = memref.load %arg2[%c129] : memref<326xf32, #tpu.memory_space<smem>>
    %481 = vector.broadcast %480 : f32 to vector<8x128xf32>
    %c119 = arith.constant 119 : index
    %482 = memref.load %arg2[%c119] : memref<326xf32, #tpu.memory_space<smem>>
    %483 = vector.broadcast %482 : f32 to vector<8x128xf32>
    %484 = arith.mulf %483, %87 : vector<8x128xf32>
    %485 = arith.addf %481, %484 : vector<8x128xf32>
    %c120 = arith.constant 120 : index
    %486 = memref.load %arg2[%c120] : memref<326xf32, #tpu.memory_space<smem>>
    %487 = vector.broadcast %486 : f32 to vector<8x128xf32>
    %488 = arith.mulf %487, %111 : vector<8x128xf32>
    %489 = arith.addf %485, %488 : vector<8x128xf32>
    %c121 = arith.constant 121 : index
    %490 = memref.load %arg2[%c121] : memref<326xf32, #tpu.memory_space<smem>>
    %491 = vector.broadcast %490 : f32 to vector<8x128xf32>
    %492 = arith.mulf %491, %135 : vector<8x128xf32>
    %493 = arith.addf %489, %492 : vector<8x128xf32>
    %c122 = arith.constant 122 : index
    %494 = memref.load %arg2[%c122] : memref<326xf32, #tpu.memory_space<smem>>
    %495 = vector.broadcast %494 : f32 to vector<8x128xf32>
    %496 = arith.mulf %495, %159 : vector<8x128xf32>
    %497 = arith.addf %493, %496 : vector<8x128xf32>
    %c123 = arith.constant 123 : index
    %498 = memref.load %arg2[%c123] : memref<326xf32, #tpu.memory_space<smem>>
    %499 = vector.broadcast %498 : f32 to vector<8x128xf32>
    %500 = arith.mulf %499, %183 : vector<8x128xf32>
    %501 = arith.addf %497, %500 : vector<8x128xf32>
    %c124 = arith.constant 124 : index
    %502 = memref.load %arg2[%c124] : memref<326xf32, #tpu.memory_space<smem>>
    %503 = vector.broadcast %502 : f32 to vector<8x128xf32>
    %504 = arith.mulf %503, %207 : vector<8x128xf32>
    %505 = arith.addf %501, %504 : vector<8x128xf32>
    %c125 = arith.constant 125 : index
    %506 = memref.load %arg2[%c125] : memref<326xf32, #tpu.memory_space<smem>>
    %507 = vector.broadcast %506 : f32 to vector<8x128xf32>
    %508 = arith.mulf %507, %231 : vector<8x128xf32>
    %509 = arith.addf %505, %508 : vector<8x128xf32>
    %c126 = arith.constant 126 : index
    %510 = memref.load %arg2[%c126] : memref<326xf32, #tpu.memory_space<smem>>
    %511 = vector.broadcast %510 : f32 to vector<8x128xf32>
    %512 = arith.mulf %511, %255 : vector<8x128xf32>
    %513 = arith.addf %509, %512 : vector<8x128xf32>
    %c127 = arith.constant 127 : index
    %514 = memref.load %arg2[%c127] : memref<326xf32, #tpu.memory_space<smem>>
    %515 = vector.broadcast %514 : f32 to vector<8x128xf32>
    %516 = arith.mulf %515, %279 : vector<8x128xf32>
    %517 = arith.addf %513, %516 : vector<8x128xf32>
    %c128 = arith.constant 128 : index
    %518 = memref.load %arg2[%c128] : memref<326xf32, #tpu.memory_space<smem>>
    %519 = vector.broadcast %518 : f32 to vector<8x128xf32>
    %520 = arith.mulf %519, %303 : vector<8x128xf32>
    %521 = arith.addf %517, %520 : vector<8x128xf32>
    %cst_24 = arith.constant 0.000000e+00 : f32
    %522 = vector.broadcast %cst_24 : f32 to vector<8x128xf32>
    %523 = arith.maximumf %521, %522 : vector<8x128xf32>
    %c140 = arith.constant 140 : index
    %524 = memref.load %arg2[%c140] : memref<326xf32, #tpu.memory_space<smem>>
    %525 = vector.broadcast %524 : f32 to vector<8x128xf32>
    %c130 = arith.constant 130 : index
    %526 = memref.load %arg2[%c130] : memref<326xf32, #tpu.memory_space<smem>>
    %527 = vector.broadcast %526 : f32 to vector<8x128xf32>
    %528 = arith.mulf %527, %87 : vector<8x128xf32>
    %529 = arith.addf %525, %528 : vector<8x128xf32>
    %c131 = arith.constant 131 : index
    %530 = memref.load %arg2[%c131] : memref<326xf32, #tpu.memory_space<smem>>
    %531 = vector.broadcast %530 : f32 to vector<8x128xf32>
    %532 = arith.mulf %531, %111 : vector<8x128xf32>
    %533 = arith.addf %529, %532 : vector<8x128xf32>
    %c132 = arith.constant 132 : index
    %534 = memref.load %arg2[%c132] : memref<326xf32, #tpu.memory_space<smem>>
    %535 = vector.broadcast %534 : f32 to vector<8x128xf32>
    %536 = arith.mulf %535, %135 : vector<8x128xf32>
    %537 = arith.addf %533, %536 : vector<8x128xf32>
    %c133 = arith.constant 133 : index
    %538 = memref.load %arg2[%c133] : memref<326xf32, #tpu.memory_space<smem>>
    %539 = vector.broadcast %538 : f32 to vector<8x128xf32>
    %540 = arith.mulf %539, %159 : vector<8x128xf32>
    %541 = arith.addf %537, %540 : vector<8x128xf32>
    %c134 = arith.constant 134 : index
    %542 = memref.load %arg2[%c134] : memref<326xf32, #tpu.memory_space<smem>>
    %543 = vector.broadcast %542 : f32 to vector<8x128xf32>
    %544 = arith.mulf %543, %183 : vector<8x128xf32>
    %545 = arith.addf %541, %544 : vector<8x128xf32>
    %c135 = arith.constant 135 : index
    %546 = memref.load %arg2[%c135] : memref<326xf32, #tpu.memory_space<smem>>
    %547 = vector.broadcast %546 : f32 to vector<8x128xf32>
    %548 = arith.mulf %547, %207 : vector<8x128xf32>
    %549 = arith.addf %545, %548 : vector<8x128xf32>
    %c136 = arith.constant 136 : index
    %550 = memref.load %arg2[%c136] : memref<326xf32, #tpu.memory_space<smem>>
    %551 = vector.broadcast %550 : f32 to vector<8x128xf32>
    %552 = arith.mulf %551, %231 : vector<8x128xf32>
    %553 = arith.addf %549, %552 : vector<8x128xf32>
    %c137 = arith.constant 137 : index
    %554 = memref.load %arg2[%c137] : memref<326xf32, #tpu.memory_space<smem>>
    %555 = vector.broadcast %554 : f32 to vector<8x128xf32>
    %556 = arith.mulf %555, %255 : vector<8x128xf32>
    %557 = arith.addf %553, %556 : vector<8x128xf32>
    %c138 = arith.constant 138 : index
    %558 = memref.load %arg2[%c138] : memref<326xf32, #tpu.memory_space<smem>>
    %559 = vector.broadcast %558 : f32 to vector<8x128xf32>
    %560 = arith.mulf %559, %279 : vector<8x128xf32>
    %561 = arith.addf %557, %560 : vector<8x128xf32>
    %c139 = arith.constant 139 : index
    %562 = memref.load %arg2[%c139] : memref<326xf32, #tpu.memory_space<smem>>
    %563 = vector.broadcast %562 : f32 to vector<8x128xf32>
    %564 = arith.mulf %563, %303 : vector<8x128xf32>
    %565 = arith.addf %561, %564 : vector<8x128xf32>
    %cst_25 = arith.constant 0.000000e+00 : f32
    %566 = vector.broadcast %cst_25 : f32 to vector<8x128xf32>
    %567 = arith.maximumf %565, %566 : vector<8x128xf32>
    %c151 = arith.constant 151 : index
    %568 = memref.load %arg2[%c151] : memref<326xf32, #tpu.memory_space<smem>>
    %569 = vector.broadcast %568 : f32 to vector<8x128xf32>
    %c141 = arith.constant 141 : index
    %570 = memref.load %arg2[%c141] : memref<326xf32, #tpu.memory_space<smem>>
    %571 = vector.broadcast %570 : f32 to vector<8x128xf32>
    %572 = arith.mulf %571, %87 : vector<8x128xf32>
    %573 = arith.addf %569, %572 : vector<8x128xf32>
    %c142 = arith.constant 142 : index
    %574 = memref.load %arg2[%c142] : memref<326xf32, #tpu.memory_space<smem>>
    %575 = vector.broadcast %574 : f32 to vector<8x128xf32>
    %576 = arith.mulf %575, %111 : vector<8x128xf32>
    %577 = arith.addf %573, %576 : vector<8x128xf32>
    %c143 = arith.constant 143 : index
    %578 = memref.load %arg2[%c143] : memref<326xf32, #tpu.memory_space<smem>>
    %579 = vector.broadcast %578 : f32 to vector<8x128xf32>
    %580 = arith.mulf %579, %135 : vector<8x128xf32>
    %581 = arith.addf %577, %580 : vector<8x128xf32>
    %c144 = arith.constant 144 : index
    %582 = memref.load %arg2[%c144] : memref<326xf32, #tpu.memory_space<smem>>
    %583 = vector.broadcast %582 : f32 to vector<8x128xf32>
    %584 = arith.mulf %583, %159 : vector<8x128xf32>
    %585 = arith.addf %581, %584 : vector<8x128xf32>
    %c145 = arith.constant 145 : index
    %586 = memref.load %arg2[%c145] : memref<326xf32, #tpu.memory_space<smem>>
    %587 = vector.broadcast %586 : f32 to vector<8x128xf32>
    %588 = arith.mulf %587, %183 : vector<8x128xf32>
    %589 = arith.addf %585, %588 : vector<8x128xf32>
    %c146 = arith.constant 146 : index
    %590 = memref.load %arg2[%c146] : memref<326xf32, #tpu.memory_space<smem>>
    %591 = vector.broadcast %590 : f32 to vector<8x128xf32>
    %592 = arith.mulf %591, %207 : vector<8x128xf32>
    %593 = arith.addf %589, %592 : vector<8x128xf32>
    %c147 = arith.constant 147 : index
    %594 = memref.load %arg2[%c147] : memref<326xf32, #tpu.memory_space<smem>>
    %595 = vector.broadcast %594 : f32 to vector<8x128xf32>
    %596 = arith.mulf %595, %231 : vector<8x128xf32>
    %597 = arith.addf %593, %596 : vector<8x128xf32>
    %c148 = arith.constant 148 : index
    %598 = memref.load %arg2[%c148] : memref<326xf32, #tpu.memory_space<smem>>
    %599 = vector.broadcast %598 : f32 to vector<8x128xf32>
    %600 = arith.mulf %599, %255 : vector<8x128xf32>
    %601 = arith.addf %597, %600 : vector<8x128xf32>
    %c149 = arith.constant 149 : index
    %602 = memref.load %arg2[%c149] : memref<326xf32, #tpu.memory_space<smem>>
    %603 = vector.broadcast %602 : f32 to vector<8x128xf32>
    %604 = arith.mulf %603, %279 : vector<8x128xf32>
    %605 = arith.addf %601, %604 : vector<8x128xf32>
    %c150 = arith.constant 150 : index
    %606 = memref.load %arg2[%c150] : memref<326xf32, #tpu.memory_space<smem>>
    %607 = vector.broadcast %606 : f32 to vector<8x128xf32>
    %608 = arith.mulf %607, %303 : vector<8x128xf32>
    %609 = arith.addf %605, %608 : vector<8x128xf32>
    %cst_26 = arith.constant 0.000000e+00 : f32
    %610 = vector.broadcast %cst_26 : f32 to vector<8x128xf32>
    %611 = arith.maximumf %609, %610 : vector<8x128xf32>
    %c162 = arith.constant 162 : index
    %612 = memref.load %arg2[%c162] : memref<326xf32, #tpu.memory_space<smem>>
    %613 = vector.broadcast %612 : f32 to vector<8x128xf32>
    %c152 = arith.constant 152 : index
    %614 = memref.load %arg2[%c152] : memref<326xf32, #tpu.memory_space<smem>>
    %615 = vector.broadcast %614 : f32 to vector<8x128xf32>
    %616 = arith.mulf %615, %87 : vector<8x128xf32>
    %617 = arith.addf %613, %616 : vector<8x128xf32>
    %c153 = arith.constant 153 : index
    %618 = memref.load %arg2[%c153] : memref<326xf32, #tpu.memory_space<smem>>
    %619 = vector.broadcast %618 : f32 to vector<8x128xf32>
    %620 = arith.mulf %619, %111 : vector<8x128xf32>
    %621 = arith.addf %617, %620 : vector<8x128xf32>
    %c154 = arith.constant 154 : index
    %622 = memref.load %arg2[%c154] : memref<326xf32, #tpu.memory_space<smem>>
    %623 = vector.broadcast %622 : f32 to vector<8x128xf32>
    %624 = arith.mulf %623, %135 : vector<8x128xf32>
    %625 = arith.addf %621, %624 : vector<8x128xf32>
    %c155 = arith.constant 155 : index
    %626 = memref.load %arg2[%c155] : memref<326xf32, #tpu.memory_space<smem>>
    %627 = vector.broadcast %626 : f32 to vector<8x128xf32>
    %628 = arith.mulf %627, %159 : vector<8x128xf32>
    %629 = arith.addf %625, %628 : vector<8x128xf32>
    %c156 = arith.constant 156 : index
    %630 = memref.load %arg2[%c156] : memref<326xf32, #tpu.memory_space<smem>>
    %631 = vector.broadcast %630 : f32 to vector<8x128xf32>
    %632 = arith.mulf %631, %183 : vector<8x128xf32>
    %633 = arith.addf %629, %632 : vector<8x128xf32>
    %c157 = arith.constant 157 : index
    %634 = memref.load %arg2[%c157] : memref<326xf32, #tpu.memory_space<smem>>
    %635 = vector.broadcast %634 : f32 to vector<8x128xf32>
    %636 = arith.mulf %635, %207 : vector<8x128xf32>
    %637 = arith.addf %633, %636 : vector<8x128xf32>
    %c158 = arith.constant 158 : index
    %638 = memref.load %arg2[%c158] : memref<326xf32, #tpu.memory_space<smem>>
    %639 = vector.broadcast %638 : f32 to vector<8x128xf32>
    %640 = arith.mulf %639, %231 : vector<8x128xf32>
    %641 = arith.addf %637, %640 : vector<8x128xf32>
    %c159 = arith.constant 159 : index
    %642 = memref.load %arg2[%c159] : memref<326xf32, #tpu.memory_space<smem>>
    %643 = vector.broadcast %642 : f32 to vector<8x128xf32>
    %644 = arith.mulf %643, %255 : vector<8x128xf32>
    %645 = arith.addf %641, %644 : vector<8x128xf32>
    %c160 = arith.constant 160 : index
    %646 = memref.load %arg2[%c160] : memref<326xf32, #tpu.memory_space<smem>>
    %647 = vector.broadcast %646 : f32 to vector<8x128xf32>
    %648 = arith.mulf %647, %279 : vector<8x128xf32>
    %649 = arith.addf %645, %648 : vector<8x128xf32>
    %c161 = arith.constant 161 : index
    %650 = memref.load %arg2[%c161] : memref<326xf32, #tpu.memory_space<smem>>
    %651 = vector.broadcast %650 : f32 to vector<8x128xf32>
    %652 = arith.mulf %651, %303 : vector<8x128xf32>
    %653 = arith.addf %649, %652 : vector<8x128xf32>
    %cst_27 = arith.constant 0.000000e+00 : f32
    %654 = vector.broadcast %cst_27 : f32 to vector<8x128xf32>
    %655 = arith.maximumf %653, %654 : vector<8x128xf32>
    %c173 = arith.constant 173 : index
    %656 = memref.load %arg2[%c173] : memref<326xf32, #tpu.memory_space<smem>>
    %657 = vector.broadcast %656 : f32 to vector<8x128xf32>
    %c163 = arith.constant 163 : index
    %658 = memref.load %arg2[%c163] : memref<326xf32, #tpu.memory_space<smem>>
    %659 = vector.broadcast %658 : f32 to vector<8x128xf32>
    %660 = arith.mulf %659, %87 : vector<8x128xf32>
    %661 = arith.addf %657, %660 : vector<8x128xf32>
    %c164 = arith.constant 164 : index
    %662 = memref.load %arg2[%c164] : memref<326xf32, #tpu.memory_space<smem>>
    %663 = vector.broadcast %662 : f32 to vector<8x128xf32>
    %664 = arith.mulf %663, %111 : vector<8x128xf32>
    %665 = arith.addf %661, %664 : vector<8x128xf32>
    %c165 = arith.constant 165 : index
    %666 = memref.load %arg2[%c165] : memref<326xf32, #tpu.memory_space<smem>>
    %667 = vector.broadcast %666 : f32 to vector<8x128xf32>
    %668 = arith.mulf %667, %135 : vector<8x128xf32>
    %669 = arith.addf %665, %668 : vector<8x128xf32>
    %c166 = arith.constant 166 : index
    %670 = memref.load %arg2[%c166] : memref<326xf32, #tpu.memory_space<smem>>
    %671 = vector.broadcast %670 : f32 to vector<8x128xf32>
    %672 = arith.mulf %671, %159 : vector<8x128xf32>
    %673 = arith.addf %669, %672 : vector<8x128xf32>
    %c167 = arith.constant 167 : index
    %674 = memref.load %arg2[%c167] : memref<326xf32, #tpu.memory_space<smem>>
    %675 = vector.broadcast %674 : f32 to vector<8x128xf32>
    %676 = arith.mulf %675, %183 : vector<8x128xf32>
    %677 = arith.addf %673, %676 : vector<8x128xf32>
    %c168 = arith.constant 168 : index
    %678 = memref.load %arg2[%c168] : memref<326xf32, #tpu.memory_space<smem>>
    %679 = vector.broadcast %678 : f32 to vector<8x128xf32>
    %680 = arith.mulf %679, %207 : vector<8x128xf32>
    %681 = arith.addf %677, %680 : vector<8x128xf32>
    %c169 = arith.constant 169 : index
    %682 = memref.load %arg2[%c169] : memref<326xf32, #tpu.memory_space<smem>>
    %683 = vector.broadcast %682 : f32 to vector<8x128xf32>
    %684 = arith.mulf %683, %231 : vector<8x128xf32>
    %685 = arith.addf %681, %684 : vector<8x128xf32>
    %c170 = arith.constant 170 : index
    %686 = memref.load %arg2[%c170] : memref<326xf32, #tpu.memory_space<smem>>
    %687 = vector.broadcast %686 : f32 to vector<8x128xf32>
    %688 = arith.mulf %687, %255 : vector<8x128xf32>
    %689 = arith.addf %685, %688 : vector<8x128xf32>
    %c171 = arith.constant 171 : index
    %690 = memref.load %arg2[%c171] : memref<326xf32, #tpu.memory_space<smem>>
    %691 = vector.broadcast %690 : f32 to vector<8x128xf32>
    %692 = arith.mulf %691, %279 : vector<8x128xf32>
    %693 = arith.addf %689, %692 : vector<8x128xf32>
    %c172 = arith.constant 172 : index
    %694 = memref.load %arg2[%c172] : memref<326xf32, #tpu.memory_space<smem>>
    %695 = vector.broadcast %694 : f32 to vector<8x128xf32>
    %696 = arith.mulf %695, %303 : vector<8x128xf32>
    %697 = arith.addf %693, %696 : vector<8x128xf32>
    %cst_28 = arith.constant 0.000000e+00 : f32
    %698 = vector.broadcast %cst_28 : f32 to vector<8x128xf32>
    %699 = arith.maximumf %697, %698 : vector<8x128xf32>
    %c184 = arith.constant 184 : index
    %700 = memref.load %arg2[%c184] : memref<326xf32, #tpu.memory_space<smem>>
    %701 = vector.broadcast %700 : f32 to vector<8x128xf32>
    %c174 = arith.constant 174 : index
    %702 = memref.load %arg2[%c174] : memref<326xf32, #tpu.memory_space<smem>>
    %703 = vector.broadcast %702 : f32 to vector<8x128xf32>
    %704 = arith.mulf %703, %87 : vector<8x128xf32>
    %705 = arith.addf %701, %704 : vector<8x128xf32>
    %c175 = arith.constant 175 : index
    %706 = memref.load %arg2[%c175] : memref<326xf32, #tpu.memory_space<smem>>
    %707 = vector.broadcast %706 : f32 to vector<8x128xf32>
    %708 = arith.mulf %707, %111 : vector<8x128xf32>
    %709 = arith.addf %705, %708 : vector<8x128xf32>
    %c176 = arith.constant 176 : index
    %710 = memref.load %arg2[%c176] : memref<326xf32, #tpu.memory_space<smem>>
    %711 = vector.broadcast %710 : f32 to vector<8x128xf32>
    %712 = arith.mulf %711, %135 : vector<8x128xf32>
    %713 = arith.addf %709, %712 : vector<8x128xf32>
    %c177 = arith.constant 177 : index
    %714 = memref.load %arg2[%c177] : memref<326xf32, #tpu.memory_space<smem>>
    %715 = vector.broadcast %714 : f32 to vector<8x128xf32>
    %716 = arith.mulf %715, %159 : vector<8x128xf32>
    %717 = arith.addf %713, %716 : vector<8x128xf32>
    %c178 = arith.constant 178 : index
    %718 = memref.load %arg2[%c178] : memref<326xf32, #tpu.memory_space<smem>>
    %719 = vector.broadcast %718 : f32 to vector<8x128xf32>
    %720 = arith.mulf %719, %183 : vector<8x128xf32>
    %721 = arith.addf %717, %720 : vector<8x128xf32>
    %c179 = arith.constant 179 : index
    %722 = memref.load %arg2[%c179] : memref<326xf32, #tpu.memory_space<smem>>
    %723 = vector.broadcast %722 : f32 to vector<8x128xf32>
    %724 = arith.mulf %723, %207 : vector<8x128xf32>
    %725 = arith.addf %721, %724 : vector<8x128xf32>
    %c180 = arith.constant 180 : index
    %726 = memref.load %arg2[%c180] : memref<326xf32, #tpu.memory_space<smem>>
    %727 = vector.broadcast %726 : f32 to vector<8x128xf32>
    %728 = arith.mulf %727, %231 : vector<8x128xf32>
    %729 = arith.addf %725, %728 : vector<8x128xf32>
    %c181 = arith.constant 181 : index
    %730 = memref.load %arg2[%c181] : memref<326xf32, #tpu.memory_space<smem>>
    %731 = vector.broadcast %730 : f32 to vector<8x128xf32>
    %732 = arith.mulf %731, %255 : vector<8x128xf32>
    %733 = arith.addf %729, %732 : vector<8x128xf32>
    %c182 = arith.constant 182 : index
    %734 = memref.load %arg2[%c182] : memref<326xf32, #tpu.memory_space<smem>>
    %735 = vector.broadcast %734 : f32 to vector<8x128xf32>
    %736 = arith.mulf %735, %279 : vector<8x128xf32>
    %737 = arith.addf %733, %736 : vector<8x128xf32>
    %c183 = arith.constant 183 : index
    %738 = memref.load %arg2[%c183] : memref<326xf32, #tpu.memory_space<smem>>
    %739 = vector.broadcast %738 : f32 to vector<8x128xf32>
    %740 = arith.mulf %739, %303 : vector<8x128xf32>
    %741 = arith.addf %737, %740 : vector<8x128xf32>
    %cst_29 = arith.constant 0.000000e+00 : f32
    %742 = vector.broadcast %cst_29 : f32 to vector<8x128xf32>
    %743 = arith.maximumf %741, %742 : vector<8x128xf32>
    %c195 = arith.constant 195 : index
    %744 = memref.load %arg2[%c195] : memref<326xf32, #tpu.memory_space<smem>>
    %745 = vector.broadcast %744 : f32 to vector<8x128xf32>
    %c185 = arith.constant 185 : index
    %746 = memref.load %arg2[%c185] : memref<326xf32, #tpu.memory_space<smem>>
    %747 = vector.broadcast %746 : f32 to vector<8x128xf32>
    %748 = arith.mulf %747, %87 : vector<8x128xf32>
    %749 = arith.addf %745, %748 : vector<8x128xf32>
    %c186 = arith.constant 186 : index
    %750 = memref.load %arg2[%c186] : memref<326xf32, #tpu.memory_space<smem>>
    %751 = vector.broadcast %750 : f32 to vector<8x128xf32>
    %752 = arith.mulf %751, %111 : vector<8x128xf32>
    %753 = arith.addf %749, %752 : vector<8x128xf32>
    %c187 = arith.constant 187 : index
    %754 = memref.load %arg2[%c187] : memref<326xf32, #tpu.memory_space<smem>>
    %755 = vector.broadcast %754 : f32 to vector<8x128xf32>
    %756 = arith.mulf %755, %135 : vector<8x128xf32>
    %757 = arith.addf %753, %756 : vector<8x128xf32>
    %c188 = arith.constant 188 : index
    %758 = memref.load %arg2[%c188] : memref<326xf32, #tpu.memory_space<smem>>
    %759 = vector.broadcast %758 : f32 to vector<8x128xf32>
    %760 = arith.mulf %759, %159 : vector<8x128xf32>
    %761 = arith.addf %757, %760 : vector<8x128xf32>
    %c189 = arith.constant 189 : index
    %762 = memref.load %arg2[%c189] : memref<326xf32, #tpu.memory_space<smem>>
    %763 = vector.broadcast %762 : f32 to vector<8x128xf32>
    %764 = arith.mulf %763, %183 : vector<8x128xf32>
    %765 = arith.addf %761, %764 : vector<8x128xf32>
    %c190 = arith.constant 190 : index
    %766 = memref.load %arg2[%c190] : memref<326xf32, #tpu.memory_space<smem>>
    %767 = vector.broadcast %766 : f32 to vector<8x128xf32>
    %768 = arith.mulf %767, %207 : vector<8x128xf32>
    %769 = arith.addf %765, %768 : vector<8x128xf32>
    %c191 = arith.constant 191 : index
    %770 = memref.load %arg2[%c191] : memref<326xf32, #tpu.memory_space<smem>>
    %771 = vector.broadcast %770 : f32 to vector<8x128xf32>
    %772 = arith.mulf %771, %231 : vector<8x128xf32>
    %773 = arith.addf %769, %772 : vector<8x128xf32>
    %c192 = arith.constant 192 : index
    %774 = memref.load %arg2[%c192] : memref<326xf32, #tpu.memory_space<smem>>
    %775 = vector.broadcast %774 : f32 to vector<8x128xf32>
    %776 = arith.mulf %775, %255 : vector<8x128xf32>
    %777 = arith.addf %773, %776 : vector<8x128xf32>
    %c193 = arith.constant 193 : index
    %778 = memref.load %arg2[%c193] : memref<326xf32, #tpu.memory_space<smem>>
    %779 = vector.broadcast %778 : f32 to vector<8x128xf32>
    %780 = arith.mulf %779, %279 : vector<8x128xf32>
    %781 = arith.addf %777, %780 : vector<8x128xf32>
    %c194 = arith.constant 194 : index
    %782 = memref.load %arg2[%c194] : memref<326xf32, #tpu.memory_space<smem>>
    %783 = vector.broadcast %782 : f32 to vector<8x128xf32>
    %784 = arith.mulf %783, %303 : vector<8x128xf32>
    %785 = arith.addf %781, %784 : vector<8x128xf32>
    %cst_30 = arith.constant 0.000000e+00 : f32
    %786 = vector.broadcast %cst_30 : f32 to vector<8x128xf32>
    %787 = arith.maximumf %785, %786 : vector<8x128xf32>
    %c206 = arith.constant 206 : index
    %788 = memref.load %arg2[%c206] : memref<326xf32, #tpu.memory_space<smem>>
    %789 = vector.broadcast %788 : f32 to vector<8x128xf32>
    %c196 = arith.constant 196 : index
    %790 = memref.load %arg2[%c196] : memref<326xf32, #tpu.memory_space<smem>>
    %791 = vector.broadcast %790 : f32 to vector<8x128xf32>
    %792 = arith.mulf %791, %87 : vector<8x128xf32>
    %793 = arith.addf %789, %792 : vector<8x128xf32>
    %c197 = arith.constant 197 : index
    %794 = memref.load %arg2[%c197] : memref<326xf32, #tpu.memory_space<smem>>
    %795 = vector.broadcast %794 : f32 to vector<8x128xf32>
    %796 = arith.mulf %795, %111 : vector<8x128xf32>
    %797 = arith.addf %793, %796 : vector<8x128xf32>
    %c198 = arith.constant 198 : index
    %798 = memref.load %arg2[%c198] : memref<326xf32, #tpu.memory_space<smem>>
    %799 = vector.broadcast %798 : f32 to vector<8x128xf32>
    %800 = arith.mulf %799, %135 : vector<8x128xf32>
    %801 = arith.addf %797, %800 : vector<8x128xf32>
    %c199 = arith.constant 199 : index
    %802 = memref.load %arg2[%c199] : memref<326xf32, #tpu.memory_space<smem>>
    %803 = vector.broadcast %802 : f32 to vector<8x128xf32>
    %804 = arith.mulf %803, %159 : vector<8x128xf32>
    %805 = arith.addf %801, %804 : vector<8x128xf32>
    %c200 = arith.constant 200 : index
    %806 = memref.load %arg2[%c200] : memref<326xf32, #tpu.memory_space<smem>>
    %807 = vector.broadcast %806 : f32 to vector<8x128xf32>
    %808 = arith.mulf %807, %183 : vector<8x128xf32>
    %809 = arith.addf %805, %808 : vector<8x128xf32>
    %c201 = arith.constant 201 : index
    %810 = memref.load %arg2[%c201] : memref<326xf32, #tpu.memory_space<smem>>
    %811 = vector.broadcast %810 : f32 to vector<8x128xf32>
    %812 = arith.mulf %811, %207 : vector<8x128xf32>
    %813 = arith.addf %809, %812 : vector<8x128xf32>
    %c202 = arith.constant 202 : index
    %814 = memref.load %arg2[%c202] : memref<326xf32, #tpu.memory_space<smem>>
    %815 = vector.broadcast %814 : f32 to vector<8x128xf32>
    %816 = arith.mulf %815, %231 : vector<8x128xf32>
    %817 = arith.addf %813, %816 : vector<8x128xf32>
    %c203 = arith.constant 203 : index
    %818 = memref.load %arg2[%c203] : memref<326xf32, #tpu.memory_space<smem>>
    %819 = vector.broadcast %818 : f32 to vector<8x128xf32>
    %820 = arith.mulf %819, %255 : vector<8x128xf32>
    %821 = arith.addf %817, %820 : vector<8x128xf32>
    %c204 = arith.constant 204 : index
    %822 = memref.load %arg2[%c204] : memref<326xf32, #tpu.memory_space<smem>>
    %823 = vector.broadcast %822 : f32 to vector<8x128xf32>
    %824 = arith.mulf %823, %279 : vector<8x128xf32>
    %825 = arith.addf %821, %824 : vector<8x128xf32>
    %c205 = arith.constant 205 : index
    %826 = memref.load %arg2[%c205] : memref<326xf32, #tpu.memory_space<smem>>
    %827 = vector.broadcast %826 : f32 to vector<8x128xf32>
    %828 = arith.mulf %827, %303 : vector<8x128xf32>
    %829 = arith.addf %825, %828 : vector<8x128xf32>
    %cst_31 = arith.constant 0.000000e+00 : f32
    %830 = vector.broadcast %cst_31 : f32 to vector<8x128xf32>
    %831 = arith.maximumf %829, %830 : vector<8x128xf32>
    %c217 = arith.constant 217 : index
    %832 = memref.load %arg2[%c217] : memref<326xf32, #tpu.memory_space<smem>>
    %833 = vector.broadcast %832 : f32 to vector<8x128xf32>
    %c207 = arith.constant 207 : index
    %834 = memref.load %arg2[%c207] : memref<326xf32, #tpu.memory_space<smem>>
    %835 = vector.broadcast %834 : f32 to vector<8x128xf32>
    %836 = arith.mulf %835, %87 : vector<8x128xf32>
    %837 = arith.addf %833, %836 : vector<8x128xf32>
    %c208 = arith.constant 208 : index
    %838 = memref.load %arg2[%c208] : memref<326xf32, #tpu.memory_space<smem>>
    %839 = vector.broadcast %838 : f32 to vector<8x128xf32>
    %840 = arith.mulf %839, %111 : vector<8x128xf32>
    %841 = arith.addf %837, %840 : vector<8x128xf32>
    %c209 = arith.constant 209 : index
    %842 = memref.load %arg2[%c209] : memref<326xf32, #tpu.memory_space<smem>>
    %843 = vector.broadcast %842 : f32 to vector<8x128xf32>
    %844 = arith.mulf %843, %135 : vector<8x128xf32>
    %845 = arith.addf %841, %844 : vector<8x128xf32>
    %c210 = arith.constant 210 : index
    %846 = memref.load %arg2[%c210] : memref<326xf32, #tpu.memory_space<smem>>
    %847 = vector.broadcast %846 : f32 to vector<8x128xf32>
    %848 = arith.mulf %847, %159 : vector<8x128xf32>
    %849 = arith.addf %845, %848 : vector<8x128xf32>
    %c211 = arith.constant 211 : index
    %850 = memref.load %arg2[%c211] : memref<326xf32, #tpu.memory_space<smem>>
    %851 = vector.broadcast %850 : f32 to vector<8x128xf32>
    %852 = arith.mulf %851, %183 : vector<8x128xf32>
    %853 = arith.addf %849, %852 : vector<8x128xf32>
    %c212 = arith.constant 212 : index
    %854 = memref.load %arg2[%c212] : memref<326xf32, #tpu.memory_space<smem>>
    %855 = vector.broadcast %854 : f32 to vector<8x128xf32>
    %856 = arith.mulf %855, %207 : vector<8x128xf32>
    %857 = arith.addf %853, %856 : vector<8x128xf32>
    %c213 = arith.constant 213 : index
    %858 = memref.load %arg2[%c213] : memref<326xf32, #tpu.memory_space<smem>>
    %859 = vector.broadcast %858 : f32 to vector<8x128xf32>
    %860 = arith.mulf %859, %231 : vector<8x128xf32>
    %861 = arith.addf %857, %860 : vector<8x128xf32>
    %c214 = arith.constant 214 : index
    %862 = memref.load %arg2[%c214] : memref<326xf32, #tpu.memory_space<smem>>
    %863 = vector.broadcast %862 : f32 to vector<8x128xf32>
    %864 = arith.mulf %863, %255 : vector<8x128xf32>
    %865 = arith.addf %861, %864 : vector<8x128xf32>
    %c215 = arith.constant 215 : index
    %866 = memref.load %arg2[%c215] : memref<326xf32, #tpu.memory_space<smem>>
    %867 = vector.broadcast %866 : f32 to vector<8x128xf32>
    %868 = arith.mulf %867, %279 : vector<8x128xf32>
    %869 = arith.addf %865, %868 : vector<8x128xf32>
    %c216 = arith.constant 216 : index
    %870 = memref.load %arg2[%c216] : memref<326xf32, #tpu.memory_space<smem>>
    %871 = vector.broadcast %870 : f32 to vector<8x128xf32>
    %872 = arith.mulf %871, %303 : vector<8x128xf32>
    %873 = arith.addf %869, %872 : vector<8x128xf32>
    %cst_32 = arith.constant 0.000000e+00 : f32
    %874 = vector.broadcast %cst_32 : f32 to vector<8x128xf32>
    %875 = arith.maximumf %873, %874 : vector<8x128xf32>
    %c228 = arith.constant 228 : index
    %876 = memref.load %arg2[%c228] : memref<326xf32, #tpu.memory_space<smem>>
    %877 = vector.broadcast %876 : f32 to vector<8x128xf32>
    %c218 = arith.constant 218 : index
    %878 = memref.load %arg2[%c218] : memref<326xf32, #tpu.memory_space<smem>>
    %879 = vector.broadcast %878 : f32 to vector<8x128xf32>
    %880 = arith.mulf %879, %87 : vector<8x128xf32>
    %881 = arith.addf %877, %880 : vector<8x128xf32>
    %c219 = arith.constant 219 : index
    %882 = memref.load %arg2[%c219] : memref<326xf32, #tpu.memory_space<smem>>
    %883 = vector.broadcast %882 : f32 to vector<8x128xf32>
    %884 = arith.mulf %883, %111 : vector<8x128xf32>
    %885 = arith.addf %881, %884 : vector<8x128xf32>
    %c220 = arith.constant 220 : index
    %886 = memref.load %arg2[%c220] : memref<326xf32, #tpu.memory_space<smem>>
    %887 = vector.broadcast %886 : f32 to vector<8x128xf32>
    %888 = arith.mulf %887, %135 : vector<8x128xf32>
    %889 = arith.addf %885, %888 : vector<8x128xf32>
    %c221 = arith.constant 221 : index
    %890 = memref.load %arg2[%c221] : memref<326xf32, #tpu.memory_space<smem>>
    %891 = vector.broadcast %890 : f32 to vector<8x128xf32>
    %892 = arith.mulf %891, %159 : vector<8x128xf32>
    %893 = arith.addf %889, %892 : vector<8x128xf32>
    %c222 = arith.constant 222 : index
    %894 = memref.load %arg2[%c222] : memref<326xf32, #tpu.memory_space<smem>>
    %895 = vector.broadcast %894 : f32 to vector<8x128xf32>
    %896 = arith.mulf %895, %183 : vector<8x128xf32>
    %897 = arith.addf %893, %896 : vector<8x128xf32>
    %c223 = arith.constant 223 : index
    %898 = memref.load %arg2[%c223] : memref<326xf32, #tpu.memory_space<smem>>
    %899 = vector.broadcast %898 : f32 to vector<8x128xf32>
    %900 = arith.mulf %899, %207 : vector<8x128xf32>
    %901 = arith.addf %897, %900 : vector<8x128xf32>
    %c224 = arith.constant 224 : index
    %902 = memref.load %arg2[%c224] : memref<326xf32, #tpu.memory_space<smem>>
    %903 = vector.broadcast %902 : f32 to vector<8x128xf32>
    %904 = arith.mulf %903, %231 : vector<8x128xf32>
    %905 = arith.addf %901, %904 : vector<8x128xf32>
    %c225 = arith.constant 225 : index
    %906 = memref.load %arg2[%c225] : memref<326xf32, #tpu.memory_space<smem>>
    %907 = vector.broadcast %906 : f32 to vector<8x128xf32>
    %908 = arith.mulf %907, %255 : vector<8x128xf32>
    %909 = arith.addf %905, %908 : vector<8x128xf32>
    %c226 = arith.constant 226 : index
    %910 = memref.load %arg2[%c226] : memref<326xf32, #tpu.memory_space<smem>>
    %911 = vector.broadcast %910 : f32 to vector<8x128xf32>
    %912 = arith.mulf %911, %279 : vector<8x128xf32>
    %913 = arith.addf %909, %912 : vector<8x128xf32>
    %c227 = arith.constant 227 : index
    %914 = memref.load %arg2[%c227] : memref<326xf32, #tpu.memory_space<smem>>
    %915 = vector.broadcast %914 : f32 to vector<8x128xf32>
    %916 = arith.mulf %915, %303 : vector<8x128xf32>
    %917 = arith.addf %913, %916 : vector<8x128xf32>
    %cst_33 = arith.constant 0.000000e+00 : f32
    %918 = vector.broadcast %cst_33 : f32 to vector<8x128xf32>
    %919 = arith.maximumf %917, %918 : vector<8x128xf32>
    %c239 = arith.constant 239 : index
    %920 = memref.load %arg2[%c239] : memref<326xf32, #tpu.memory_space<smem>>
    %921 = vector.broadcast %920 : f32 to vector<8x128xf32>
    %c229 = arith.constant 229 : index
    %922 = memref.load %arg2[%c229] : memref<326xf32, #tpu.memory_space<smem>>
    %923 = vector.broadcast %922 : f32 to vector<8x128xf32>
    %924 = arith.mulf %923, %87 : vector<8x128xf32>
    %925 = arith.addf %921, %924 : vector<8x128xf32>
    %c230 = arith.constant 230 : index
    %926 = memref.load %arg2[%c230] : memref<326xf32, #tpu.memory_space<smem>>
    %927 = vector.broadcast %926 : f32 to vector<8x128xf32>
    %928 = arith.mulf %927, %111 : vector<8x128xf32>
    %929 = arith.addf %925, %928 : vector<8x128xf32>
    %c231 = arith.constant 231 : index
    %930 = memref.load %arg2[%c231] : memref<326xf32, #tpu.memory_space<smem>>
    %931 = vector.broadcast %930 : f32 to vector<8x128xf32>
    %932 = arith.mulf %931, %135 : vector<8x128xf32>
    %933 = arith.addf %929, %932 : vector<8x128xf32>
    %c232 = arith.constant 232 : index
    %934 = memref.load %arg2[%c232] : memref<326xf32, #tpu.memory_space<smem>>
    %935 = vector.broadcast %934 : f32 to vector<8x128xf32>
    %936 = arith.mulf %935, %159 : vector<8x128xf32>
    %937 = arith.addf %933, %936 : vector<8x128xf32>
    %c233 = arith.constant 233 : index
    %938 = memref.load %arg2[%c233] : memref<326xf32, #tpu.memory_space<smem>>
    %939 = vector.broadcast %938 : f32 to vector<8x128xf32>
    %940 = arith.mulf %939, %183 : vector<8x128xf32>
    %941 = arith.addf %937, %940 : vector<8x128xf32>
    %c234 = arith.constant 234 : index
    %942 = memref.load %arg2[%c234] : memref<326xf32, #tpu.memory_space<smem>>
    %943 = vector.broadcast %942 : f32 to vector<8x128xf32>
    %944 = arith.mulf %943, %207 : vector<8x128xf32>
    %945 = arith.addf %941, %944 : vector<8x128xf32>
    %c235 = arith.constant 235 : index
    %946 = memref.load %arg2[%c235] : memref<326xf32, #tpu.memory_space<smem>>
    %947 = vector.broadcast %946 : f32 to vector<8x128xf32>
    %948 = arith.mulf %947, %231 : vector<8x128xf32>
    %949 = arith.addf %945, %948 : vector<8x128xf32>
    %c236 = arith.constant 236 : index
    %950 = memref.load %arg2[%c236] : memref<326xf32, #tpu.memory_space<smem>>
    %951 = vector.broadcast %950 : f32 to vector<8x128xf32>
    %952 = arith.mulf %951, %255 : vector<8x128xf32>
    %953 = arith.addf %949, %952 : vector<8x128xf32>
    %c237 = arith.constant 237 : index
    %954 = memref.load %arg2[%c237] : memref<326xf32, #tpu.memory_space<smem>>
    %955 = vector.broadcast %954 : f32 to vector<8x128xf32>
    %956 = arith.mulf %955, %279 : vector<8x128xf32>
    %957 = arith.addf %953, %956 : vector<8x128xf32>
    %c238 = arith.constant 238 : index
    %958 = memref.load %arg2[%c238] : memref<326xf32, #tpu.memory_space<smem>>
    %959 = vector.broadcast %958 : f32 to vector<8x128xf32>
    %960 = arith.mulf %959, %303 : vector<8x128xf32>
    %961 = arith.addf %957, %960 : vector<8x128xf32>
    %cst_34 = arith.constant 0.000000e+00 : f32
    %962 = vector.broadcast %cst_34 : f32 to vector<8x128xf32>
    %963 = arith.maximumf %961, %962 : vector<8x128xf32>
    %c255 = arith.constant 255 : index
    %964 = memref.load %arg2[%c255] : memref<326xf32, #tpu.memory_space<smem>>
    %965 = vector.broadcast %964 : f32 to vector<8x128xf32>
    %c240 = arith.constant 240 : index
    %966 = memref.load %arg2[%c240] : memref<326xf32, #tpu.memory_space<smem>>
    %967 = vector.broadcast %966 : f32 to vector<8x128xf32>
    %968 = arith.mulf %967, %347 : vector<8x128xf32>
    %969 = arith.addf %965, %968 : vector<8x128xf32>
    %c241 = arith.constant 241 : index
    %970 = memref.load %arg2[%c241] : memref<326xf32, #tpu.memory_space<smem>>
    %971 = vector.broadcast %970 : f32 to vector<8x128xf32>
    %972 = arith.mulf %971, %391 : vector<8x128xf32>
    %973 = arith.addf %969, %972 : vector<8x128xf32>
    %c242 = arith.constant 242 : index
    %974 = memref.load %arg2[%c242] : memref<326xf32, #tpu.memory_space<smem>>
    %975 = vector.broadcast %974 : f32 to vector<8x128xf32>
    %976 = arith.mulf %975, %435 : vector<8x128xf32>
    %977 = arith.addf %973, %976 : vector<8x128xf32>
    %c243 = arith.constant 243 : index
    %978 = memref.load %arg2[%c243] : memref<326xf32, #tpu.memory_space<smem>>
    %979 = vector.broadcast %978 : f32 to vector<8x128xf32>
    %980 = arith.mulf %979, %479 : vector<8x128xf32>
    %981 = arith.addf %977, %980 : vector<8x128xf32>
    %c244 = arith.constant 244 : index
    %982 = memref.load %arg2[%c244] : memref<326xf32, #tpu.memory_space<smem>>
    %983 = vector.broadcast %982 : f32 to vector<8x128xf32>
    %984 = arith.mulf %983, %523 : vector<8x128xf32>
    %985 = arith.addf %981, %984 : vector<8x128xf32>
    %c245 = arith.constant 245 : index
    %986 = memref.load %arg2[%c245] : memref<326xf32, #tpu.memory_space<smem>>
    %987 = vector.broadcast %986 : f32 to vector<8x128xf32>
    %988 = arith.mulf %987, %567 : vector<8x128xf32>
    %989 = arith.addf %985, %988 : vector<8x128xf32>
    %c246 = arith.constant 246 : index
    %990 = memref.load %arg2[%c246] : memref<326xf32, #tpu.memory_space<smem>>
    %991 = vector.broadcast %990 : f32 to vector<8x128xf32>
    %992 = arith.mulf %991, %611 : vector<8x128xf32>
    %993 = arith.addf %989, %992 : vector<8x128xf32>
    %c247 = arith.constant 247 : index
    %994 = memref.load %arg2[%c247] : memref<326xf32, #tpu.memory_space<smem>>
    %995 = vector.broadcast %994 : f32 to vector<8x128xf32>
    %996 = arith.mulf %995, %655 : vector<8x128xf32>
    %997 = arith.addf %993, %996 : vector<8x128xf32>
    %c248 = arith.constant 248 : index
    %998 = memref.load %arg2[%c248] : memref<326xf32, #tpu.memory_space<smem>>
    %999 = vector.broadcast %998 : f32 to vector<8x128xf32>
    %1000 = arith.mulf %999, %699 : vector<8x128xf32>
    %1001 = arith.addf %997, %1000 : vector<8x128xf32>
    %c249 = arith.constant 249 : index
    %1002 = memref.load %arg2[%c249] : memref<326xf32, #tpu.memory_space<smem>>
    %1003 = vector.broadcast %1002 : f32 to vector<8x128xf32>
    %1004 = arith.mulf %1003, %743 : vector<8x128xf32>
    %1005 = arith.addf %1001, %1004 : vector<8x128xf32>
    %c250 = arith.constant 250 : index
    %1006 = memref.load %arg2[%c250] : memref<326xf32, #tpu.memory_space<smem>>
    %1007 = vector.broadcast %1006 : f32 to vector<8x128xf32>
    %1008 = arith.mulf %1007, %787 : vector<8x128xf32>
    %1009 = arith.addf %1005, %1008 : vector<8x128xf32>
    %c251 = arith.constant 251 : index
    %1010 = memref.load %arg2[%c251] : memref<326xf32, #tpu.memory_space<smem>>
    %1011 = vector.broadcast %1010 : f32 to vector<8x128xf32>
    %1012 = arith.mulf %1011, %831 : vector<8x128xf32>
    %1013 = arith.addf %1009, %1012 : vector<8x128xf32>
    %c252 = arith.constant 252 : index
    %1014 = memref.load %arg2[%c252] : memref<326xf32, #tpu.memory_space<smem>>
    %1015 = vector.broadcast %1014 : f32 to vector<8x128xf32>
    %1016 = arith.mulf %1015, %875 : vector<8x128xf32>
    %1017 = arith.addf %1013, %1016 : vector<8x128xf32>
    %c253 = arith.constant 253 : index
    %1018 = memref.load %arg2[%c253] : memref<326xf32, #tpu.memory_space<smem>>
    %1019 = vector.broadcast %1018 : f32 to vector<8x128xf32>
    %1020 = arith.mulf %1019, %919 : vector<8x128xf32>
    %1021 = arith.addf %1017, %1020 : vector<8x128xf32>
    %c254 = arith.constant 254 : index
    %1022 = memref.load %arg2[%c254] : memref<326xf32, #tpu.memory_space<smem>>
    %1023 = vector.broadcast %1022 : f32 to vector<8x128xf32>
    %1024 = arith.mulf %1023, %963 : vector<8x128xf32>
    %1025 = arith.addf %1021, %1024 : vector<8x128xf32>
    %cst_35 = arith.constant 0.000000e+00 : f32
    %1026 = vector.broadcast %cst_35 : f32 to vector<8x128xf32>
    %1027 = arith.maximumf %1025, %1026 : vector<8x128xf32>
    %c271 = arith.constant 271 : index
    %1028 = memref.load %arg2[%c271] : memref<326xf32, #tpu.memory_space<smem>>
    %1029 = vector.broadcast %1028 : f32 to vector<8x128xf32>
    %c256 = arith.constant 256 : index
    %1030 = memref.load %arg2[%c256] : memref<326xf32, #tpu.memory_space<smem>>
    %1031 = vector.broadcast %1030 : f32 to vector<8x128xf32>
    %1032 = arith.mulf %1031, %347 : vector<8x128xf32>
    %1033 = arith.addf %1029, %1032 : vector<8x128xf32>
    %c257 = arith.constant 257 : index
    %1034 = memref.load %arg2[%c257] : memref<326xf32, #tpu.memory_space<smem>>
    %1035 = vector.broadcast %1034 : f32 to vector<8x128xf32>
    %1036 = arith.mulf %1035, %391 : vector<8x128xf32>
    %1037 = arith.addf %1033, %1036 : vector<8x128xf32>
    %c258 = arith.constant 258 : index
    %1038 = memref.load %arg2[%c258] : memref<326xf32, #tpu.memory_space<smem>>
    %1039 = vector.broadcast %1038 : f32 to vector<8x128xf32>
    %1040 = arith.mulf %1039, %435 : vector<8x128xf32>
    %1041 = arith.addf %1037, %1040 : vector<8x128xf32>
    %c259 = arith.constant 259 : index
    %1042 = memref.load %arg2[%c259] : memref<326xf32, #tpu.memory_space<smem>>
    %1043 = vector.broadcast %1042 : f32 to vector<8x128xf32>
    %1044 = arith.mulf %1043, %479 : vector<8x128xf32>
    %1045 = arith.addf %1041, %1044 : vector<8x128xf32>
    %c260 = arith.constant 260 : index
    %1046 = memref.load %arg2[%c260] : memref<326xf32, #tpu.memory_space<smem>>
    %1047 = vector.broadcast %1046 : f32 to vector<8x128xf32>
    %1048 = arith.mulf %1047, %523 : vector<8x128xf32>
    %1049 = arith.addf %1045, %1048 : vector<8x128xf32>
    %c261 = arith.constant 261 : index
    %1050 = memref.load %arg2[%c261] : memref<326xf32, #tpu.memory_space<smem>>
    %1051 = vector.broadcast %1050 : f32 to vector<8x128xf32>
    %1052 = arith.mulf %1051, %567 : vector<8x128xf32>
    %1053 = arith.addf %1049, %1052 : vector<8x128xf32>
    %c262 = arith.constant 262 : index
    %1054 = memref.load %arg2[%c262] : memref<326xf32, #tpu.memory_space<smem>>
    %1055 = vector.broadcast %1054 : f32 to vector<8x128xf32>
    %1056 = arith.mulf %1055, %611 : vector<8x128xf32>
    %1057 = arith.addf %1053, %1056 : vector<8x128xf32>
    %c263 = arith.constant 263 : index
    %1058 = memref.load %arg2[%c263] : memref<326xf32, #tpu.memory_space<smem>>
    %1059 = vector.broadcast %1058 : f32 to vector<8x128xf32>
    %1060 = arith.mulf %1059, %655 : vector<8x128xf32>
    %1061 = arith.addf %1057, %1060 : vector<8x128xf32>
    %c264 = arith.constant 264 : index
    %1062 = memref.load %arg2[%c264] : memref<326xf32, #tpu.memory_space<smem>>
    %1063 = vector.broadcast %1062 : f32 to vector<8x128xf32>
    %1064 = arith.mulf %1063, %699 : vector<8x128xf32>
    %1065 = arith.addf %1061, %1064 : vector<8x128xf32>
    %c265 = arith.constant 265 : index
    %1066 = memref.load %arg2[%c265] : memref<326xf32, #tpu.memory_space<smem>>
    %1067 = vector.broadcast %1066 : f32 to vector<8x128xf32>
    %1068 = arith.mulf %1067, %743 : vector<8x128xf32>
    %1069 = arith.addf %1065, %1068 : vector<8x128xf32>
    %c266 = arith.constant 266 : index
    %1070 = memref.load %arg2[%c266] : memref<326xf32, #tpu.memory_space<smem>>
    %1071 = vector.broadcast %1070 : f32 to vector<8x128xf32>
    %1072 = arith.mulf %1071, %787 : vector<8x128xf32>
    %1073 = arith.addf %1069, %1072 : vector<8x128xf32>
    %c267 = arith.constant 267 : index
    %1074 = memref.load %arg2[%c267] : memref<326xf32, #tpu.memory_space<smem>>
    %1075 = vector.broadcast %1074 : f32 to vector<8x128xf32>
    %1076 = arith.mulf %1075, %831 : vector<8x128xf32>
    %1077 = arith.addf %1073, %1076 : vector<8x128xf32>
    %c268 = arith.constant 268 : index
    %1078 = memref.load %arg2[%c268] : memref<326xf32, #tpu.memory_space<smem>>
    %1079 = vector.broadcast %1078 : f32 to vector<8x128xf32>
    %1080 = arith.mulf %1079, %875 : vector<8x128xf32>
    %1081 = arith.addf %1077, %1080 : vector<8x128xf32>
    %c269 = arith.constant 269 : index
    %1082 = memref.load %arg2[%c269] : memref<326xf32, #tpu.memory_space<smem>>
    %1083 = vector.broadcast %1082 : f32 to vector<8x128xf32>
    %1084 = arith.mulf %1083, %919 : vector<8x128xf32>
    %1085 = arith.addf %1081, %1084 : vector<8x128xf32>
    %c270 = arith.constant 270 : index
    %1086 = memref.load %arg2[%c270] : memref<326xf32, #tpu.memory_space<smem>>
    %1087 = vector.broadcast %1086 : f32 to vector<8x128xf32>
    %1088 = arith.mulf %1087, %963 : vector<8x128xf32>
    %1089 = arith.addf %1085, %1088 : vector<8x128xf32>
    %cst_36 = arith.constant 0.000000e+00 : f32
    %1090 = vector.broadcast %cst_36 : f32 to vector<8x128xf32>
    %1091 = arith.maximumf %1089, %1090 : vector<8x128xf32>
    %c287 = arith.constant 287 : index
    %1092 = memref.load %arg2[%c287] : memref<326xf32, #tpu.memory_space<smem>>
    %1093 = vector.broadcast %1092 : f32 to vector<8x128xf32>
    %c272 = arith.constant 272 : index
    %1094 = memref.load %arg2[%c272] : memref<326xf32, #tpu.memory_space<smem>>
    %1095 = vector.broadcast %1094 : f32 to vector<8x128xf32>
    %1096 = arith.mulf %1095, %347 : vector<8x128xf32>
    %1097 = arith.addf %1093, %1096 : vector<8x128xf32>
    %c273 = arith.constant 273 : index
    %1098 = memref.load %arg2[%c273] : memref<326xf32, #tpu.memory_space<smem>>
    %1099 = vector.broadcast %1098 : f32 to vector<8x128xf32>
    %1100 = arith.mulf %1099, %391 : vector<8x128xf32>
    %1101 = arith.addf %1097, %1100 : vector<8x128xf32>
    %c274 = arith.constant 274 : index
    %1102 = memref.load %arg2[%c274] : memref<326xf32, #tpu.memory_space<smem>>
    %1103 = vector.broadcast %1102 : f32 to vector<8x128xf32>
    %1104 = arith.mulf %1103, %435 : vector<8x128xf32>
    %1105 = arith.addf %1101, %1104 : vector<8x128xf32>
    %c275 = arith.constant 275 : index
    %1106 = memref.load %arg2[%c275] : memref<326xf32, #tpu.memory_space<smem>>
    %1107 = vector.broadcast %1106 : f32 to vector<8x128xf32>
    %1108 = arith.mulf %1107, %479 : vector<8x128xf32>
    %1109 = arith.addf %1105, %1108 : vector<8x128xf32>
    %c276 = arith.constant 276 : index
    %1110 = memref.load %arg2[%c276] : memref<326xf32, #tpu.memory_space<smem>>
    %1111 = vector.broadcast %1110 : f32 to vector<8x128xf32>
    %1112 = arith.mulf %1111, %523 : vector<8x128xf32>
    %1113 = arith.addf %1109, %1112 : vector<8x128xf32>
    %c277 = arith.constant 277 : index
    %1114 = memref.load %arg2[%c277] : memref<326xf32, #tpu.memory_space<smem>>
    %1115 = vector.broadcast %1114 : f32 to vector<8x128xf32>
    %1116 = arith.mulf %1115, %567 : vector<8x128xf32>
    %1117 = arith.addf %1113, %1116 : vector<8x128xf32>
    %c278 = arith.constant 278 : index
    %1118 = memref.load %arg2[%c278] : memref<326xf32, #tpu.memory_space<smem>>
    %1119 = vector.broadcast %1118 : f32 to vector<8x128xf32>
    %1120 = arith.mulf %1119, %611 : vector<8x128xf32>
    %1121 = arith.addf %1117, %1120 : vector<8x128xf32>
    %c279 = arith.constant 279 : index
    %1122 = memref.load %arg2[%c279] : memref<326xf32, #tpu.memory_space<smem>>
    %1123 = vector.broadcast %1122 : f32 to vector<8x128xf32>
    %1124 = arith.mulf %1123, %655 : vector<8x128xf32>
    %1125 = arith.addf %1121, %1124 : vector<8x128xf32>
    %c280 = arith.constant 280 : index
    %1126 = memref.load %arg2[%c280] : memref<326xf32, #tpu.memory_space<smem>>
    %1127 = vector.broadcast %1126 : f32 to vector<8x128xf32>
    %1128 = arith.mulf %1127, %699 : vector<8x128xf32>
    %1129 = arith.addf %1125, %1128 : vector<8x128xf32>
    %c281 = arith.constant 281 : index
    %1130 = memref.load %arg2[%c281] : memref<326xf32, #tpu.memory_space<smem>>
    %1131 = vector.broadcast %1130 : f32 to vector<8x128xf32>
    %1132 = arith.mulf %1131, %743 : vector<8x128xf32>
    %1133 = arith.addf %1129, %1132 : vector<8x128xf32>
    %c282 = arith.constant 282 : index
    %1134 = memref.load %arg2[%c282] : memref<326xf32, #tpu.memory_space<smem>>
    %1135 = vector.broadcast %1134 : f32 to vector<8x128xf32>
    %1136 = arith.mulf %1135, %787 : vector<8x128xf32>
    %1137 = arith.addf %1133, %1136 : vector<8x128xf32>
    %c283 = arith.constant 283 : index
    %1138 = memref.load %arg2[%c283] : memref<326xf32, #tpu.memory_space<smem>>
    %1139 = vector.broadcast %1138 : f32 to vector<8x128xf32>
    %1140 = arith.mulf %1139, %831 : vector<8x128xf32>
    %1141 = arith.addf %1137, %1140 : vector<8x128xf32>
    %c284 = arith.constant 284 : index
    %1142 = memref.load %arg2[%c284] : memref<326xf32, #tpu.memory_space<smem>>
    %1143 = vector.broadcast %1142 : f32 to vector<8x128xf32>
    %1144 = arith.mulf %1143, %875 : vector<8x128xf32>
    %1145 = arith.addf %1141, %1144 : vector<8x128xf32>
    %c285 = arith.constant 285 : index
    %1146 = memref.load %arg2[%c285] : memref<326xf32, #tpu.memory_space<smem>>
    %1147 = vector.broadcast %1146 : f32 to vector<8x128xf32>
    %1148 = arith.mulf %1147, %919 : vector<8x128xf32>
    %1149 = arith.addf %1145, %1148 : vector<8x128xf32>
    %c286 = arith.constant 286 : index
    %1150 = memref.load %arg2[%c286] : memref<326xf32, #tpu.memory_space<smem>>
    %1151 = vector.broadcast %1150 : f32 to vector<8x128xf32>
    %1152 = arith.mulf %1151, %963 : vector<8x128xf32>
    %1153 = arith.addf %1149, %1152 : vector<8x128xf32>
    %cst_37 = arith.constant 0.000000e+00 : f32
    %1154 = vector.broadcast %cst_37 : f32 to vector<8x128xf32>
    %1155 = arith.maximumf %1153, %1154 : vector<8x128xf32>
    %c303 = arith.constant 303 : index
    %1156 = memref.load %arg2[%c303] : memref<326xf32, #tpu.memory_space<smem>>
    %1157 = vector.broadcast %1156 : f32 to vector<8x128xf32>
    %c288 = arith.constant 288 : index
    %1158 = memref.load %arg2[%c288] : memref<326xf32, #tpu.memory_space<smem>>
    %1159 = vector.broadcast %1158 : f32 to vector<8x128xf32>
    %1160 = arith.mulf %1159, %347 : vector<8x128xf32>
    %1161 = arith.addf %1157, %1160 : vector<8x128xf32>
    %c289 = arith.constant 289 : index
    %1162 = memref.load %arg2[%c289] : memref<326xf32, #tpu.memory_space<smem>>
    %1163 = vector.broadcast %1162 : f32 to vector<8x128xf32>
    %1164 = arith.mulf %1163, %391 : vector<8x128xf32>
    %1165 = arith.addf %1161, %1164 : vector<8x128xf32>
    %c290 = arith.constant 290 : index
    %1166 = memref.load %arg2[%c290] : memref<326xf32, #tpu.memory_space<smem>>
    %1167 = vector.broadcast %1166 : f32 to vector<8x128xf32>
    %1168 = arith.mulf %1167, %435 : vector<8x128xf32>
    %1169 = arith.addf %1165, %1168 : vector<8x128xf32>
    %c291 = arith.constant 291 : index
    %1170 = memref.load %arg2[%c291] : memref<326xf32, #tpu.memory_space<smem>>
    %1171 = vector.broadcast %1170 : f32 to vector<8x128xf32>
    %1172 = arith.mulf %1171, %479 : vector<8x128xf32>
    %1173 = arith.addf %1169, %1172 : vector<8x128xf32>
    %c292 = arith.constant 292 : index
    %1174 = memref.load %arg2[%c292] : memref<326xf32, #tpu.memory_space<smem>>
    %1175 = vector.broadcast %1174 : f32 to vector<8x128xf32>
    %1176 = arith.mulf %1175, %523 : vector<8x128xf32>
    %1177 = arith.addf %1173, %1176 : vector<8x128xf32>
    %c293 = arith.constant 293 : index
    %1178 = memref.load %arg2[%c293] : memref<326xf32, #tpu.memory_space<smem>>
    %1179 = vector.broadcast %1178 : f32 to vector<8x128xf32>
    %1180 = arith.mulf %1179, %567 : vector<8x128xf32>
    %1181 = arith.addf %1177, %1180 : vector<8x128xf32>
    %c294 = arith.constant 294 : index
    %1182 = memref.load %arg2[%c294] : memref<326xf32, #tpu.memory_space<smem>>
    %1183 = vector.broadcast %1182 : f32 to vector<8x128xf32>
    %1184 = arith.mulf %1183, %611 : vector<8x128xf32>
    %1185 = arith.addf %1181, %1184 : vector<8x128xf32>
    %c295 = arith.constant 295 : index
    %1186 = memref.load %arg2[%c295] : memref<326xf32, #tpu.memory_space<smem>>
    %1187 = vector.broadcast %1186 : f32 to vector<8x128xf32>
    %1188 = arith.mulf %1187, %655 : vector<8x128xf32>
    %1189 = arith.addf %1185, %1188 : vector<8x128xf32>
    %c296 = arith.constant 296 : index
    %1190 = memref.load %arg2[%c296] : memref<326xf32, #tpu.memory_space<smem>>
    %1191 = vector.broadcast %1190 : f32 to vector<8x128xf32>
    %1192 = arith.mulf %1191, %699 : vector<8x128xf32>
    %1193 = arith.addf %1189, %1192 : vector<8x128xf32>
    %c297 = arith.constant 297 : index
    %1194 = memref.load %arg2[%c297] : memref<326xf32, #tpu.memory_space<smem>>
    %1195 = vector.broadcast %1194 : f32 to vector<8x128xf32>
    %1196 = arith.mulf %1195, %743 : vector<8x128xf32>
    %1197 = arith.addf %1193, %1196 : vector<8x128xf32>
    %c298 = arith.constant 298 : index
    %1198 = memref.load %arg2[%c298] : memref<326xf32, #tpu.memory_space<smem>>
    %1199 = vector.broadcast %1198 : f32 to vector<8x128xf32>
    %1200 = arith.mulf %1199, %787 : vector<8x128xf32>
    %1201 = arith.addf %1197, %1200 : vector<8x128xf32>
    %c299 = arith.constant 299 : index
    %1202 = memref.load %arg2[%c299] : memref<326xf32, #tpu.memory_space<smem>>
    %1203 = vector.broadcast %1202 : f32 to vector<8x128xf32>
    %1204 = arith.mulf %1203, %831 : vector<8x128xf32>
    %1205 = arith.addf %1201, %1204 : vector<8x128xf32>
    %c300 = arith.constant 300 : index
    %1206 = memref.load %arg2[%c300] : memref<326xf32, #tpu.memory_space<smem>>
    %1207 = vector.broadcast %1206 : f32 to vector<8x128xf32>
    %1208 = arith.mulf %1207, %875 : vector<8x128xf32>
    %1209 = arith.addf %1205, %1208 : vector<8x128xf32>
    %c301 = arith.constant 301 : index
    %1210 = memref.load %arg2[%c301] : memref<326xf32, #tpu.memory_space<smem>>
    %1211 = vector.broadcast %1210 : f32 to vector<8x128xf32>
    %1212 = arith.mulf %1211, %919 : vector<8x128xf32>
    %1213 = arith.addf %1209, %1212 : vector<8x128xf32>
    %c302 = arith.constant 302 : index
    %1214 = memref.load %arg2[%c302] : memref<326xf32, #tpu.memory_space<smem>>
    %1215 = vector.broadcast %1214 : f32 to vector<8x128xf32>
    %1216 = arith.mulf %1215, %963 : vector<8x128xf32>
    %1217 = arith.addf %1213, %1216 : vector<8x128xf32>
    %cst_38 = arith.constant 0.000000e+00 : f32
    %1218 = vector.broadcast %cst_38 : f32 to vector<8x128xf32>
    %1219 = arith.maximumf %1217, %1218 : vector<8x128xf32>
    %c319 = arith.constant 319 : index
    %1220 = memref.load %arg2[%c319] : memref<326xf32, #tpu.memory_space<smem>>
    %1221 = vector.broadcast %1220 : f32 to vector<8x128xf32>
    %c304 = arith.constant 304 : index
    %1222 = memref.load %arg2[%c304] : memref<326xf32, #tpu.memory_space<smem>>
    %1223 = vector.broadcast %1222 : f32 to vector<8x128xf32>
    %1224 = arith.mulf %1223, %347 : vector<8x128xf32>
    %1225 = arith.addf %1221, %1224 : vector<8x128xf32>
    %c305 = arith.constant 305 : index
    %1226 = memref.load %arg2[%c305] : memref<326xf32, #tpu.memory_space<smem>>
    %1227 = vector.broadcast %1226 : f32 to vector<8x128xf32>
    %1228 = arith.mulf %1227, %391 : vector<8x128xf32>
    %1229 = arith.addf %1225, %1228 : vector<8x128xf32>
    %c306 = arith.constant 306 : index
    %1230 = memref.load %arg2[%c306] : memref<326xf32, #tpu.memory_space<smem>>
    %1231 = vector.broadcast %1230 : f32 to vector<8x128xf32>
    %1232 = arith.mulf %1231, %435 : vector<8x128xf32>
    %1233 = arith.addf %1229, %1232 : vector<8x128xf32>
    %c307 = arith.constant 307 : index
    %1234 = memref.load %arg2[%c307] : memref<326xf32, #tpu.memory_space<smem>>
    %1235 = vector.broadcast %1234 : f32 to vector<8x128xf32>
    %1236 = arith.mulf %1235, %479 : vector<8x128xf32>
    %1237 = arith.addf %1233, %1236 : vector<8x128xf32>
    %c308 = arith.constant 308 : index
    %1238 = memref.load %arg2[%c308] : memref<326xf32, #tpu.memory_space<smem>>
    %1239 = vector.broadcast %1238 : f32 to vector<8x128xf32>
    %1240 = arith.mulf %1239, %523 : vector<8x128xf32>
    %1241 = arith.addf %1237, %1240 : vector<8x128xf32>
    %c309 = arith.constant 309 : index
    %1242 = memref.load %arg2[%c309] : memref<326xf32, #tpu.memory_space<smem>>
    %1243 = vector.broadcast %1242 : f32 to vector<8x128xf32>
    %1244 = arith.mulf %1243, %567 : vector<8x128xf32>
    %1245 = arith.addf %1241, %1244 : vector<8x128xf32>
    %c310 = arith.constant 310 : index
    %1246 = memref.load %arg2[%c310] : memref<326xf32, #tpu.memory_space<smem>>
    %1247 = vector.broadcast %1246 : f32 to vector<8x128xf32>
    %1248 = arith.mulf %1247, %611 : vector<8x128xf32>
    %1249 = arith.addf %1245, %1248 : vector<8x128xf32>
    %c311 = arith.constant 311 : index
    %1250 = memref.load %arg2[%c311] : memref<326xf32, #tpu.memory_space<smem>>
    %1251 = vector.broadcast %1250 : f32 to vector<8x128xf32>
    %1252 = arith.mulf %1251, %655 : vector<8x128xf32>
    %1253 = arith.addf %1249, %1252 : vector<8x128xf32>
    %c312 = arith.constant 312 : index
    %1254 = memref.load %arg2[%c312] : memref<326xf32, #tpu.memory_space<smem>>
    %1255 = vector.broadcast %1254 : f32 to vector<8x128xf32>
    %1256 = arith.mulf %1255, %699 : vector<8x128xf32>
    %1257 = arith.addf %1253, %1256 : vector<8x128xf32>
    %c313 = arith.constant 313 : index
    %1258 = memref.load %arg2[%c313] : memref<326xf32, #tpu.memory_space<smem>>
    %1259 = vector.broadcast %1258 : f32 to vector<8x128xf32>
    %1260 = arith.mulf %1259, %743 : vector<8x128xf32>
    %1261 = arith.addf %1257, %1260 : vector<8x128xf32>
    %c314 = arith.constant 314 : index
    %1262 = memref.load %arg2[%c314] : memref<326xf32, #tpu.memory_space<smem>>
    %1263 = vector.broadcast %1262 : f32 to vector<8x128xf32>
    %1264 = arith.mulf %1263, %787 : vector<8x128xf32>
    %1265 = arith.addf %1261, %1264 : vector<8x128xf32>
    %c315 = arith.constant 315 : index
    %1266 = memref.load %arg2[%c315] : memref<326xf32, #tpu.memory_space<smem>>
    %1267 = vector.broadcast %1266 : f32 to vector<8x128xf32>
    %1268 = arith.mulf %1267, %831 : vector<8x128xf32>
    %1269 = arith.addf %1265, %1268 : vector<8x128xf32>
    %c316 = arith.constant 316 : index
    %1270 = memref.load %arg2[%c316] : memref<326xf32, #tpu.memory_space<smem>>
    %1271 = vector.broadcast %1270 : f32 to vector<8x128xf32>
    %1272 = arith.mulf %1271, %875 : vector<8x128xf32>
    %1273 = arith.addf %1269, %1272 : vector<8x128xf32>
    %c317 = arith.constant 317 : index
    %1274 = memref.load %arg2[%c317] : memref<326xf32, #tpu.memory_space<smem>>
    %1275 = vector.broadcast %1274 : f32 to vector<8x128xf32>
    %1276 = arith.mulf %1275, %919 : vector<8x128xf32>
    %1277 = arith.addf %1273, %1276 : vector<8x128xf32>
    %c318 = arith.constant 318 : index
    %1278 = memref.load %arg2[%c318] : memref<326xf32, #tpu.memory_space<smem>>
    %1279 = vector.broadcast %1278 : f32 to vector<8x128xf32>
    %1280 = arith.mulf %1279, %963 : vector<8x128xf32>
    %1281 = arith.addf %1277, %1280 : vector<8x128xf32>
    %cst_39 = arith.constant 0.000000e+00 : f32
    %1282 = vector.broadcast %cst_39 : f32 to vector<8x128xf32>
    %1283 = arith.maximumf %1281, %1282 : vector<8x128xf32>
    %c325 = arith.constant 325 : index
    %1284 = memref.load %arg2[%c325] : memref<326xf32, #tpu.memory_space<smem>>
    %1285 = vector.broadcast %1284 : f32 to vector<8x128xf32>
    %c320 = arith.constant 320 : index
    %1286 = memref.load %arg2[%c320] : memref<326xf32, #tpu.memory_space<smem>>
    %1287 = vector.broadcast %1286 : f32 to vector<8x128xf32>
    %1288 = arith.mulf %1287, %1027 : vector<8x128xf32>
    %1289 = arith.addf %1285, %1288 : vector<8x128xf32>
    %c321 = arith.constant 321 : index
    %1290 = memref.load %arg2[%c321] : memref<326xf32, #tpu.memory_space<smem>>
    %1291 = vector.broadcast %1290 : f32 to vector<8x128xf32>
    %1292 = arith.mulf %1291, %1091 : vector<8x128xf32>
    %1293 = arith.addf %1289, %1292 : vector<8x128xf32>
    %c322 = arith.constant 322 : index
    %1294 = memref.load %arg2[%c322] : memref<326xf32, #tpu.memory_space<smem>>
    %1295 = vector.broadcast %1294 : f32 to vector<8x128xf32>
    %1296 = arith.mulf %1295, %1155 : vector<8x128xf32>
    %1297 = arith.addf %1293, %1296 : vector<8x128xf32>
    %c323 = arith.constant 323 : index
    %1298 = memref.load %arg2[%c323] : memref<326xf32, #tpu.memory_space<smem>>
    %1299 = vector.broadcast %1298 : f32 to vector<8x128xf32>
    %1300 = arith.mulf %1299, %1219 : vector<8x128xf32>
    %1301 = arith.addf %1297, %1300 : vector<8x128xf32>
    %c324 = arith.constant 324 : index
    %1302 = memref.load %arg2[%c324] : memref<326xf32, #tpu.memory_space<smem>>
    %1303 = vector.broadcast %1302 : f32 to vector<8x128xf32>
    %1304 = arith.mulf %1303, %1283 : vector<8x128xf32>
    %1305 = arith.addf %1301, %1304 : vector<8x128xf32>
    %c0_40 = arith.constant 0 : index
    %c0_41 = arith.constant 0 : index
    %1306 = vector.load %arg3[%c0_40, %c0_41] : memref<8x128xf32, #tpu.memory_space<vmem>>, vector<8x128xf32>
    tpu.vector_store %arg3[%c0_40, %c0_41], %1305 {strides = array<i32>} : memref<8x128xf32, #tpu.memory_space<vmem>>, vector<8x128xf32>,
    return
  }
  func.func @transform_0(%arg0: i32) -> (i32, i32, i32) {
    %c0_i32 = arith.constant 0 : i32
    %c0_i32_0 = arith.constant 0 : i32
    %c0_i32_1 = arith.constant 0 : i32
    return %c0_i32, %arg0, %c0_i32_0 : i32, i32, i32
  }
  func.func @transform_1(%arg0: i32) -> i32 {
    %c0_i32 = arith.constant 0 : i32
    %c0_i32_0 = arith.constant 0 : i32
    return %c0_i32 : i32
  }
  func.func @transform_2(%arg0: i32) -> (i32, i32) {
    %c0_i32 = arith.constant 0 : i32
    %c0_i32_0 = arith.constant 0 : i32
    return %arg0, %c0_i32 : i32, i32
  }
}

</mosaic_0001>

<bundles_post_ra>
// kernel: mlp_forward.1
= control target key start
LH: loop header
LB: loop body
LE: loop exit
PB: predicated region body
PF: predicated region fallthrough
CT: control target
= control target key end

     0   :  { %s3016_s0 = inlined_call_operand.vmem [shape: f32[2,8,128], index: 0, kind: input, shape index: {}]   ;;  %s3017_s1 = inlined_call_operand.vmem [shape: f32[326], index: 1, kind: input, shape index: {}]   ;;  %s3018_s2 = inlined_call_operand.vmem [shape: f32[8,128], index: 2, kind: output, shape index: {}]  }
   0x1   :  { %3019 = sst [smem:[#allocation70_spill]] %s3018_s2 }
   0x2   :  { %7 = vsyncpa [#allocation3], 0  ;;  %s15_s11 = sshll.u32 %s3017_s1, 4  ;;  %s1641_s12 = smov [#allocation2]   ;;  %s16_s11 = int_to_ptr.vmem [resolvable:$true] %s15_s11 }
   0x3   :  { %18 = dma.vmem_to_smem %s16_s11, 48, %s1641_s12, [#allocation3]  }
   0x4   :  { %1639 = dma.done.wait [#allocation3], 48  }
   0x5   :  { %1640 = vsyncadd [#allocation3], 4294967248 }
   0x6   :  { %23 = sfence }
   0x7   :  { %s1660_s13 = sld [smem:[#allocation2 + $0x2]]  ;;  %v24_v0 = vld [vmem:[%s3016_s0] sm:$0xff]  ;;  %v1829_v3 = vld [vmem:[%s3016_s0 + $0x8] sm:$0xff] }
   0x8   :  { %s1662_s14 = sld [smem:[#allocation2]] }
   0x9   :  { %s1664_s15 = sld [smem:[#allocation2 + $0x1]] }
   0xa   :  { %s1666_s16 = sld [smem:[#allocation2 + $0x5]] }
   0xb   :  { %s1668_s17 = sld [smem:[#allocation2 + $0x3]] }
   0xc   :  { %s1670_s18 = sld [smem:[#allocation2 + $0x4]] }
   0xd   :  { %s1672_s19 = sld [smem:[#allocation2 + $0x8]]  ;;  %v28_v4 = vstv %s1660_s13 }
   0xe   :  { %s1674_s1 = sld [smem:[#allocation2 + $0x6]]  ;;  %v30_v1 = vstv %s1662_s14 }
   0xf   :  { %s1676_s20 = sld [smem:[#allocation2 + $0x7]]  ;;  %v31_v2 = vmul.f32 %v30_v1, %v24_v0  ;;  %v34_v5 = vstv %s1664_s15 }
  0x10   :  { %s1678_s21 = sld [smem:[#allocation2 + $0xb]]  ;;  %v35_v8 = vmul.f32 %v1829_v3, %v34_v5  ;;  %v39_v12 = vstv %s1666_s16 }
  0x11   :  { %s1680_s22 = sld [smem:[#allocation2 + $0x9]]  ;;  %v41_v6 = vstv %s1668_s17  ;;  %v32_v7 = vadd.f32 %v31_v2, %v28_v4 }
  0x12   :  { %s1682_s23 = sld [smem:[#allocation2 + $0xa]]  ;;  %v42_v9 = vmul.f32 %v41_v6, %v24_v0  ;;  %v45_v10 = vstv %s1670_s18 }
  0x13   :  { %s1684_s24 = sld [smem:[#allocation2 + $0xe]]  ;;  %v36_v13 = vadd.f32 %v35_v8, %v32_v7  ;;  %v46_v14 = vmul.f32 %v1829_v3, %v45_v10  ;;  %v50_v17 = vstv %s1672_s19 }
  0x14   :  { %s1686_s25 = sld [smem:[#allocation2 + $0xc]]  ;;  %v52_v11 = vstv %s1674_s1  ;;  %v43_v16 = vadd.f32 %v42_v9, %v39_v12 }
  0x15   :  { %s1688_s26 = sld [smem:[#allocation2 + $0xd]]  ;;  %v53_v15 = vmul.f32 %v52_v11, %v24_v0  ;;  %v56_v18 = vstv %s1676_s20  ;;  %v1867_v23 = vmax.f32 %v36_v13, 0.0 }
  0x16   :  { %s1690_s27 = sld [smem:[#allocation2 + $0x14]]  ;;  %v57_v21 = vmul.f32 %v1829_v3, %v56_v18  ;;  %v47_v24 = vadd.f32 %v46_v14, %v43_v16  ;;  %v61_v25 = vstv %s1678_s21 }
  0x17   :  { %s1692_s28 = sld [smem:[#allocation2 + $0xf]]  ;;  %v63_v19 = vstv %s1680_s22  ;;  %v54_v20 = vadd.f32 %v53_v15, %v50_v17 }
  0x18   :  { %s1694_s29 = sld [smem:[#allocation2 + $0x10]]  ;;  %v64_v22 = vmul.f32 %v63_v19, %v24_v0  ;;  %v67_v26 = vstv %s1682_s23  ;;  %v1883_v33 = vmax.f32 %v47_v24, 0.0 }
  0x19   :  { %s1696_s30 = sld [smem:[#allocation2 + $0x11]]  ;;  %v58_v30 = vadd.f32 %v57_v21, %v54_v20  ;;  %v68_v32 = vmul.f32 %v1829_v3, %v67_v26  ;;  %v72_v34 = vstv %s1684_s24 }
  0x1a   :  { %s1698_s3 = sld [smem:[#allocation2 + $0x12]]  ;;  %v74_v27 = vstv %s1686_s25  ;;  %v65_v31 = vadd.f32 %v64_v22, %v61_v25 }
  0x1b   :  { %s1700_s4 = sld [smem:[#allocation2 + $0x13]]  ;;  %v75_v35 = vmul.f32 %v74_v27, %v24_v0  ;;  %v78_v37 = vstv %s1688_s26  ;;  %v1899_v43 = vmax.f32 %v58_v30, 0.0 }
  0x1c   :  { %s1702_s5 = sld [smem:[#allocation2 + $0x1a]]  ;;  %v83_v38 = vstv %s1690_s27  ;;  %v69_v44 = vadd.f32 %v68_v32, %v65_v31  ;;  %v79_v46 = vmul.f32 %v1829_v3, %v78_v37 }
  0x1d   :  { %s1704_s6 = sld [smem:[#allocation2 + $0x15]]  ;;  %v85_v28 = vstv %s1692_s28  ;;  %v76_v45 = vadd.f32 %v75_v35, %v72_v34 }
  0x1e   :  { %s1706_s7 = sld [smem:[#allocation2 + $0x16]]  ;;  %v86_v36 = vmul.f32 %v85_v28, %v1867_v23  ;;  %v89_v39 = vstv %s1694_s29  ;;  %v1917_v54 = vmax.f32 %v69_v44, 0.0 }
  0x1f   :  { %3020 = sst [smem:[#allocation5_spill]] %s1696_s30  ;;  %v90_v48 = vmul.f32 %v89_v39, %v1883_v33  ;;  %v80_v55 = vadd.f32 %v79_v46, %v76_v45 }
  0x20   :  { %3021 = sst [smem:[#allocation6_spill]] %s1698_s3  ;;  %v87_v47 = vadd.f32 %v86_v36, %v83_v38 }
  0x21   :  { %3022 = sst [smem:[#allocation7_spill]] %s1700_s4  ;;  %v1935_v2 = vmax.f32 %v80_v55, 0.0 }
  0x22   :  { %3023 = sst [smem:[#allocation8_spill]] %s1702_s5  ;;  %v91_v56 = vadd.f32 %v90_v48, %v87_v47 }
  0x23   :  { %s1708_s8 = sld [smem:[#allocation2 + $0x17]]  ;;  %v108_v29 = vstv %s1704_s6 }
  0x24   :  { %3024 = sst [smem:[#allocation9_spill]] %s1706_s7  ;;  %v109_v40 = vmul.f32 %v108_v29, %v1867_v23 }
  0x25   :  { %s1710_s9 = sld [smem:[#allocation2 + $0x18]] }
  0x26   :  { %s1712_s10 = sld [smem:[#allocation2 + $0x19]] }
  0x27   :  { %s1714_s11 = sld [smem:[#allocation2 + $0x20]] }
  0x28   :  { %s1716_s12 = sld [smem:[#allocation2 + $0x1b]] }
  0x29   :  { %3025 = sst [smem:[#allocation10_spill]] %s1708_s8 }
  0x2a   :  { %s1718_s2 = sld [smem:[#allocation2 + $0x1c]] }
  0x2b   :  { %3026 = sst [smem:[#allocation11_spill]] %s1710_s9 }
  0x2c   :  { %3027 = sst [smem:[#allocation12_spill]] %s1712_s10 }
  0x2d   :  { %3028 = sst [smem:[#allocation13_spill]] %s1714_s11 }
  0x2e   :  { %3029 = sst [smem:[#allocation14_spill]] %s1716_s12 }
  0x2f   :  { %s1720_s3 = sld [smem:[#allocation2 + $0x1d]] }
  0x30   :  { %3030 = sst [smem:[#allocation15_spill]] %s1718_s2 }
  0x31   :  { %s1722_s4 = sld [smem:[#allocation2 + $0x1e]] }
  0x32   :  { %s1724_s30 = sld [smem:[#allocation2 + $0x1f]] }
  0x33   :  { %s1726_s5 = sld [smem:[#allocation2 + $0x26]] }
  0x34   :  { %s1728_s7 = sld [smem:[#allocation2 + $0x21]] }
  0x35   :  { %3031 = sst [smem:[#allocation16_spill]] %s1720_s3 }
  0x36   :  { %s1730_s8 = sld [smem:[#allocation2 + $0x22]] }
  0x37   :  { %3032 = sst [smem:[#allocation17_spill]] %s1722_s4 }
  0x38   :  { %3033 = sst [smem:[#allocation18_spill]] %s1724_s30 }
  0x39   :  { %3034 = sst [smem:[#allocation19_spill]] %s1726_s5 }
  0x3a   :  { %3035 = sst [smem:[#allocation20_spill]] %s1728_s7 }
  0x3b   :  { %s1732_s9 = sld [smem:[#allocation2 + $0x23]] }
  0x3c   :  { %3036 = sst [smem:[#allocation21_spill]] %s1730_s8 }
  0x3d   :  { %s1734_s10 = sld [smem:[#allocation2 + $0x24]] }
  0x3e   :  { %s1736_s11 = sld [smem:[#allocation2 + $0x25]] }
  0x3f   :  { %s1738_s12 = sld [smem:[#allocation2 + $0x2c]] }
  0x40   :  { %s1740_s2 = sld [smem:[#allocation2 + $0x27]] }
  0x41   :  { %3037 = sst [smem:[#allocation22_spill]] %s1732_s9 }
  0x42   :  { %s1742_s3 = sld [smem:[#allocation2 + $0x28]] }
  0x43   :  { %3038 = sst [smem:[#allocation23_spill]] %s1734_s10 }
  0x44   :  { %3039 = sst [smem:[#allocation24_spill]] %s1736_s11 }
  0x45   :  { %3040 = sst [smem:[#allocation25_spill]] %s1738_s12 }
  0x46   :  { %3041 = sst [smem:[#allocation26_spill]] %s1740_s2 }
  0x47   :  { %s1744_s4 = sld [smem:[#allocation2 + $0x29]] }
  0x48   :  { %3042 = sst [smem:[#allocation27_spill]] %s1742_s3 }
  0x49   :  { %s1746_s30 = sld [smem:[#allocation2 + $0x2a]] }
  0x4a   :  { %s1748_s5 = sld [smem:[#allocation2 + $0x2b]] }
  0x4b   :  { %s1750_s7 = sld [smem:[#allocation2 + $0x32]] }
  0x4c   :  { %s1752_s8 = sld [smem:[#allocation2 + $0x2d]] }
  0x4d   :  { %3043 = sst [smem:[#allocation28_spill]] %s1744_s4 }
  0x4e   :  { %s1754_s9 = sld [smem:[#allocation2 + $0x2e]] }
  0x4f   :  { %3044 = sst [smem:[#allocation29_spill]] %s1746_s30 }
  0x50   :  { %3045 = sst [smem:[#allocation30_spill]] %s1748_s5 }
  0x51   :  { %3046 = sst [smem:[#allocation31_spill]] %s1750_s7 }
  0x52   :  { %3047 = sst [smem:[#allocation32_spill]] %s1752_s8 }
  0x53   :  { %s1756_s10 = sld [smem:[#allocation2 + $0x2f]] }
  0x54   :  { %3048 = sst [smem:[#allocation33_spill]] %s1754_s9 }
  0x55   :  { %s1758_s11 = sld [smem:[#allocation2 + $0x30]] }
  0x56   :  { %s1760_s12 = sld [smem:[#allocation2 + $0x31]] }
  0x57   :  { %s1762_s2 = sld [smem:[#allocation2 + $0x38]] }
  0x58   :  { %s1764_s3 = sld [smem:[#allocation2 + $0x33]] }
  0x59   :  { %3049 = sst [smem:[#allocation34_spill]] %s1756_s10 }
  0x5a   :  { %s1766_s4 = sld [smem:[#allocation2 + $0x34]] }
  0x5b   :  { %3050 = sst [smem:[#allocation35_spill]] %s1758_s11 }
  0x5c   :  { %3051 = sst [smem:[#allocation36_spill]] %s1760_s12 }
  0x5d   :  { %3052 = sst [smem:[#allocation37_spill]] %s1762_s2 }
  0x5e   :  { %s1768_s30 = sld [smem:[#allocation2 + $0x35]] }
  0x5f   :  { %s1770_s5 = sld [smem:[#allocation2 + $0x36]] }
  0x60   :  { %3053 = sst [smem:[#allocation38_spill]] %s1766_s4 }
  0x61   :  { %s1772_s7 = sld [smem:[#allocation2 + $0x37]] }
  0x62   :  { %s1774_s8 = sld [smem:[#allocation2 + $0x3e]] }
  0x63   :  { %s1776_s9 = sld [smem:[#allocation2 + $0x39]] }
  0x64   :  { %3054 = sst [smem:[#allocation39_spill]] %s1768_s30 }
  0x65   :  { %3055 = sst [smem:[#allocation40_spill]] %s1770_s5 }
  0x66   :  { %s1778_s10 = sld [smem:[#allocation2 + $0x3a]] }
  0x67   :  { %3056 = sst [smem:[#allocation41_spill]] %s1772_s7 }
  0x68   :  { %3057 = sst [smem:[#allocation42_spill]] %s1774_s8 }
  0x69   :  { %3058 = sst [smem:[#allocation43_spill]] %s1776_s9 }
  0x6a   :  { %s1780_s11 = sld [smem:[#allocation2 + $0x3b]] }
  0x6b   :  { %s1782_s12 = sld [smem:[#allocation2 + $0x3c]] }
  0x6c   :  { %3059 = sst [smem:[#allocation44_spill]] %s1778_s10 }
  0x6d   :  { %s1784_s2 = sld [smem:[#allocation2 + $0x3d]] }
  0x6e   :  { %s1786_s4 = sld [smem:[#allocation2 + $0x44]] }
  0x6f   :  { %s1788_s30 = sld [smem:[#allocation2 + $0x3f]] }
  0x70   :  { %3060 = sst [smem:[#allocation45_spill]] %s1780_s11 }
  0x71   :  { %3061 = sst [smem:[#allocation46_spill]] %s1782_s12 }
  0x72   :  { %s1790_s5 = sld [smem:[#allocation2 + $0x40]] }
  0x73   :  { %3062 = sst [smem:[#allocation47_spill]] %s1784_s2 }
  0x74   :  { %3063 = sst [smem:[#allocation48_spill]] %s1786_s4 }
  0x75   :  { %3064 = sst [smem:[#allocation49_spill]] %s1788_s30 }
  0x76   :  { %s1792_s7 = sld [smem:[#allocation2 + $0x41]] }
  0x77   :  { %s1794_s8 = sld [smem:[#allocation2 + $0x42]] }
  0x78   :  { %3065 = sst [smem:[#allocation50_spill]] %s1790_s5 }
  0x79   :  { %s1796_s9 = sld [smem:[#allocation2 + $0x43]] }
  0x7a   :  { %s1798_s10 = sld [smem:[#allocation2 + $0x4a]] }
  0x7b   :  { %s1800_s11 = sld [smem:[#allocation2 + $0x45]] }
  0x7c   :  { %3066 = sst [smem:[#allocation51_spill]] %s1792_s7 }
  0x7d   :  { %3067 = sst [smem:[#allocation52_spill]] %s1794_s8 }
  0x7e   :  { %s1802_s2 = sld [smem:[#allocation2 + $0x46]] }
  0x7f   :  { %3068 = sst [smem:[#allocation53_spill]] %s1796_s9 }
  0x80   :  { %3069 = sst [smem:[#allocation54_spill]] %s1798_s10 }
  0x81   :  { %s1804_s12 = sld [smem:[#allocation2 + $0x47]] }
  0x82   :  { %s1806_s4 = sld [smem:[#allocation2 + $0x48]] }
  0x83   :  { %s1808_s5 = sld [smem:[#allocation2 + $0x49]] }
  0x84   :  { %3070 = sst [smem:[#allocation55_spill]] %s1802_s2 }
  0x85   :  { %s1810_s7 = sld [smem:[#allocation2 + $0x55]] }
  0x86   :  { %s1812_s8 = sld [smem:[#allocation2 + $0x4b]] }
  0x87   :  { %3071 = sst [smem:[#allocation56_spill]] %s1804_s12 }
  0x88   :  { %3072 = sst [smem:[#allocation57_spill]] %s1806_s4 }
  0x89   :  { %3073 = sst [smem:[#allocation58_spill]] %s1808_s5 }
  0x8a   :  { %s1818_s10 = sld [smem:[#allocation2 + $0x4c]] }
  0x8b   :  { %3074 = sst [smem:[#allocation59_spill]] %s1810_s7 }
  0x8c   :  { %s1820_s2 = sld [smem:[#allocation2 + $0x4d]] }
  0x8d   :  { %s1822_s12 = sld [smem:[#allocation2 + $0x4e]] }
  0x8e   :  { %s1824_s5 = sld [smem:[#allocation2 + $0x4f]] }
  0x8f   :  { %s1833_s14 = sld [smem:[#allocation2 + $0x50]] }
  0x90   :  { %s1836_s30 = sld [smem:[#allocation2 + $0x51]] }
  0x91   :  { %s1838_s9 = sld [smem:[#allocation2 + $0x52]] }
  0x92   :  { %s1845_s0 = sld [smem:[#allocation2 + $0x54]] }
  0x93   :  { %s1848_s13 = sld [smem:[#allocation2 + $0x60]] }
  0x94   :  { %3075 = sst [smem:[#allocation60_spill]] %s1824_s5 }
  0x95   :  { %s1841_s5 = sld [smem:[#allocation2 + $0x53]] }
  0x96   :  { %3076 = sst [smem:[#allocation61_spill]] %s1836_s30 }
  0x97   :  { %3077 = sst [smem:[#allocation62_spill]] %s1838_s9 }
  0x98   :  { %3079 = sst [smem:[#allocation64_spill]] %s1845_s0 }
  0x99   :  { %s1850_s15 = sld [smem:[#allocation2 + $0x56]] }
  0x9a   :  { %s1853_s17 = sld [smem:[#allocation2 + $0x57]] }
  0x9b   :  { %3078 = sst [smem:[#allocation63_spill]] %s1841_s5 }
  0x9c   :  { %s1858_s16 = sld [smem:[#allocation2 + $0x58]] }
  0x9d   :  { %s1860_s18 = sld [smem:[#allocation2 + $0x59]] }
  0x9e   :  { %s1862_s1 = sld [smem:[#allocation2 + $0x5a]] }
  0x9f   :  { %s1865_s4 = sld [smem:[#allocation2 + $0x5b]] }
  0xa0   :  { %s1871_s19 = sld [smem:[#allocation2 + $0x5c]] }
  0xa1   :  { %s1875_s20 = sld [smem:[#allocation2 + $0x5d]] }
  0xa2   :  { %s3085_s22 = sld [smem:[#allocation8_spill]] }
  0xa3   :  { %3080 = sst [smem:[#allocation65_spill]] %s1860_s18 }
  0xa4   :  { %3081 = sst [smem:[#allocation66_spill]] %s1862_s1 }
  0xa5   :  { %3082 = sst [smem:[#allocation67_spill]] %s1865_s4 }
  0xa6   :  { %3083 = sst [smem:[#allocation68_spill]] %s1871_s19 }
  0xa7   :  { %3084 = sst [smem:[#allocation69_spill]] %s1875_s20 }
  0xa8   :  { %s1878_s7 = sld [smem:[#allocation2 + $0x5e]]  ;;  %v106_v41 = vstv %s3085_s22 }
  0xa9   :  { %s3087_s4 = sld [smem:[#allocation9_spill]]  ;;  %v110_v50 = vadd.f32 %v109_v40, %v106_v41  ;;  %v223_v41 = vstv %s1764_s3 }
  0xaa   :  { %s1881_s21 = sld [smem:[#allocation2 + $0x5f]]  ;;  %v224_v55 = vmul.f32 %v223_v41, %v1867_v23 }
  0xab   :  { %s1887_s23 = sld [smem:[#allocation2 + $0x6b]] }
  0xac   :  { %s3089_s25 = sld [smem:[#allocation5_spill]] }
  0xad   :  { %s1893_s28 = sld [smem:[#allocation2 + $0x61]] }
  0xae   :  { %3086 = sst [smem:[#allocation8_spill]] %s1878_s7 }
  0xaf   :  { %s3090_s6 = sld [smem:[#allocation10_spill]]  ;;  %v112_v42 = vstv %s3087_s4 }
  0xb0   :  { %3088 = sst [smem:[#allocation9_spill]] %s1881_s21  ;;  %v113_v51 = vmul.f32 %v112_v42, %v1883_v33 }
  0xb1   :  { %s3091_s7 = sld [smem:[#allocation14_spill]] }
  0xb2   :  { %s1897_s21 = sld [smem:[#allocation2 + $0x62]]  ;;  %v93_v49 = vstv %s3089_s25  ;;  %v114_v59 = vadd.f32 %v113_v51, %v110_v50 }
  0xb3   :  { %s1901_s24 = sld [smem:[#allocation2 + $0x63]]  ;;  %v94_v57 = vmul.f32 %v93_v49, %v1899_v43 }
  0xb4   :  { %s3092_s26 = sld [smem:[#allocation6_spill]] }
  0xb5   :  { %s1905_s27 = sld [smem:[#allocation2 + $0x64]]  ;;  %v116_v52 = vstv %s3090_s6  ;;  %v95_v3 = vadd.f32 %v94_v57, %v91_v56 }
  0xb6   :  { %s3094_s29 = sld [smem:[#allocation11_spill]]  ;;  %v117_v60 = vmul.f32 %v116_v52, %v1899_v43 }
  0xb7   :  { %s1909_s4 = sld [smem:[#allocation2 + $0x65]]  ;;  %v131_v53 = vstv %s3091_s7 }
  0xb8   :  { %s3096_s22 = sld [smem:[#allocation13_spill]]  ;;  %v132_v61 = vmul.f32 %v131_v53, %v1867_v23  ;;  %v118_v6 = vadd.f32 %v117_v60, %v114_v59 }
  0xb9   :  { %s3097_s20 = sld [smem:[#allocation15_spill]] }
  0xba   :  { %s1913_s19 = sld [smem:[#allocation2 + $0x66]]  ;;  %v97_v58 = vstv %s3092_s26 }
  0xbb   :  { %3093 = sst [smem:[#allocation5_spill]] %s1905_s27  ;;  %v98_v4 = vmul.f32 %v97_v58, %v1917_v54 }
  0xbc   :  { %s3099_s0 = sld [smem:[#allocation20_spill]]  ;;  %v120_v62 = vstv %s3094_s29 }
  0xbd   :  { %3095 = sst [smem:[#allocation10_spill]] %s1909_s4  ;;  %v121_v7 = vmul.f32 %v120_v62, %v1917_v54  ;;  %v99_v15 = vadd.f32 %v98_v4, %v95_v3 }
  0xbe   :  { %s1915_s5 = sld [smem:[#allocation2 + $0x67]]  ;;  %v129_v63 = vstv %s3096_s22 }
  0xbf   :  { %s3101_s25 = sld [smem:[#allocation7_spill]]  ;;  %v135_v0 = vstv %s3097_s20  ;;  %v133_v8 = vadd.f32 %v132_v61, %v129_v63  ;;  %v122_v17 = vadd.f32 %v121_v7, %v118_v6 }
  0xc0   :  { %3098 = sst [smem:[#allocation14_spill]] %s1913_s19  ;;  %v136_v9 = vmul.f32 %v135_v0, %v1883_v33 }
  0xc1   :  { %s1920_s1 = sld [smem:[#allocation2 + $0x68]] }
  0xc2   :  { %s1925_s7 = sld [smem:[#allocation2 + $0x69]]  ;;  %v154_v1 = vstv %s3099_s0  ;;  %v137_v19 = vadd.f32 %v136_v9, %v133_v8 }
  0xc3   :  { %s3104_s6 = sld [smem:[#allocation12_spill]]  ;;  %v155_v12 = vmul.f32 %v154_v1, %v1867_v23 }
  0xc4   :  { %3100 = sst [smem:[#allocation6_spill]] %s1915_s5 }
  0xc5   :  { %s3105_s5 = sld [smem:[#allocation16_spill]]  ;;  %v101_v5 = vstv %s3101_s25 }
  0xc6   :  { %s1930_s19 = sld [smem:[#allocation2 + $0x6a]]  ;;  %v102_v16 = vmul.f32 %v101_v5, %v1935_v2 }
  0xc7   :  { %3102 = sst [smem:[#allocation11_spill]] %s1920_s1 }
  0xc8   :  { %3103 = sst [smem:[#allocation13_spill]] %s1925_s7  ;;  %v103_v26 = vadd.f32 %v102_v16, %v99_v15 }
  0xc9   :  { %s3107_s4 = sld [smem:[#allocation19_spill]]  ;;  %v124_v10 = vstv %s3104_s6 }
  0xca   :  { %s1933_s9 = sld [smem:[#allocation2 + $0x76]]  ;;  %v125_v18 = vmul.f32 %v124_v10, %v1935_v2  ;;  %v1981_v36 = vmax.f32 %v103_v26, 0.0 }
  0xcb   :  { %s3108_s1 = sld [smem:[#allocation21_spill]]  ;;  %v139_v11 = vstv %s3105_s5 }
  0xcc   :  { %3106 = sst [smem:[#allocation15_spill]] %s1930_s19  ;;  %v140_v20 = vmul.f32 %v139_v11, %v1899_v43  ;;  %v126_v27 = vadd.f32 %v125_v18, %v122_v17 }
  0xcd   :  { %s1939_s26 = sld [smem:[#allocation2 + $0x6c]] }
  0xce   :  { %s1943_s20 = sld [smem:[#allocation2 + $0x6d]]  ;;  %v141_v28 = vadd.f32 %v140_v20, %v137_v19  ;;  %v1986_v38 = vmax.f32 %v126_v27, 0.0  ;;  %v292_v20 = vstv %s1800_s11 }
  0xcf   :  { %s3109_s0 = sld [smem:[#allocation17_spill]]  ;;  %v152_v13 = vstv %s3107_s4 }
  0xd0   :  { %s1948_s29 = sld [smem:[#allocation2 + $0x6e]]  ;;  %v156_v22 = vadd.f32 %v155_v12, %v152_v13 }
  0xd1   :  { %s3111_s22 = sld [smem:[#allocation22_spill]]  ;;  %v158_v14 = vstv %s3108_s1 }
  0xd2   :  { %s1952_s25 = sld [smem:[#allocation2 + $0x6f]]  ;;  %v159_v24 = vmul.f32 %v158_v14, %v1883_v33 }
  0xd3   :  { %s1955_s19 = sld [smem:[#allocation2 + $0x70]] }
  0xd4   :  { %s3114_s7 = sld [smem:[#allocation18_spill]]  ;;  %v160_v31 = vadd.f32 %v159_v24, %v156_v22 }
  0xd5   :  { %s1959_s5 = sld [smem:[#allocation2 + $0x71]]  ;;  %v143_v21 = vstv %s3109_s0 }
  0xd6   :  { %3110 = sst [smem:[#allocation20_spill]] %s1948_s29  ;;  %v144_v29 = vmul.f32 %v143_v21, %v1917_v54 }
  0xd7   :  { %s3116_s6 = sld [smem:[#allocation23_spill]]  ;;  %v162_v25 = vstv %s3111_s22 }
  0xd8   :  { %3112 = sst [smem:[#allocation7_spill]] %s1952_s25  ;;  %v163_v32 = vmul.f32 %v162_v25, %v1899_v43  ;;  %v1988_v39 = vadd.f32 %v144_v29, %v141_v28 }
  0xd9   :  { %3113 = sst [smem:[#allocation12_spill]] %s1955_s19 }
  0xda   :  { %s3117_s1 = sld [smem:[#allocation26_spill]]  ;;  %v147_v30 = vstv %s3114_s7  ;;  %v164_v42 = vadd.f32 %v163_v32, %v160_v31 }
  0xdb   :  { %3115 = sst [smem:[#allocation16_spill]] %s1959_s5  ;;  %v1991_v40 = vmul.f32 %v147_v30, %v1935_v2 }
  0xdc   :  { %s1963_s4 = sld [smem:[#allocation2 + $0x72]] }
  0xdd   :  { %s3119_s25 = sld [smem:[#allocation32_spill]]  ;;  %v166_v34 = vstv %s3116_s6 }
  0xde   :  { %s1966_s19 = sld [smem:[#allocation2 + $0x73]]  ;;  %v167_v44 = vmul.f32 %v166_v34, %v1917_v54  ;;  %v293_v34 = vmul.f32 %v292_v20, %v1867_v23 }
  0xdf   :  { %s1968_s27 = sld [smem:[#allocation2 + $0x74]] }
  0xe0   :  { %s1971_s0 = sld [smem:[#allocation2 + $0x75]]  ;;  %v177_v35 = vstv %s3117_s1  ;;  %v2021_v60 = vadd.f32 %v167_v44, %v164_v42 }
  0xe1   :  { %s3123_s5 = sld [smem:[#allocation24_spill]]  ;;  %v178_v46 = vmul.f32 %v177_v35, %v1867_v23 }
  0xe2   :  { %3118 = sst [smem:[#allocation19_spill]] %s1963_s4 }
  0xe3   :  { %s1975_s4 = sld [smem:[#allocation2 + $0x81]]  ;;  %v200_v37 = vstv %s3119_s25 }
  0xe4   :  { %3120 = sst [smem:[#allocation21_spill]] %s1966_s19  ;;  %v201_v50 = vmul.f32 %v200_v37, %v1867_v23 }
  0xe5   :  { %3121 = sst [smem:[#allocation17_spill]] %s1968_s27 }
  0xe6   :  { %3122 = sst [smem:[#allocation22_spill]] %s1971_s0 }
  0xe7   :  { %s3125_s22 = sld [smem:[#allocation25_spill]]  ;;  %v170_v45 = vstv %s3123_s5 }
  0xe8   :  { %s3126_s19 = sld [smem:[#allocation27_spill]]  ;;  %v2014_v56 = vmul.f32 %v170_v45, %v1935_v2 }
  0xe9   :  { %3124 = sst [smem:[#allocation18_spill]] %s1975_s4 }
  0xea   :  { %s1979_s18 = sld [smem:[#allocation2 + $0x77]] }
  0xeb   :  { %s3128_s27 = sld [smem:[#allocation28_spill]] }
  0xec   :  { %s1984_s29 = sld [smem:[#allocation2 + $0x78]] }
  0xed   :  { %s3130_s0 = sld [smem:[#allocation29_spill]]  ;;  %v175_v47 = vstv %s3125_s22 }
  0xee   :  { %s3131_s7 = sld [smem:[#allocation31_spill]]  ;;  %v181_v48 = vstv %s3126_s19  ;;  %v179_v61 = vadd.f32 %v178_v46, %v175_v47 }
  0xef   :  { %s3132_s4 = sld [smem:[#allocation33_spill]]  ;;  %v182_v62 = vmul.f32 %v181_v48, %v1883_v33 }
  0xf0   :  { %3127 = sst [smem:[#allocation23_spill]] %s1979_s18 }
  0xf1   :  { %s1994_s6 = sld [smem:[#allocation2 + $0x79]]  ;;  %v185_v49 = vstv %s3128_s27  ;;  %v183_v13 = vadd.f32 %v182_v62, %v179_v61 }
  0xf2   :  { %3129 = sst [smem:[#allocation26_spill]] %s1984_s29  ;;  %v186_v0 = vmul.f32 %v185_v49, %v1899_v43 }
  0xf3   :  { %s3134_s1 = sld [smem:[#allocation37_spill]]  ;;  %v189_v51 = vstv %s3130_s0 }
  0xf4   :  { %s3135_s25 = sld [smem:[#allocation38_spill]]  ;;  %v198_v52 = vstv %s3131_s7  ;;  %v190_v1 = vmul.f32 %v189_v51, %v1917_v54  ;;  %v187_v30 = vadd.f32 %v186_v0, %v183_v13 }
  0xf5   :  { %s3136_s29 = sld [smem:[#allocation43_spill]]  ;;  %v204_v53 = vstv %s3132_s4  ;;  %v202_v3 = vadd.f32 %v201_v50, %v198_v52 }
  0xf6   :  { %s1999_s18 = sld [smem:[#allocation2 + $0x7a]]  ;;  %v205_v4 = vmul.f32 %v204_v53, %v1883_v33 }
  0xf7   :  { %3133 = sst [smem:[#allocation32_spill]] %s1994_s6 }
  0xf8   :  { %s3137_s30 = sld [smem:[#allocation49_spill]]  ;;  %v206_v17 = vadd.f32 %v205_v4, %v202_v3 }
  0xf9   :  { %s2005_s3 = sld [smem:[#allocation2 + $0x7b]]  ;;  %v221_v57 = vstv %s3134_s1 }
  0xfa   :  { %s2011_s6 = sld [smem:[#allocation2 + $0x7c]]  ;;  %v227_v58 = vstv %s3135_s25  ;;  %v225_v6 = vadd.f32 %v224_v55, %v221_v57  ;;  %v191_v57 = vadd.f32 %v190_v1, %v187_v30 }
  0xfb   :  { %s3140_s5 = sld [smem:[#allocation34_spill]]  ;;  %v246_v59 = vstv %s3136_s29  ;;  %v228_v7 = vmul.f32 %v227_v58, %v1883_v33 }
  0xfc   :  { %s2019_s19 = sld [smem:[#allocation2 + $0x7d]]  ;;  %v247_v8 = vmul.f32 %v246_v59, %v1867_v23 }
  0xfd   :  { %s3142_s27 = sld [smem:[#allocation39_spill]]  ;;  %v229_v21 = vadd.f32 %v228_v7, %v225_v6  ;;  %v149_v6 = vadd.f32 %v1991_v40, %v1988_v39 }
  0xfe   :  { %s3143_s22 = sld [smem:[#allocation42_spill]]  ;;  %v269_v63 = vstv %s3137_s30 }
  0xff   :  { %3138 = sst [smem:[#allocation24_spill]] %s2005_s3  ;;  %v270_v12 = vmul.f32 %v269_v63, %v1867_v23 }
 0x100   :  { %3139 = sst [smem:[#allocation25_spill]] %s2011_s6 }
 0x101   :  { %s3144_s4 = sld [smem:[#allocation44_spill]]  ;;  %v208_v5 = vstv %s3140_s5 }
 0x102   :  { %3141 = sst [smem:[#allocation27_spill]] %s2019_s19  ;;  %v209_v18 = vmul.f32 %v208_v5, %v1899_v43  ;;  %v315_v5 = vstv %s1812_s8 }
 0x103   :  { %s2025_s0 = sld [smem:[#allocation2 + $0x7e]]  ;;  %v231_v9 = vstv %s3142_s27  ;;  %v316_v40 = vmul.f32 %v315_v5, %v1981_v36 }
 0x104   :  { %s3146_s7 = sld [smem:[#allocation30_spill]]  ;;  %v244_v10 = vstv %s3143_s22  ;;  %v232_v22 = vmul.f32 %v231_v9, %v1899_v43  ;;  %v210_v35 = vadd.f32 %v209_v18, %v206_v17  ;;  %v2119_v17 = vmax.f32 %v149_v6, 0.0 }
 0x105   :  { %s3147_s1 = sld [smem:[#allocation48_spill]]  ;;  %v248_v24 = vadd.f32 %v247_v8, %v244_v10  ;;  %v172_v10 = vadd.f32 %v2014_v56, %v2021_v60  ;;  %v319_v60 = vstv %s1818_s10 }
 0x106   :  { %s3148_s29 = sld [smem:[#allocation50_spill]]  ;;  %v233_v44 = vadd.f32 %v232_v22, %v229_v21 }
 0x107   :  { %s2030_s25 = sld [smem:[#allocation2 + $0x7f]]  ;;  %v250_v11 = vstv %s3144_s4  ;;  %v2124_v20 = vmax.f32 %v172_v10, 0.0 }
 0x108   :  { %s3150_s19 = sld [smem:[#allocation35_spill]]  ;;  %v251_v25 = vmul.f32 %v250_v11, %v1883_v33 }
 0x109   :  { %3145 = sst [smem:[#allocation28_spill]] %s2025_s0 }
 0x10a   :  { %s2035_s30 = sld [smem:[#allocation2 + $0x80]]  ;;  %v193_v14 = vstv %s3146_s7  ;;  %v252_v46 = vadd.f32 %v251_v25, %v248_v24  ;;  %v358_v24 = vstv %s1850_s15 }
 0x10b   :  { %s2041_s0 = sld [smem:[#allocation2 + $0x8c]]  ;;  %v267_v15 = vstv %s3147_s1  ;;  %v194_v51 = vmul.f32 %v193_v14, %v1935_v2 }
 0x10c   :  { %s3152_s6 = sld [smem:[#allocation40_spill]]  ;;  %v273_v16 = vstv %s3148_s29  ;;  %v271_v28 = vadd.f32 %v270_v12, %v267_v15 }
 0x10d   :  { %3149 = sst [smem:[#allocation29_spill]] %s2030_s25  ;;  %v274_v29 = vmul.f32 %v273_v16, %v1883_v33  ;;  %v195_v11 = vadd.f32 %v194_v51, %v191_v57  ;;  %v448_v57 = vstv %s1943_s20 }
 0x10e   :  { %s3153_s25 = sld [smem:[#allocation45_spill]]  ;;  %v212_v19 = vstv %s3150_s19  ;;  %v449_v6 = vmul.f32 %v448_v57, %v1986_v38 }
 0x10f   :  { %s2046_s5 = sld [smem:[#allocation2 + $0x82]]  ;;  %v213_v31 = vmul.f32 %v212_v19, %v1917_v54  ;;  %v275_v49 = vadd.f32 %v274_v29, %v271_v28  ;;  %v2126_v21 = vmax.f32 %v195_v11, 0.0  ;;  %v401_v28 = vstv %s1893_s28 }
 0x110   :  { %3151 = sst [smem:[#allocation31_spill]] %s2035_s30 }
 0x111   :  { %s3154_s3 = sld [smem:[#allocation51_spill]]  ;;  %v214_v58 = vadd.f32 %v213_v31, %v210_v35  ;;  %v359_v35 = vmul.f32 %v358_v24, %v1981_v36 }
 0x112   :  { %s2051_s27 = sld [smem:[#allocation2 + $0x83]]  ;;  %v235_v26 = vstv %s3152_s6 }
 0x113   :  { %s3156_s22 = sld [smem:[#allocation36_spill]]  ;;  %v236_v45 = vmul.f32 %v235_v26, %v1917_v54  ;;  %v320_v26 = vmul.f32 %v319_v60, %v1986_v38 }
 0x114   :  { %s3157_s4 = sld [smem:[#allocation54_spill]]  ;;  %v254_v27 = vstv %s3153_s25 }
 0x115   :  { %s3158_s7 = sld [smem:[#allocation55_spill]]  ;;  %v255_v47 = vmul.f32 %v254_v27, %v1899_v43  ;;  %v237_v62 = vadd.f32 %v236_v45, %v233_v44  ;;  %v323_v27 = vstv %s1820_s2  ;;  %v362_v44 = vstv %s1853_s17 }
 0x116   :  { %s2055_s1 = sld [smem:[#allocation2 + $0x84]]  ;;  %v402_v45 = vmul.f32 %v401_v28, %v1981_v36 }
 0x117   :  { %s2060_s19 = sld [smem:[#allocation2 + $0x85]]  ;;  %v277_v32 = vstv %s3154_s3  ;;  %v256_v0 = vadd.f32 %v255_v47, %v252_v46  ;;  %v327_v47 = vstv %s1822_s12 }
 0x118   :  { %3155 = sst [smem:[#allocation33_spill]] %s2051_s27  ;;  %v278_v50 = vmul.f32 %v277_v32, %v1899_v43 }
 0x119   :  { %s3160_s11 = sld [smem:[#allocation41_spill]]  ;;  %v216_v37 = vstv %s3156_s22 }
 0x11a   :  { %s3161_s29 = sld [smem:[#allocation46_spill]]  ;;  %v290_v41 = vstv %s3157_s4  ;;  %v217_v59 = vmul.f32 %v216_v37, %v1935_v2  ;;  %v279_v4 = vadd.f32 %v278_v50, %v275_v49  ;;  %v444_v37 = vstv %s1939_s26 }
 0x11b   :  { %s2065_s30 = sld [smem:[#allocation2 + $0x86]]  ;;  %v296_v42 = vstv %s3158_s7  ;;  %v294_v53 = vadd.f32 %v293_v34, %v290_v41  ;;  %v324_v41 = vmul.f32 %v323_v27, %v2119_v17  ;;  %v445_v51 = vmul.f32 %v444_v37, %v1981_v36 }
 0x11c   :  { %s3162_s27 = sld [smem:[#allocation52_spill]]  ;;  %v297_v55 = vmul.f32 %v296_v42, %v1883_v33  ;;  %v218_v12 = vadd.f32 %v217_v59, %v214_v58  ;;  %v356_v42 = vstv %s1848_s13  ;;  %v328_v58 = vmul.f32 %v327_v47, %v2124_v20 }
 0x11d   :  { %3159 = sst [smem:[#allocation37_spill]] %s2060_s19  ;;  %v366_v59 = vstv %s1858_s16 }
 0x11e   :  { %s2070_s6 = sld [smem:[#allocation2 + $0x87]]  ;;  %v298_v8 = vadd.f32 %v297_v55, %v294_v53  ;;  %v363_v53 = vmul.f32 %v362_v44, %v1986_v38  ;;  %v442_v55 = vstv %s1933_s9 }
 0x11f   :  { %s3163_s25 = sld [smem:[#allocation56_spill]]  ;;  %v239_v48 = vstv %s3160_s11  ;;  %v446_v5 = vadd.f32 %v445_v51, %v442_v55 }
 0x120   :  { %s2074_s19 = sld [smem:[#allocation2 + $0x88]]  ;;  %v258_v23 = vstv %s3161_s29  ;;  %v240_v63 = vmul.f32 %v239_v48, %v1935_v2  ;;  %v405_v48 = vstv %s1897_s21 }
 0x121   :  { %s2079_s3 = sld [smem:[#allocation2 + $0x89]]  ;;  %v259_v3 = vmul.f32 %v258_v23, %v1917_v54 }
 0x122   :  { %s3165_s22 = sld [smem:[#allocation47_spill]]  ;;  %v281_v52 = vstv %s3162_s27  ;;  %v241_v14 = vadd.f32 %v240_v63, %v237_v62  ;;  %v406_v62 = vmul.f32 %v405_v48, %v1986_v38 }
 0x123   :  { %s2084_s4 = sld [smem:[#allocation2 + $0x8a]]  ;;  %v282_v1 = vmul.f32 %v281_v52, %v1917_v54  ;;  %v260_v15 = vadd.f32 %v259_v3, %v256_v0  ;;  %v360_v52 = vadd.f32 %v359_v35, %v356_v42  ;;  %v335_v3 = vstv %s1833_s14 }
 0x124   :  { %s3167_s7 = sld [smem:[#allocation53_spill]]  ;;  %v2139_v29 = vmax.f32 %v241_v14, 0.0 }
 0x125   :  { %v300_v61 = vstv %s3163_s25  ;;  %s2088_s11 = sld [smem:[#allocation2 + $0x8b]] }
 0x126   :  { %s3169_s27 = sld [smem:[#allocation57_spill]]  ;;  %v301_v9 = vmul.f32 %v300_v61, %v1899_v43  ;;  %v283_v43 = vadd.f32 %v282_v1, %v279_v4 }
 0x127   :  { %3164 = sst [smem:[#allocation38_spill]] %s2079_s3 }
 0x128   :  { %s2092_s29 = sld [smem:[#allocation2 + $0x97]]  ;;  %v262_v33 = vstv %s3165_s22  ;;  %v302_v18 = vadd.f32 %v301_v9, %v298_v8  ;;  %v367_v8 = vmul.f32 %v366_v59, %v2119_v17 }
 0x129   :  { %3166 = sst [smem:[#allocation43_spill]] %s2084_s4  ;;  %v263_v39 = vmul.f32 %v262_v33, %v1935_v2  ;;  %v409_v33 = vstv %s1901_s24 }
 0x12a   :  { %s2097_s4 = sld [smem:[#allocation2 + $0x8d]]  ;;  %v285_v7 = vstv %s3167_s7  ;;  %v410_v14 = vmul.f32 %v409_v33, %v2119_v17 }
 0x12b   :  { %3168 = sst [smem:[#allocation49_spill]] %s2088_s11  ;;  %v286_v16 = vmul.f32 %v285_v7, %v1935_v2  ;;  %v264_v30 = vadd.f32 %v263_v39, %v260_v15  ;;  %v364_v7 = vadd.f32 %v363_v53, %v360_v52 }
 0x12c   :  { %s3170_s25 = sld [smem:[#allocation59_spill]]  ;;  %v304_v13 = vstv %s3169_s27 }
 0x12d   :  { %s2103_s11 = sld [smem:[#allocation2 + $0x8e]]  ;;  %v305_v19 = vmul.f32 %v304_v13, %v1917_v54  ;;  %v2137_v54 = vmax.f32 %v218_v12, 0.0  ;;  %v287_v31 = vadd.f32 %v286_v16, %v283_v43  ;;  %v2159_v23 = vmax.f32 %v264_v30, 0.0 }
 0x12e   :  { %s2108_s8 = sld [smem:[#allocation2 + $0x8f]]  ;;  %v450_v16 = vadd.f32 %v449_v6, %v446_v5 }
 0x12f   :  { %s3171_s22 = sld [smem:[#allocation58_spill]]  ;;  %v306_v32 = vadd.f32 %v305_v19, %v302_v18  ;;  %v2161_v49 = vmax.f32 %v287_v31, 0.0  ;;  %v336_v11 = vmul.f32 %v335_v3, %v2137_v54  ;;  %v368_v19 = vadd.f32 %v367_v8, %v364_v7 }
 0x130   :  { %s2112_s7 = sld [smem:[#allocation2 + $0x90]]  ;;  %v530_v7 = vstv %s2046_s5 }
 0x131   :  { %s2117_s27 = sld [smem:[#allocation2 + $0x91]] }
 0x132   :  { %v313_v56 = vstv %s3170_s25  ;;  %s2122_s3 = sld [smem:[#allocation2 + $0x92]] }
 0x133   :  { %v317_v25 = vadd.f32 %v316_v40, %v313_v56  ;;  %s2135_s10 = sld [smem:[#allocation2 + $0x94]] }
 0x134   :  { %s2141_s15 = sld [smem:[#allocation2 + $0x95]] }
 0x135   :  { %v308_v22 = vstv %s3171_s22  ;;  %s3176_s25 = sld [smem:[#allocation60_spill]]  ;;  %v321_v46 = vadd.f32 %v320_v26, %v317_v25 }
 0x136   :  { %3172 = sst [smem:[#allocation34_spill]] %s2112_s7  ;;  %v309_v34 = vmul.f32 %v308_v22, %v1935_v2  ;;  %v399_v2 = vstv %s1887_s23 }
 0x137   :  { %s2130_s7 = sld [smem:[#allocation2 + $0x93]]  ;;  %v403_v61 = vadd.f32 %v402_v45, %v399_v2  ;;  %v325_v0 = vadd.f32 %v324_v41, %v321_v46 }
 0x138   :  { %s2146_s2 = sld [smem:[#allocation2 + $0x96]]  ;;  %v310_v63 = vadd.f32 %v309_v34, %v306_v32 }
 0x139   :  { %3174 = sst [smem:[#allocation42_spill]] %s2135_s10  ;;  %v407_v13 = vadd.f32 %v406_v62, %v403_v61  ;;  %v329_v39 = vadd.f32 %v328_v58, %v325_v0 }
 0x13a   :  { %3175 = sst [smem:[#allocation44_spill]] %s2141_s15  ;;  %v2196_v15 = vmax.f32 %v310_v63, 0.0 }
 0x13b   :  { %s2152_s28 = sld [smem:[#allocation2 + $0xa2]]  ;;  %v331_v50 = vstv %s3176_s25  ;;  %v411_v28 = vadd.f32 %v410_v14, %v407_v13 }
 0x13c   :  { %s2157_s22 = sld [smem:[#allocation2 + $0x98]]  ;;  %v332_v4 = vmul.f32 %v331_v50, %v2126_v21 }
 0x13d   :  { %3173 = sst [smem:[#allocation39_spill]] %s2130_s7 }
 0x13e   :  { %3177 = sst [smem:[#allocation30_spill]] %s2146_s2  ;;  %v333_v31 = vadd.f32 %v332_v4, %v329_v39  ;;  %v499_v4 = vstv %s1999_s18 }
 0x13f   :  { %s2165_s13 = sld [smem:[#allocation2 + $0x99]]  ;;  %v500_v39 = vmul.f32 %v499_v4, %v2124_v20 }
 0x140   :  { %s3178_s17 = sld [smem:[#allocation61_spill]]  ;;  %v337_v53 = vadd.f32 %v336_v11, %v333_v31 }
 0x141   :  { %s2170_s12 = sld [smem:[#allocation2 + $0x9a]] }
 0x142   :  { %s3179_s21 = sld [smem:[#allocation20_spill]] }
 0x143   :  { %s3180_s23 = sld [smem:[#allocation23_spill]] }
 0x144   :  { %s2175_s26 = sld [smem:[#allocation2 + $0x9b]] }
 0x145   :  { %s3181_s25 = sld [smem:[#allocation65_spill]] }
 0x146   :  { %s2179_s2 = sld [smem:[#allocation2 + $0x9c]]  ;;  %v339_v1 = vstv %s3178_s17 }
 0x147   :  { %s3183_s9 = sld [smem:[#allocation5_spill]]  ;;  %v340_v40 = vmul.f32 %v339_v1, %v2139_v29 }
 0x148   :  { %s2184_s16 = sld [smem:[#allocation2 + $0x9d]]  ;;  %v452_v9 = vstv %s3179_s21 }
 0x149   :  { %s3185_s20 = sld [smem:[#allocation7_spill]]  ;;  %v487_v10 = vstv %s3180_s23  ;;  %v453_v56 = vmul.f32 %v452_v9, %v2119_v17  ;;  %v341_v8 = vadd.f32 %v340_v40, %v337_v53 }
 0x14a   :  { %s2189_s15 = sld [smem:[#allocation2 + $0x9e]]  ;;  %v488_v18 = vmul.f32 %v487_v10, %v1981_v36 }
 0x14b   :  { %v370_v12 = vstv %s3181_s25  ;;  %s3187_s14 = sld [smem:[#allocation18_spill]]  ;;  %v454_v37 = vadd.f32 %v453_v56, %v450_v16  ;;  %v531_v56 = vmul.f32 %v530_v7, %v1981_v36  ;;  %v573_v7 = vstv %s2097_s4 }
 0x14c   :  { %3182 = sst [smem:[#allocation48_spill]] %s2179_s2  ;;  %v371_v22 = vmul.f32 %v370_v12, %v2124_v20 }
 0x14d   :  { %s3188_s24 = sld [smem:[#allocation26_spill]]  ;;  %v413_v43 = vstv %s3183_s9 }
 0x14e   :  { %3184 = sst [smem:[#allocation50_spill]] %s2184_s16  ;;  %v414_v30 = vmul.f32 %v413_v43, %v2124_v20  ;;  %v372_v46 = vadd.f32 %v371_v22, %v368_v19  ;;  %v528_v19 = vstv %s2041_s0 }
 0x14f   :  { %s2194_s17 = sld [smem:[#allocation2 + $0x9f]]  ;;  %v456_v60 = vstv %s3185_s20 }
 0x150   :  { %3186 = sst [smem:[#allocation35_spill]] %s2189_s15  ;;  %v457_v35 = vmul.f32 %v456_v60, %v2124_v20  ;;  %v415_v51 = vadd.f32 %v414_v30, %v411_v28 }
 0x151   :  { %s3190_s2 = sld [smem:[#allocation62_spill]]  ;;  %v485_v24 = vstv %s3187_s14 }
 0x152   :  { %s3191_s16 = sld [smem:[#allocation66_spill]]  ;;  %v489_v42 = vadd.f32 %v488_v18, %v485_v24  ;;  %v458_v59 = vadd.f32 %v457_v35, %v454_v37  ;;  %v532_v37 = vadd.f32 %v531_v56, %v528_v19 }
 0x153   :  { %s2200_s21 = sld [smem:[#allocation2 + $0xa0]]  ;;  %v491_v25 = vstv %s3188_s24 }
 0x154   :  { %s3193_s23 = sld [smem:[#allocation63_spill]]  ;;  %v492_v44 = vmul.f32 %v491_v25, %v1986_v38 }
 0x155   :  { %3189 = sst [smem:[#allocation40_spill]] %s2194_s17 }
 0x156   :  { %s3194_s25 = sld [smem:[#allocation10_spill]]  ;;  %v493_v62 = vadd.f32 %v492_v44, %v489_v42 }
 0x157   :  { %s2205_s15 = sld [smem:[#allocation2 + $0xa1]]  ;;  %v343_v26 = vstv %s3190_s2 }
 0x158   :  { %s3196_s17 = sld [smem:[#allocation12_spill]]  ;;  %v374_v27 = vstv %s3191_s16  ;;  %v2227_v45 = vmul.f32 %v343_v26, %v2159_v23 }
 0x159   :  { %3192 = sst [smem:[#allocation45_spill]] %s2200_s21  ;;  %v375_v47 = vmul.f32 %v374_v27, %v2126_v21 }
 0x15a   :  { %s2210_s10 = sld [smem:[#allocation2 + $0xad]]  ;;  %v347_v32 = vstv %s3193_s23  ;;  %v345_v42 = vadd.f32 %v2227_v45, %v341_v8 }
 0x15b   :  { %s3197_s9 = sld [smem:[#allocation32_spill]]  ;;  %v2239_v55 = vmul.f32 %v347_v32, %v2161_v49  ;;  %v376_v3 = vadd.f32 %v375_v47, %v372_v46  ;;  %v538_v47 = vstv %s2055_s1 }
 0x15c   :  { %s2215_s21 = sld [smem:[#allocation2 + $0xa3]]  ;;  %v417_v34 = vstv %s3194_s25 }
 0x15d   :  { %3195 = sst [smem:[#allocation51_spill]] %s2205_s15  ;;  %v418_v52 = vmul.f32 %v417_v34, %v2126_v21 }
 0x15e   :  { %s3198_s20 = sld [smem:[#allocation64_spill]]  ;;  %v460_v41 = vstv %s3196_s17 }
 0x15f   :  { %s3199_s7 = sld [smem:[#allocation67_spill]]  ;;  %v461_v58 = vmul.f32 %v460_v41, %v2126_v21  ;;  %v419_v5 = vadd.f32 %v418_v52, %v415_v51 }
 0x160   :  { %s2220_s15 = sld [smem:[#allocation2 + $0xa4]] }
 0x161   :  { %s3200_s14 = sld [smem:[#allocation14_spill]]  ;;  %v495_v2 = vstv %s3197_s9  ;;  %v462_v12 = vadd.f32 %v461_v58, %v458_v59 }
 0x162   :  { %s2224_s2 = sld [smem:[#allocation2 + $0xa5]]  ;;  %v496_v63 = vmul.f32 %v495_v2, %v2119_v17 }
 0x163   :  { %s3201_s16 = sld [smem:[#allocation16_spill]] }
 0x164   :  { %s2231_s24 = sld [smem:[#allocation2 + $0xa6]]  ;;  %v351_v48 = vstv %s3198_s20  ;;  %v497_v14 = vadd.f32 %v496_v63, %v493_v62  ;;  %v539_v62 = vmul.f32 %v538_v47, %v2119_v17  ;;  %v349_v63 = vadd.f32 %v2239_v55, %v345_v42 }
 0x165   :  { %v378_v50 = vstv %s3199_s7  ;;  %s2236_s17 = sld [smem:[#allocation2 + $0xa7]]  ;;  %v2250_v0 = vmul.f32 %v351_v48, %v2196_v15 }
 0x166   :  { %s3204_s23 = sld [smem:[#allocation68_spill]]  ;;  %v379_v33 = vmul.f32 %v378_v50, %v2137_v54  ;;  %v501_v31 = vadd.f32 %v500_v39, %v497_v14 }
 0x167   :  { %v421_v57 = vstv %s3200_s14  ;;  %s2243_s25 = sld [smem:[#allocation2 + $0xa8]] }
 0x168   :  { %s3206_s9 = sld [smem:[#allocation69_spill]]  ;;  %v422_v6 = vmul.f32 %v421_v57, %v2137_v54  ;;  %v380_v43 = vadd.f32 %v379_v33, %v376_v3 }
 0x169   :  { %v464_v61 = vstv %s3201_s16  ;;  %s3207_s7 = sld [smem:[#allocation6_spill]] }
 0x16a   :  { %3202 = sst [smem:[#allocation36_spill]] %s2231_s24  ;;  %v465_v11 = vmul.f32 %v464_v61, %v2137_v54  ;;  %v423_v60 = vadd.f32 %v422_v6, %v419_v5 }
 0x16b   :  { %3203 = sst [smem:[#allocation54_spill]] %s2236_s17 }
 0x16c   :  { %s2247_s20 = sld [smem:[#allocation2 + $0xa9]]  ;;  %v382_v1 = vstv %s3204_s23  ;;  %v466_v28 = vadd.f32 %v465_v11, %v462_v12 }
 0x16d   :  { %3205 = sst [smem:[#allocation55_spill]] %s2243_s25  ;;  %v383_v40 = vmul.f32 %v382_v1, %v2139_v29 }
 0x16e   :  { %s3209_s17 = sld [smem:[#allocation19_spill]]  ;;  %v386_v9 = vstv %s3206_s9 }
 0x16f   :  { %s2254_s14 = sld [smem:[#allocation2 + $0xaa]]  ;;  %v425_v10 = vstv %s3207_s7  ;;  %v387_v24 = vmul.f32 %v386_v9, %v2159_v23  ;;  %v384_v34 = vadd.f32 %v383_v40, %v380_v43  ;;  %v546_v40 = vstv %s2065_s30 }
 0x170   :  { %s3211_s16 = sld [smem:[#allocation24_spill]]  ;;  %v426_v18 = vmul.f32 %v425_v10, %v2139_v29 }
 0x171   :  { %s2259_s25 = sld [smem:[#allocation2 + $0xab]]  ;;  %v388_v58 = vadd.f32 %v387_v24, %v384_v34 }
 0x172   :  { %3208 = sst [smem:[#allocation41_spill]] %s2247_s20  ;;  %v427_v44 = vadd.f32 %v426_v18, %v423_v60  ;;  %v571_v60 = vstv %s2092_s29  ;;  %v577_v18 = vstv %s2103_s11 }
 0x173   :  { %s3213_s20 = sld [smem:[#allocation33_spill]] }
 0x174   :  { %s2264_s24 = sld [smem:[#allocation2 + $0xac]]  ;;  %v468_v13 = vstv %s3209_s17 }
 0x175   :  { %3210 = sst [smem:[#allocation46_spill]] %s2254_s14  ;;  %v469_v27 = vmul.f32 %v468_v13, %v2139_v29 }
 0x176   :  { %s3215_s18 = sld [smem:[#allocation8_spill]]  ;;  %v503_v16 = vstv %s3211_s16 }
 0x177   :  { %3212 = sst [smem:[#allocation52_spill]] %s2259_s25  ;;  %v504_v32 = vmul.f32 %v503_v16, %v2126_v21  ;;  %v470_v52 = vadd.f32 %v469_v27, %v466_v28  ;;  %v574_v16 = vmul.f32 %v573_v7, %v1981_v36 }
 0x178   :  { %s3216_s23 = sld [smem:[#allocation11_spill]] }
 0x179   :  { %s2268_s14 = sld [smem:[#allocation2 + $0xb8]]  ;;  %v534_v22 = vstv %s3213_s20  ;;  %v505_v45 = vadd.f32 %v504_v32, %v501_v31  ;;  %v550_v32 = vstv %s2070_s6  ;;  %v575_v34 = vadd.f32 %v574_v16, %v571_v60 }
 0x17a   :  { %3214 = sst [smem:[#allocation56_spill]] %s2264_s24  ;;  %v535_v41 = vmul.f32 %v534_v22, %v1986_v38  ;;  %v657_v60 = vstv %s2210_s10 }
 0x17b   :  { %s3217_s5 = sld [smem:[#allocation21_spill]] }
 0x17c   :  { %s2273_s9 = sld [smem:[#allocation2 + $0xae]]  ;;  %v390_v25 = vstv %s3215_s18  ;;  %v536_v61 = vadd.f32 %v535_v41, %v532_v37  ;;  %v581_v41 = vstv %s2108_s8 }
 0x17d   :  { %s3218_s7 = sld [smem:[#allocation25_spill]]  ;;  %v391_v2 = vmul.f32 %v390_v25, %v2161_v49 }
 0x17e   :  { %s2278_s17 = sld [smem:[#allocation2 + $0xaf]]  ;;  %v429_v26 = vstv %s3216_s23  ;;  %v540_v13 = vadd.f32 %v539_v62, %v536_v61 }
 0x17f   :  { %s2284_s16 = sld [smem:[#allocation2 + $0xb0]]  ;;  %v430_v46 = vmul.f32 %v429_v26, %v2159_v23  ;;  %v392_v11 = vadd.f32 %v391_v2, %v388_v58  ;;  %v353_v26 = vadd.f32 %v2250_v0, %v349_v63 }
 0x180   :  { %s3220_s24 = sld [smem:[#allocation9_spill]] }
 0x181   :  { %v472_v30 = vstv %s3217_s5  ;;  %s3221_s25 = sld [smem:[#allocation13_spill]]  ;;  %v431_v3 = vadd.f32 %v430_v46, %v427_v44  ;;  %v616_v46 = vstv %s2157_s22  ;;  %v2362_v47 = vmax.f32 %v353_v26, 0.0 }
 0x182   :  { %s2288_s0 = sld [smem:[#allocation2 + $0xb1]]  ;;  %v473_v51 = vmul.f32 %v472_v30, %v2159_v23  ;;  %v547_v30 = vmul.f32 %v546_v40, %v2126_v21  ;;  %v617_v61 = vmul.f32 %v616_v46, %v1981_v36 }
 0x183   :  { %s3223_s20 = sld [smem:[#allocation17_spill]]  ;;  %v507_v35 = vstv %s3218_s7 }
 0x184   :  { %s2292_s18 = sld [smem:[#allocation2 + $0xb2]]  ;;  %v508_v57 = vmul.f32 %v507_v35, %v2137_v54  ;;  %v474_v8 = vadd.f32 %v473_v51, %v470_v52  ;;  %v578_v35 = vmul.f32 %v577_v18, %v1986_v38  ;;  %v554_v52 = vstv %s2074_s19 }
 0x185   :  { %3219 = sst [smem:[#allocation47_spill]] %s2284_s16  ;;  %v663_v18 = vstv %s2220_s15 }
 0x186   :  { %s3225_s23 = sld [smem:[#allocation27_spill]]  ;;  %v394_v48 = vstv %s3220_s24  ;;  %v509_v55 = vadd.f32 %v508_v57, %v505_v45  ;;  %v582_v45 = vmul.f32 %v581_v41, %v2119_v17 }
 0x187   :  { %s2297_s5 = sld [smem:[#allocation2 + $0xb3]]  ;;  %v433_v50 = vstv %s3221_s25  ;;  %v395_v1 = vmul.f32 %v394_v48, %v2196_v15 }
 0x188   :  { %3222 = sst [smem:[#allocation53_spill]] %s2288_s0  ;;  %v434_v33 = vmul.f32 %v433_v50, %v2161_v49  ;;  %v551_v50 = vmul.f32 %v550_v32, %v2137_v54  ;;  %v628_v32 = vstv %s2175_s26 }
 0x189   :  { %s3226_s7 = sld [smem:[#allocation37_spill]]  ;;  %v476_v53 = vstv %s3223_s20  ;;  %v396_v27 = vadd.f32 %v395_v1, %v392_v11  ;;  %v555_v1 = vmul.f32 %v554_v52, %v2139_v29 }
 0x18a   :  { %3224 = sst [smem:[#allocation57_spill]] %s2292_s18  ;;  %v477_v6 = vmul.f32 %v476_v53, %v2161_v49  ;;  %v435_v39 = vadd.f32 %v434_v33, %v431_v3  ;;  %v579_v53 = vadd.f32 %v578_v35, %v575_v34  ;;  %v614_v3 = vstv %s2152_s28 }
 0x18b   :  { %s2303_s0 = sld [smem:[#allocation2 + $0xb4]]  ;;  %v2364_v2 = vmax.f32 %v396_v27, 0.0  ;;  %v620_v33 = vstv %s2165_s13  ;;  %v618_v11 = vadd.f32 %v617_v61, %v614_v3  ;;  %v664_v35 = vmul.f32 %v663_v18, %v1986_v38 }
 0x18c   :  { %s3227_s18 = sld [smem:[#allocation15_spill]]  ;;  %v511_v59 = vstv %s3225_s23  ;;  %v478_v19 = vadd.f32 %v477_v6, %v474_v8  ;;  %v659_v6 = vstv %s2215_s21 }
 0x18d   :  { %s2307_s16 = sld [smem:[#allocation2 + $0xb5]]  ;;  %v512_v10 = vmul.f32 %v511_v59, %v2139_v29  ;;  %v660_v40 = vmul.f32 %v659_v6, %v1981_v36 }
 0x18e   :  { %s3229_s1 = sld [smem:[#allocation22_spill]] }
 0x18f   :  { %s2311_s24 = sld [smem:[#allocation2 + $0xb6]]  ;;  %v542_v4 = vstv %s3226_s7  ;;  %v513_v22 = vadd.f32 %v512_v10, %v509_v55  ;;  %v589_v10 = vstv %s2117_s27  ;;  %v661_v34 = vadd.f32 %v660_v40, %v657_v60 }
 0x190   :  { %s3231_s25 = sld [smem:[#allocation28_spill]]  ;;  %v543_v14 = vmul.f32 %v542_v4, %v2124_v20 }
 0x191   :  { %s2316_s20 = sld [smem:[#allocation2 + $0xb7]] }
 0x192   :  { %v437_v5 = vstv %s3227_s18  ;;  %s2322_s23 = sld [smem:[#allocation2 + $0xc3]]  ;;  %v544_v28 = vadd.f32 %v543_v14, %v540_v13  ;;  %v702_v13 = vstv %s2273_s9 }
 0x193   :  { %3228 = sst [smem:[#allocation59_spill]] %s2307_s16  ;;  %v438_v43 = vmul.f32 %v437_v5, %v2196_v15 }
 0x194   :  { %v480_v9 = vstv %s3229_s1  ;;  %s3233_s7 = sld [smem:[#allocation29_spill]]  ;;  %v548_v48 = vadd.f32 %v547_v30, %v544_v28  ;;  %v700_v28 = vstv %s2268_s14  ;;  %v706_v30 = vstv %s2278_s17 }
 0x195   :  { %3230 = sst [smem:[#allocation58_spill]] %s2311_s24  ;;  %v481_v56 = vmul.f32 %v480_v9, %v2196_v15  ;;  %v439_v31 = vadd.f32 %v438_v43, %v435_v39  ;;  %v583_v9 = vadd.f32 %v582_v45, %v579_v53  ;;  %v624_v43 = vstv %s2170_s12 }
 0x196   :  { %s2326_s24 = sld [smem:[#allocation2 + $0xb9]]  ;;  %v515_v12 = vstv %s3231_s25  ;;  %v552_v4 = vadd.f32 %v551_v50, %v548_v48  ;;  %v625_v27 = vmul.f32 %v624_v43, %v2119_v17  ;;  %v707_v50 = vmul.f32 %v706_v30, %v1986_v38 }
 0x197   :  { %3232 = sst [smem:[#allocation60_spill]] %s2316_s20  ;;  %v516_v24 = vmul.f32 %v515_v12, %v2159_v23  ;;  %v482_v0 = vadd.f32 %v481_v56, %v478_v19  ;;  %v2369_v51 = vmax.f32 %v439_v31, 0.0  ;;  %v621_v12 = vmul.f32 %v620_v33, %v1986_v38 }
 0x198   :  { %s2330_s18 = sld [smem:[#allocation2 + $0xba]]  ;;  %v556_v16 = vadd.f32 %v555_v1, %v552_v4  ;;  %v629_v53 = vmul.f32 %v628_v32, %v2124_v20 }
 0x199   :  { %s2335_s4 = sld [smem:[#allocation2 + $0xbb]]  ;;  %v517_v42 = vadd.f32 %v516_v24, %v513_v22  ;;  %v2381_v62 = vmax.f32 %v482_v0, 0.0  ;;  %v590_v22 = vmul.f32 %v589_v10, %v2126_v21  ;;  %v593_v24 = vstv %s2122_s3 }
 0x19a   :  { %s2340_s1 = sld [smem:[#allocation2 + $0xbc]]  ;;  %v519_v25 = vstv %s3233_s7  ;;  %v622_v26 = vadd.f32 %v621_v12, %v618_v11  ;;  %v594_v41 = vmul.f32 %v593_v24, %v2137_v54 }
 0x19b   :  { %s2344_s25 = sld [smem:[#allocation2 + $0xbd]]  ;;  %v520_v37 = vmul.f32 %v519_v25, %v2161_v49  ;;  %v703_v25 = vmul.f32 %v702_v13, %v1981_v36 }
 0x19c   :  { %s3234_s30 = sld [smem:[#allocation31_spill]]  ;;  %v626_v52 = vadd.f32 %v625_v27, %v622_v26 }
 0x19d   :  { %s2348_s29 = sld [smem:[#allocation2 + $0xbe]]  ;;  %v521_v63 = vadd.f32 %v520_v37, %v517_v42  ;;  %v667_v42 = vstv %s2224_s2  ;;  %v704_v48 = vadd.f32 %v703_v25, %v700_v28 }
 0x19e   :  { %s2352_s11 = sld [smem:[#allocation2 + $0xbf]]  ;;  %v668_v61 = vmul.f32 %v667_v42, %v2119_v17 }
 0x19f   :  { %s2356_s7 = sld [smem:[#allocation2 + $0xc0]] }
 0x1a0   :  { %s3236_s20 = sld [smem:[#allocation38_spill]] }
 0x1a1   :  { %s3237_s16 = sld [smem:[#allocation34_spill]] }
 0x1a2   :  { %v523_v44 = vstv %s3234_s30  ;;  %s2367_s6 = sld [smem:[#allocation2 + $0xc2]] }
 0x1a3   :  { %3235 = sst [smem:[#allocation61_spill]] %s2348_s29  ;;  %v524_v57 = vmul.f32 %v523_v44, %v2196_v15 }
 0x1a4   :  { %s2360_s29 = sld [smem:[#allocation2 + $0xc1]] }
 0x1a5   :  { %s3240_s8 = sld [smem:[#allocation43_spill]]  ;;  %v525_v14 = vadd.f32 %v524_v57, %v521_v63  ;;  %v745_v63 = vstv %s2326_s24 }
 0x1a6   :  { %s2373_s22 = sld [smem:[#allocation2 + $0xce]]  ;;  %v558_v58 = vstv %s3236_s20  ;;  %v746_v11 = vmul.f32 %v745_v63, %v1981_v36 }
 0x1a7   :  { %s3241_s30 = sld [smem:[#allocation49_spill]]  ;;  %v585_v59 = vstv %s3237_s16  ;;  %v559_v7 = vmul.f32 %v558_v58, %v2159_v23  ;;  %v2422_v31 = vmax.f32 %v525_v14, 0.0  ;;  %v743_v14 = vstv %s2322_s23 }
 0x1a8   :  { %3239 = sst [smem:[#allocation23_spill]] %s2367_s6  ;;  %v586_v55 = vmul.f32 %v585_v59, %v2124_v20  ;;  %v665_v59 = vadd.f32 %v664_v35, %v661_v34  ;;  %v753_v34 = vstv %s2335_s4 }
 0x1a9   :  { %s2385_s19 = sld [smem:[#allocation2 + $0xc5]]  ;;  %v560_v37 = vadd.f32 %v559_v7, %v556_v16  ;;  %v708_v7 = vadd.f32 %v707_v50, %v704_v48 }
 0x1aa   :  { %3238 = sst [smem:[#allocation20_spill]] %s2360_s29  ;;  %v587_v19 = vadd.f32 %v586_v55, %v583_v9  ;;  %v630_v9 = vadd.f32 %v629_v53, %v626_v52  ;;  %v669_v12 = vadd.f32 %v668_v61, %v665_v59  ;;  %v722_v52 = vstv %s2297_s5 }
 0x1ab   :  { %s2379_s29 = sld [smem:[#allocation2 + $0xc4]]  ;;  %v562_v5 = vstv %s3240_s8  ;;  %v757_v61 = vstv %s2340_s1 }
 0x1ac   :  { %s2390_s16 = sld [smem:[#allocation2 + $0xc6]]  ;;  %v563_v39 = vmul.f32 %v562_v5, %v2161_v49  ;;  %v591_v44 = vadd.f32 %v590_v22, %v587_v19 }
 0x1ad   :  { %v566_v8 = vstv %s3241_s30  ;;  %s2395_s28 = sld [smem:[#allocation2 + $0xc7]] }
 0x1ae   :  { %s2400_s13 = sld [smem:[#allocation2 + $0xc8]]  ;;  %v567_v56 = vmul.f32 %v566_v8, %v2196_v15  ;;  %v564_v3 = vadd.f32 %v563_v39, %v560_v37  ;;  %v595_v5 = vadd.f32 %v594_v41, %v591_v44  ;;  %v749_v39 = vstv %s2330_s18 }
 0x1af   :  { %s2405_s21 = sld [smem:[#allocation2 + $0xc9]]  ;;  %v750_v27 = vmul.f32 %v749_v39, %v1986_v38 }
 0x1b0   :  { %s2410_s27 = sld [smem:[#allocation2 + $0xca]]  ;;  %v568_v43 = vadd.f32 %v567_v56, %v564_v3  ;;  %v747_v56 = vadd.f32 %v746_v11, %v743_v14  ;;  %v761_v14 = vstv %s2344_s25 }
 0x1b1   :  { %s3242_s9 = sld [smem:[#allocation39_spill]]  ;;  %v788_v48 = vstv %s2379_s29 }
 0x1b2   :  { %s2415_s12 = sld [smem:[#allocation2 + $0xcb]]  ;;  %v2484_v35 = vmax.f32 %v568_v43, 0.0  ;;  %v751_v53 = vadd.f32 %v750_v27, %v747_v56  ;;  %v762_v56 = vmul.f32 %v761_v14, %v2126_v21 }
 0x1b3   :  { %s3244_s20 = sld [smem:[#allocation42_spill]] }
 0x1b4   :  { %s2420_s10 = sld [smem:[#allocation2 + $0xcc]] }
 0x1b5   :  { %s3246_s15 = sld [smem:[#allocation48_spill]] }
 0x1b6   :  { %s3247_s3 = sld [smem:[#allocation47_spill]] }
 0x1b7   :  { %s2426_s8 = sld [smem:[#allocation2 + $0xcd]]  ;;  %v597_v0 = vstv %s3242_s9 }
 0x1b8   :  { %3243 = sst [smem:[#allocation65_spill]] %s2415_s12  ;;  %v598_v58 = vmul.f32 %v597_v0, %v2139_v29 }
 0x1b9   :  { %s2431_s14 = sld [smem:[#allocation2 + $0xd9]]  ;;  %v601_v46 = vstv %s3244_s20 }
 0x1ba   :  { %3245 = sst [smem:[#allocation5_spill]] %s2420_s10  ;;  %v602_v33 = vmul.f32 %v601_v46, %v2159_v23  ;;  %v599_v28 = vadd.f32 %v598_v58, %v595_v5 }
 0x1bb   :  { %s3249_s17 = sld [smem:[#allocation44_spill]]  ;;  %v632_v45 = vstv %s3246_s15 }
 0x1bc   :  { %s3250_s26 = sld [smem:[#allocation36_spill]]  ;;  %v710_v57 = vstv %s3247_s3  ;;  %v633_v6 = vmul.f32 %v632_v45, %v2126_v21  ;;  %v754_v45 = vmul.f32 %v753_v34, %v2119_v17 }
 0x1bd   :  { %3248 = sst [smem:[#allocation7_spill]] %s2426_s8  ;;  %v711_v8 = vmul.f32 %v710_v57, %v2119_v17  ;;  %v603_v57 = vadd.f32 %v602_v33, %v599_v28  ;;  %v723_v33 = vmul.f32 %v722_v52, %v2137_v54 }
 0x1be   :  { %s2435_s30 = sld [smem:[#allocation2 + $0xcf]]  ;;  %v634_v25 = vadd.f32 %v633_v6, %v630_v9  ;;  %v786_v6 = vstv %s2373_s22  ;;  %v726_v9 = vstv %s2303_s0 }
 0x1bf   :  { %s2440_s8 = sld [smem:[#allocation2 + $0xd0]]  ;;  %v712_v22 = vadd.f32 %v711_v8, %v708_v7  ;;  %v792_v7 = vstv %s2385_s19 }
 0x1c0   :  { %s3251_s2 = sld [smem:[#allocation50_spill]] }
 0x1c1   :  { %s3252_s9 = sld [smem:[#allocation53_spill]]  ;;  %v605_v4 = vstv %s3249_s17 }
 0x1c2   :  { %s2445_s20 = sld [smem:[#allocation2 + $0xd1]]  ;;  %v671_v1 = vstv %s3250_s26  ;;  %v606_v40 = vmul.f32 %v605_v4, %v2161_v49 }
 0x1c3   :  { %s2450_s15 = sld [smem:[#allocation2 + $0xd2]]  ;;  %v672_v13 = vmul.f32 %v671_v1, %v2124_v20  ;;  %v789_v1 = vmul.f32 %v788_v48, %v1981_v36  ;;  %v800_v48 = vstv %s2395_s28 }
 0x1c4   :  { %s3253_s3 = sld [smem:[#allocation30_spill]]  ;;  %v607_v11 = vadd.f32 %v606_v40, %v603_v57  ;;  %v727_v40 = vmul.f32 %v726_v9, %v2139_v29 }
 0x1c5   :  { %s3254_s10 = sld [smem:[#allocation54_spill]]  ;;  %v673_v30 = vadd.f32 %v672_v13, %v669_v12 }
 0x1c6   :  { %s2454_s24 = sld [smem:[#allocation2 + $0xd3]]  ;;  %v636_v55 = vstv %s3251_s2 }
 0x1c7   :  { %s3255_s12 = sld [smem:[#allocation35_spill]]  ;;  %v714_v10 = vstv %s3252_s9  ;;  %v637_v18 = vmul.f32 %v636_v55, %v2137_v54  ;;  %v755_v55 = vadd.f32 %v754_v45, %v751_v53  ;;  %v831_v45 = vstv %s2435_s30 }
 0x1c8   :  { %s2459_s17 = sld [smem:[#allocation2 + $0xd4]]  ;;  %v715_v24 = vmul.f32 %v714_v10, %v2124_v20  ;;  %v758_v10 = vmul.f32 %v757_v61, %v2124_v20  ;;  %v769_v61 = vstv %s2352_s11 }
 0x1c9   :  { %s3257_s26 = sld [smem:[#allocation57_spill]]  ;;  %v638_v50 = vadd.f32 %v637_v18, %v634_v25  ;;  %v770_v9 = vmul.f32 %v769_v61, %v2139_v29 }
 0x1ca   :  { %s2464_s6 = sld [smem:[#allocation2 + $0xd5]]  ;;  %v609_v16 = vstv %s3253_s3  ;;  %v716_v44 = vadd.f32 %v715_v24, %v712_v22  ;;  %v796_v22 = vstv %s2390_s16 }
 0x1cb   :  { %v675_v60 = vstv %s3254_s10  ;;  %s2469_s2 = sld [smem:[#allocation2 + $0xd6]]  ;;  %v610_v37 = vmul.f32 %v609_v16, %v2196_v15  ;;  %v790_v16 = vadd.f32 %v789_v1, %v786_v6  ;;  %v804_v6 = vstv %s2400_s13 }
 0x1cc   :  { %s3259_s9 = sld [smem:[#allocation55_spill]]  ;;  %v676_v32 = vmul.f32 %v675_v60, %v2126_v21  ;;  %v793_v60 = vmul.f32 %v792_v7, %v1986_v38  ;;  %v832_v7 = vmul.f32 %v831_v45, %v1981_v36 }
 0x1cd   :  { %v640_v19 = vstv %s3255_s12  ;;  %s3261_s23 = sld [smem:[#allocation40_spill]]  ;;  %v2537_v27 = vadd.f32 %v610_v37, %v607_v11 }
 0x1ce   :  { %3256 = sst [smem:[#allocation18_spill]] %s2459_s17  ;;  %v641_v41 = vmul.f32 %v640_v19, %v2139_v29  ;;  %v677_v58 = vadd.f32 %v676_v32, %v673_v30 }
 0x1cf   :  { %s2474_s17 = sld [smem:[#allocation2 + $0xd7]]  ;;  %v718_v26 = vstv %s3257_s26 }
 0x1d0   :  { %s2478_s18 = sld [smem:[#allocation2 + $0xd8]]  ;;  %v719_v46 = vmul.f32 %v718_v26, %v2126_v21  ;;  %v642_v8 = vadd.f32 %v641_v41, %v638_v50  ;;  %v759_v26 = vadd.f32 %v758_v10, %v755_v55  ;;  %v829_v55 = vstv %s2431_s14 }
 0x1d1   :  { %3258 = sst [smem:[#allocation26_spill]] %s2469_s2  ;;  %v835_v10 = vstv %s2440_s8 }
 0x1d2   :  { %s2482_s12 = sld [smem:[#allocation2 + $0xe4]]  ;;  %v679_v0 = vstv %s3259_s9  ;;  %v720_v5 = vadd.f32 %v719_v46, %v716_v44  ;;  %v763_v52 = vadd.f32 %v762_v56, %v759_v26  ;;  %v839_v56 = vstv %s2445_s20 }
 0x1d3   :  { %s2489_s10 = sld [smem:[#allocation2 + $0xda]]  ;;  %v644_v42 = vstv %s3261_s23  ;;  %v680_v59 = vmul.f32 %v679_v0, %v2137_v54  ;;  %v794_v0 = vadd.f32 %v793_v60, %v790_v16 }
 0x1d4   :  { %s3263_s3 = sld [smem:[#allocation45_spill]]  ;;  %v645_v63 = vmul.f32 %v644_v42, %v2159_v23  ;;  %v724_v19 = vadd.f32 %v723_v33, %v720_v5  ;;  %v797_v42 = vmul.f32 %v796_v22, %v2119_v17  ;;  %v836_v22 = vmul.f32 %v835_v10, %v1986_v38 }
 0x1d5   :  { %3260 = sst [smem:[#allocation62_spill]] %s2474_s17  ;;  %v681_v12 = vadd.f32 %v680_v59, %v677_v58  ;;  %v847_v10 = vstv %s2454_s24 }
 0x1d6   :  { %3262 = sst [smem:[#allocation66_spill]] %s2478_s18  ;;  %v646_v24 = vadd.f32 %v645_v63, %v642_v8  ;;  %v728_v44 = vadd.f32 %v727_v40, %v724_v19  ;;  %v808_v19 = vstv %s2405_s21  ;;  %v833_v40 = vadd.f32 %v832_v7, %v829_v55 }
 0x1d7   :  { %s3264_s26 = sld [smem:[#allocation41_spill]] }
 0x1d8   :  { %s2494_s4 = sld [smem:[#allocation2 + $0xdb]]  ;;  %v872_v16 = vstv %s2482_s12 }
 0x1d9   :  { %s2498_s18 = sld [smem:[#allocation2 + $0xdc]]  ;;  %v874_v1 = vstv %s2489_s10 }
 0x1da   :  { %s2502_s9 = sld [smem:[#allocation2 + $0xdd]]  ;;  %v648_v3 = vstv %s3263_s3  ;;  %v875_v14 = vmul.f32 %v874_v1, %v1981_v36 }
 0x1db   :  { %s2508_s5 = sld [smem:[#allocation2 + $0xde]]  ;;  %v649_v39 = vmul.f32 %v648_v3, %v2161_v49  ;;  %v798_v3 = vadd.f32 %v797_v42, %v794_v0 }
 0x1dc   :  { %s3265_s29 = sld [smem:[#allocation46_spill]] }
 0x1dd   :  { %v683_v4 = vstv %s3264_s26  ;;  %s2513_s23 = sld [smem:[#allocation2 + $0xdf]]  ;;  %v650_v50 = vadd.f32 %v649_v39, %v646_v24 }
 0x1de   :  { %s3266_s1 = sld [smem:[#allocation51_spill]]  ;;  %v684_v13 = vmul.f32 %v683_v4, %v2139_v29  ;;  %v801_v4 = vmul.f32 %v800_v48, %v2124_v20  ;;  %v878_v60 = vstv %s2494_s4  ;;  %v812_v48 = vstv %s2410_s27 }
 0x1df   :  { %s2517_s3 = sld [smem:[#allocation2 + $0xe0]] }
 0x1e0   :  { %s3267_s26 = sld [smem:[#allocation59_spill]]  ;;  %v685_v28 = vadd.f32 %v684_v13, %v681_v12  ;;  %v773_v13 = vstv %s2356_s7  ;;  %v802_v39 = vadd.f32 %v801_v4, %v798_v3  ;;  %v813_v4 = vmul.f32 %v812_v48, %v2139_v29 }
 0x1e1   :  { %s2521_s17 = sld [smem:[#allocation2 + $0xe1]]  ;;  %v774_v26 = vmul.f32 %v773_v13, %v2159_v23  ;;  %v886_v1 = vstv %s2502_s9 }
 0x1e2   :  { %v687_v43 = vstv %s3265_s29  ;;  %s3268_s0 = sld [smem:[#allocation61_spill]]  ;;  %v887_v13 = vmul.f32 %v886_v1, %v2124_v20 }
 0x1e3   :  { %s2526_s22 = sld [smem:[#allocation2 + $0xe2]]  ;;  %v688_v30 = vmul.f32 %v687_v43, %v2159_v23  ;;  %v805_v43 = vmul.f32 %v804_v6, %v2126_v21 }
 0x1e4   :  { %v652_v18 = vstv %s3266_s1  ;;  %s3269_s19 = sld [smem:[#allocation52_spill]] }
 0x1e5   :  { %s2531_s2 = sld [smem:[#allocation2 + $0xe3]]  ;;  %v653_v34 = vmul.f32 %v652_v18, %v2196_v15  ;;  %v689_v57 = vadd.f32 %v688_v30, %v685_v28  ;;  %v806_v42 = vadd.f32 %v805_v43, %v802_v39 }
 0x1e6   :  { %v730_v25 = vstv %s3267_s26  ;;  %s3271_s25 = sld [smem:[#allocation58_spill]] }
 0x1e7   :  { %s2535_s29 = sld [smem:[#allocation2 + $0xef]]  ;;  %v731_v37 = vmul.f32 %v730_v25, %v2159_v23  ;;  %v654_v28 = vadd.f32 %v653_v34, %v650_v50  ;;  %v837_v34 = vadd.f32 %v836_v22, %v833_v40  ;;  %v840_v50 = vmul.f32 %v839_v56, %v2119_v17 }
 0x1e8   :  { %v765_v32 = vstv %s3268_s0  ;;  %s2541_s1 = sld [smem:[#allocation2 + $0xe5]] }
 0x1e9   :  { %s3272_s16 = sld [smem:[#allocation56_spill]]  ;;  %v766_v53 = vmul.f32 %v765_v32, %v2137_v54  ;;  %v732_v5 = vadd.f32 %v731_v37, %v728_v44  ;;  %v876_v32 = vadd.f32 %v875_v14, %v872_v16  ;;  %v809_v44 = vmul.f32 %v808_v19, %v2137_v54 }
 0x1ea   :  { %v691_v41 = vstv %s3269_s19  ;;  %s2546_s26 = sld [smem:[#allocation2 + $0xe6]]  ;;  %v882_v37 = vstv %s2498_s18  ;;  %v890_v16 = vstv %s2508_s5  ;;  %v848_v19 = vmul.f32 %v847_v10, %v2126_v21 }
 0x1eb   :  { %3270 = sst [smem:[#allocation63_spill]] %s2531_s2  ;;  %v692_v58 = vmul.f32 %v691_v41, %v2161_v49  ;;  %v767_v8 = vadd.f32 %v766_v53, %v763_v52  ;;  %v879_v41 = vmul.f32 %v878_v60, %v1986_v38  ;;  %v883_v61 = vmul.f32 %v882_v37, %v2119_v17 }
 0x1ec   :  { %v734_v46 = vstv %s3271_s25  ;;  %s2551_s2 = sld [smem:[#allocation2 + $0xe7]]  ;;  %v810_v3 = vadd.f32 %v809_v44, %v806_v42 }
 0x1ed   :  { %s3273_s0 = sld [smem:[#allocation60_spill]]  ;;  %v735_v63 = vmul.f32 %v734_v46, %v2161_v49  ;;  %v693_v11 = vadd.f32 %v692_v58, %v689_v57  ;;  %v771_v25 = vadd.f32 %v770_v9, %v767_v8  ;;  %v2605_v46 = vmax.f32 %v2537_v27, 0.0 }
 0x1ee   :  { %s2555_s19 = sld [smem:[#allocation2 + $0xe8]]  ;;  %v843_v57 = vstv %s2450_s15  ;;  %v2615_v58 = vmax.f32 %v654_v28, 0.0  ;;  %v917_v7 = vstv %s2541_s1  ;;  %v814_v39 = vadd.f32 %v813_v4, %v810_v3 }
 0x1ef   :  { %v695_v59 = vstv %s3272_s16  ;;  %s2560_s25 = sld [smem:[#allocation2 + $0xe9]]  ;;  %v736_v24 = vadd.f32 %v735_v63, %v732_v5  ;;  %v775_v53 = vadd.f32 %v774_v26, %v771_v25  ;;  %v844_v6 = vmul.f32 %v843_v57, %v2124_v20 }
 0x1f0   :  { %s2565_s28 = sld [smem:[#allocation2 + $0xea]]  ;;  %v696_v12 = vmul.f32 %v695_v59, %v2196_v15  ;;  %v880_v59 = vadd.f32 %v879_v41, %v876_v32  ;;  %v918_v60 = vmul.f32 %v917_v7, %v1981_v36  ;;  %v915_v40 = vstv %s2535_s29 }
 0x1f1   :  { %s2570_s30 = sld [smem:[#allocation2 + $0xeb]]  ;;  %v921_v22 = vstv %s2546_s26  ;;  %v891_v28 = vmul.f32 %v890_v16, %v2126_v21 }
 0x1f2   :  { %s2575_s11 = sld [smem:[#allocation2 + $0xec]]  ;;  %v697_v0 = vadd.f32 %v696_v12, %v693_v11  ;;  %v884_v12 = vadd.f32 %v883_v61, %v880_v59  ;;  %v919_v42 = vadd.f32 %v918_v60, %v915_v40  ;;  %v922_v44 = vmul.f32 %v921_v22, %v1986_v38 }
 0x1f3   :  { %v738_v33 = vstv %s3273_s0  ;;  %s2580_s13 = sld [smem:[#allocation2 + $0xed]] }
 0x1f4   :  { %s3274_s10 = sld [smem:[#allocation20_spill]]  ;;  %v739_v18 = vmul.f32 %v738_v33, %v2196_v15  ;;  %v2621_v63 = vmax.f32 %v697_v0, 0.0  ;;  %v841_v33 = vadd.f32 %v840_v50, %v837_v34  ;;  %v888_v36 = vadd.f32 %v887_v13, %v884_v12 }
 0x1f5   :  { %s2585_s16 = sld [smem:[#allocation2 + $0xee]]  ;;  %v894_v0 = vstv %s2513_s23  ;;  %v855_v34 = vstv %s2464_s6  ;;  %v925_v50 = vstv %s2551_s2  ;;  %v923_v1 = vadd.f32 %v922_v44, %v919_v42 }
 0x1f6   :  { %s2590_s7 = sld [smem:[#allocation2 + $0xff]]  ;;  %v740_v52 = vadd.f32 %v739_v18, %v736_v24  ;;  %v845_v18 = vadd.f32 %v844_v6, %v841_v33  ;;  %v895_v59 = vmul.f32 %v894_v0, %v2137_v54  ;;  %v856_v3 = vmul.f32 %v855_v34, %v2139_v29 }
 0x1f7   :  { %s2594_s8 = sld [smem:[#allocation2 + $0xf0]]  ;;  %v937_v34 = vstv %s2565_s28 }
 0x1f8   :  { %s2598_s21 = sld [smem:[#allocation2 + $0xf1]]  ;;  %v2632_v8 = vmax.f32 %v740_v52, 0.0  ;;  %v849_v37 = vadd.f32 %v848_v19, %v845_v18  ;;  %v933_v19 = vstv %s2560_s25 }
 0x1f9   :  { %s3275_s14 = sld [smem:[#allocation23_spill]]  ;;  %v934_v42 = vmul.f32 %v933_v19, %v2126_v21 }
 0x1fa   :  { %v777_v30 = vstv %s3274_s10  ;;  %s2602_s12 = sld [smem:[#allocation2 + $0xf2]] }
 0x1fb   :  { %s2609_s20 = sld [smem:[#allocation2 + $0xf3]]  ;;  %v778_v45 = vmul.f32 %v777_v30, %v2161_v49 }
 0x1fc   :  { %s3276_s4 = sld [smem:[#allocation65_spill]]  ;;  %v958_v30 = vstv %s2590_s7 }
 0x1fd   :  { %s2613_s18 = sld [smem:[#allocation2 + $0xf4]]  ;;  %v779_v9 = vadd.f32 %v778_v45, %v775_v53  ;;  %v960_v14 = vstv %s2594_s8  ;;  %v898_v53 = vstv %s2517_s3 }
 0x1fe   :  { %s2619_s27 = sld [smem:[#allocation2 + $0xf5]]  ;;  %v961_v56 = vmul.f32 %v960_v14, %v2362_v47  ;;  %v964_v32 = vstv %s2598_s21  ;;  %v899_v7 = vmul.f32 %v898_v53, %v2139_v29 }
 0x1ff   :  { %v781_v27 = vstv %s3275_s14  ;;  %s3277_s0 = sld [smem:[#allocation5_spill]]  ;;  %v965_v57 = vmul.f32 %v964_v32, %v2364_v2 }
 0x200   :  { %s2625_s15 = sld [smem:[#allocation2 + $0xf6]]  ;;  %v782_v55 = vmul.f32 %v781_v27, %v2196_v15  ;;  %v962_v45 = vadd.f32 %v961_v56, %v958_v30  ;;  %v892_v27 = vadd.f32 %v891_v28, %v888_v36  ;;  %v968_v61 = vstv %s2602_s12 }
 0x201   :  { %s2630_s10 = sld [smem:[#allocation2 + $0xf7]]  ;;  %v969_v10 = vmul.f32 %v968_v61, %v2369_v51  ;;  %v972_v13 = vstv %s2609_s20 }
 0x202   :  { %v816_v5 = vstv %s3276_s4  ;;  %s2636_s14 = sld [smem:[#allocation2 + $0xf8]]  ;;  %v2673_v52 = vadd.f32 %v782_v55, %v779_v9  ;;  %v929_v9 = vstv %s2555_s19  ;;  %v966_v55 = vadd.f32 %v965_v57, %v962_v45 }
 0x203   :  { %s3278_s9 = sld [smem:[#allocation7_spill]]  ;;  %v817_v43 = vmul.f32 %v816_v5, %v2159_v23  ;;  %v926_v5 = vmul.f32 %v925_v50, %v2119_v17  ;;  %v896_v12 = vadd.f32 %v895_v59, %v892_v27  ;;  %v930_v16 = vmul.f32 %v929_v9, %v2124_v20 }
 0x204   :  { %s3279_s4 = sld [smem:[#allocation18_spill]]  ;;  %v970_v56 = vadd.f32 %v969_v10, %v966_v55  ;;  %v973_v20 = vmul.f32 %v972_v13, %v2381_v62  ;;  %v976_v28 = vstv %s2613_s18  ;;  %v906_v45 = vstv %s2526_s22 }
 0x205   :  { %v820_v11 = vstv %s3277_s0  ;;  %s2641_s1 = sld [smem:[#allocation2 + $0xf9]]  ;;  %v818_v41 = vadd.f32 %v817_v43, %v814_v39  ;;  %v927_v43 = vadd.f32 %v926_v5, %v923_v1  ;;  %v977_v27 = vmul.f32 %v976_v28, %v2422_v31 }
 0x206   :  { %s2646_s24 = sld [smem:[#allocation2 + $0xfa]]  ;;  %v821_v24 = vmul.f32 %v820_v11, %v2161_v49  ;;  %v974_v57 = vadd.f32 %v973_v20, %v970_v56  ;;  %v980_v59 = vstv %s2619_s27  ;;  %v938_v5 = vmul.f32 %v937_v34, %v2137_v54 }
 0x207   :  { %s2651_s0 = sld [smem:[#allocation2 + $0xfb]]  ;;  %v931_v0 = vadd.f32 %v930_v16, %v927_v43  ;;  %v907_v9 = vmul.f32 %v906_v45, %v2161_v49  ;;  %v941_v10 = vstv %s2570_s30  ;;  %v984_v13 = vstv %s2625_s15 }
 0x208   :  { %s2657_s5 = sld [smem:[#allocation2 + $0xfc]]  ;;  %v2691_v33 = vadd.f32 %v821_v24, %v818_v41 }
 0x209   :  { %v824_v25 = vstv %s3278_s9  ;;  %s2662_s29 = sld [smem:[#allocation2 + $0x10f]]  ;;  %v935_v1 = vadd.f32 %v934_v42, %v931_v0  ;;  %v949_v0 = vstv %s2580_s13 }
 0x20a   :  { %v851_v26 = vstv %s3279_s4  ;;  %s2666_s26 = sld [smem:[#allocation2 + $0x100]]  ;;  %v2680_v38 = vmul.f32 %v824_v25, %v2196_v15 }
 0x20b   :  { %s3280_s8 = sld [smem:[#allocation26_spill]]  ;;  %v852_v48 = vmul.f32 %v851_v26, %v2137_v54  ;;  %v902_v26 = vstv %s2521_s17 }
 0x20c   :  { %s2671_s9 = sld [smem:[#allocation2 + $0x101]]  ;;  %v2761_v54 = vadd.f32 %v2680_v38, %v2691_v33 }
 0x20d   :  { %s2677_s23 = sld [smem:[#allocation2 + $0x102]]  ;;  %v853_v6 = vadd.f32 %v852_v48, %v849_v37  ;;  %v900_v37 = vadd.f32 %v899_v7, %v896_v12  ;;  %v903_v48 = vmul.f32 %v902_v26, %v2159_v23  ;;  %v981_v12 = vmul.f32 %v980_v59, %v2484_v35 }
 0x20e   :  { %s2684_s6 = sld [smem:[#allocation2 + $0x103]] }
 0x20f   :  { %s2689_s2 = sld [smem:[#allocation2 + $0x104]]  ;;  %v1021_v11 = vstv %s2662_s29  ;;  %v857_v41 = vadd.f32 %v856_v3, %v853_v6  ;;  %v904_v7 = vadd.f32 %v903_v48, %v900_v37 }
 0x210   :  { %s2695_s3 = sld [smem:[#allocation2 + $0xfd]]  ;;  %v1023_v17 = vstv %s2666_s26 }
 0x211   :  { %v859_v4 = vstv %s3280_s8  ;;  %s2698_s7 = sld [smem:[#allocation2 + $0xfe]]  ;;  %v1024_v14 = vmul.f32 %v1023_v17, %v2362_v47  ;;  %v978_v17 = vadd.f32 %v977_v27, %v974_v57  ;;  %v908_v38 = vadd.f32 %v907_v9, %v904_v7 }
 0x212   :  { %v1027_v39 = vstv %s2671_s9  ;;  %s2705_s21 = sld [smem:[#allocation2 + $0x105]]  ;;  %v860_v25 = vmul.f32 %v859_v4, %v2159_v23 }
 0x213   :  { %s3281_s19 = sld [smem:[#allocation62_spill]]  ;;  %v1028_v60 = vmul.f32 %v1027_v39, %v2364_v2  ;;  %v1031_v18 = vstv %s2677_s23  ;;  %v1025_v40 = vadd.f32 %v1024_v14, %v1021_v11  ;;  %v945_v11 = vstv %s2575_s11 }
 0x214   :  { %s2710_s12 = sld [smem:[#allocation2 + $0x106]]  ;;  %v1032_v22 = vmul.f32 %v1031_v18, %v2369_v51  ;;  %v1035_v24 = vstv %s2684_s6  ;;  %v861_v4 = vadd.f32 %v860_v25, %v857_v41  ;;  %v942_v18 = vmul.f32 %v941_v10, %v2139_v29 }
 0x215   :  { %s2715_s20 = sld [smem:[#allocation2 + $0x107]]  ;;  %v1029_v30 = vadd.f32 %v1028_v60, %v1025_v40  ;;  %v1036_v32 = vmul.f32 %v1035_v24, %v2381_v62  ;;  %v1039_v44 = vstv %s2689_s2  ;;  %v939_v60 = vadd.f32 %v938_v5, %v935_v1 }
 0x216   :  { %s2720_s4 = sld [smem:[#allocation2 + $0x108]]  ;;  %v1040_v3 = vmul.f32 %v1039_v44, %v2422_v31  ;;  %v946_v40 = vmul.f32 %v945_v11, %v2159_v23  ;;  %v982_v24 = vadd.f32 %v981_v12, %v978_v17  ;;  %v988_v25 = vstv %s2630_s10 }
 0x217   :  { %s2725_s25 = sld [smem:[#allocation2 + $0x109]]  ;;  %v1033_v50 = vadd.f32 %v1032_v22, %v1029_v30  ;;  %v985_v22 = vmul.f32 %v984_v13, %v2605_v46  ;;  %v943_v28 = vadd.f32 %v942_v18, %v939_v60  ;;  %v989_v34 = vmul.f32 %v988_v25, %v2615_v58 }
 0x218   :  { %s3282_s29 = sld [smem:[#allocation66_spill]]  ;;  %v1043_v6 = vstv %s2705_s21  ;;  %v953_v5 = vstv %s2585_s16  ;;  %v996_v10 = vstv %s2641_s1  ;;  %v2828_v60 = vmax.f32 %v2673_v52, 0.0 }
 0x219   :  { %v863_v36 = vstv %s3281_s19  ;;  %s2729_s17 = sld [smem:[#allocation2 + $0x10a]]  ;;  %v1037_v61 = vadd.f32 %v1036_v32, %v1033_v50  ;;  %v1044_v43 = vmul.f32 %v1043_v6, %v2484_v35  ;;  %v986_v48 = vadd.f32 %v985_v22, %v982_v24 }
 0x21a   :  { %s2733_s18 = sld [smem:[#allocation2 + $0x10b]]  ;;  %v864_v53 = vmul.f32 %v863_v36, %v2161_v49  ;;  %v1047_v19 = vstv %s2710_s12  ;;  %v992_v50 = vstv %s2636_s14  ;;  %v947_v59 = vadd.f32 %v946_v40, %v943_v28 }
 0x21b   :  { %s3283_s26 = sld [smem:[#allocation63_spill]]  ;;  %v1041_v39 = vadd.f32 %v1040_v3, %v1037_v61  ;;  %v1048_v20 = vmul.f32 %v1047_v19, %v2605_v46  ;;  %v1051_v30 = vstv %s2715_s20  ;;  %v950_v61 = vmul.f32 %v949_v0, %v2161_v49 }
 0x21c   :  { %s2738_s8 = sld [smem:[#allocation2 + $0x10c]]  ;;  %v865_v16 = vadd.f32 %v864_v53, %v861_v4  ;;  %v1052_v57 = vmul.f32 %v1051_v30, %v2615_v58  ;;  %v1055_v3 = vstv %s2720_s4  ;;  %v990_v9 = vadd.f32 %v989_v34, %v986_v48 }
 0x21d   :  { %s2743_s28 = sld [smem:[#allocation2 + $0x11f]]  ;;  %v1045_v56 = vadd.f32 %v1044_v43, %v1041_v39  ;;  %v1056_v17 = vmul.f32 %v1055_v3, %v2621_v63  ;;  %v951_v39 = vadd.f32 %v950_v61, %v947_v59  ;;  %v954_v43 = vmul.f32 %v953_v5, %v2196_v15 }
 0x21e   :  { %v867_v21 = vstv %s3282_s29  ;;  %s2747_s22 = sld [smem:[#allocation2 + $0x110]]  ;;  %v2835_v22 = vmax.f32 %v2761_v54, 0.0 }
 0x21f   :  { %s2752_s27 = sld [smem:[#allocation2 + $0x111]]  ;;  %v868_v14 = vmul.f32 %v867_v21, %v2196_v15  ;;  %v1049_v45 = vadd.f32 %v1048_v20, %v1045_v56  ;;  %v1063_v25 = vstv %s2729_s17  ;;  %v955_v56 = vadd.f32 %v954_v43, %v951_v39 }
 0x220   :  { %s2757_s9 = sld [smem:[#allocation2 + $0x112]] }
 0x221   :  { %v910_v55 = vstv %s3283_s26  ;;  %s2765_s30 = sld [smem:[#allocation2 + $0x113]]  ;;  %v869_v1 = vadd.f32 %v868_v14, %v865_v16  ;;  %v1053_v49 = vadd.f32 %v1052_v57, %v1049_v45  ;;  %v1059_v16 = vstv %s2725_s25 }
 0x222   :  { %s2769_s11 = sld [smem:[#allocation2 + $0x114]]  ;;  %v911_v33 = vmul.f32 %v910_v55, %v2196_v15  ;;  %v993_v55 = vmul.f32 %v992_v50, %v2621_v63  ;;  %v1000_v15 = vstv %s2646_s24  ;;  %v1060_v52 = vmul.f32 %v1059_v16, %v2632_v8 }
 0x223   :  { %s2774_s15 = sld [smem:[#allocation2 + $0x115]]  ;;  %v1084_v26 = vstv %s2743_s28  ;;  %v1057_v24 = vadd.f32 %v1056_v17, %v1053_v49 }
 0x224   :  { %v1086_v29 = vstv %s2747_s22  ;;  %s2779_s23 = sld [smem:[#allocation2 + $0x116]]  ;;  %v912_v14 = vadd.f32 %v911_v33, %v908_v38  ;;  %v994_v38 = vadd.f32 %v993_v55, %v990_v9  ;;  %v997_v33 = vmul.f32 %v996_v10, %v2632_v8 }
 0x225   :  { %s2782_s6 = sld [smem:[#allocation2 + $0x10d]]  ;;  %v1087_v23 = vmul.f32 %v1086_v29, %v2362_v47  ;;  %v1090_v36 = vstv %s2752_s27  ;;  %v2845_v29 = vmax.f32 %v869_v1, 0.0  ;;  %v1008_v1 = vstv %s2657_s5 }
 0x226   :  { %s2787_s2 = sld [smem:[#allocation2 + $0x10e]]  ;;  %v1091_v32 = vmul.f32 %v1090_v36, %v2364_v2  ;;  %v1094_v41 = vstv %s2757_s9  ;;  %v2847_v54 = vmax.f32 %v912_v14, 0.0  ;;  %v1004_v36 = vstv %s2651_s0 }
 0x227   :  { %v1088_v42 = vadd.f32 %v1087_v23, %v1084_v26  ;;  %v1095_v44 = vmul.f32 %v1094_v41, %v2369_v51  ;;  %v1098_v37 = vstv %s2765_s30  ;;  %s2794_s10 = sld [smem:[#allocation2 + $0x117]]  ;;  %v1001_v23 = vmul.f32 %v1000_v15, %v2828_v60 }
 0x228   :  { %v1102_v53 = vstv %s2769_s11  ;;  %s2799_s21 = sld [smem:[#allocation2 + $0x118]]  ;;  %v1099_v21 = vmul.f32 %v1098_v37, %v2381_v62  ;;  %v1064_v41 = vmul.f32 %v1063_v25, %v2828_v60  ;;  %v1067_v37 = vstv %s2733_s18 }
 0x229   :  { %v1092_v27 = vadd.f32 %v1091_v32, %v1088_v42  ;;  %s2803_s13 = sld [smem:[#allocation2 + $0x119]]  ;;  %v1106_v4 = vstv %s2774_s15  ;;  %v1103_v7 = vmul.f32 %v1102_v53, %v2422_v31  ;;  %v998_v32 = vadd.f32 %v997_v33, %v994_v38 }
 0x22a   :  { %s2808_s19 = sld [smem:[#allocation2 + $0x11a]]  ;;  %v1110_v11 = vstv %s2779_s23  ;;  %v1107_v13 = vmul.f32 %v1106_v4, %v2484_v35  ;;  %v1005_v4 = vmul.f32 %v1004_v36, %v2835_v22  ;;  %v1009_v16 = vmul.f32 %v1008_v1, %v2845_v29 }
 0x22b   :  { %v1096_v6 = vadd.f32 %v1095_v44, %v1092_v27  ;;  %s2812_s14 = sld [smem:[#allocation2 + $0x11b]]  ;;  %v1111_v19 = vmul.f32 %v1110_v11, %v2605_v46  ;;  %v1061_v44 = vadd.f32 %v1060_v52, %v1057_v24  ;;  %v1002_v3 = vadd.f32 %v1001_v23, %v998_v32 }
 0x22c   :  { %s2817_s12 = sld [smem:[#allocation2 + $0x11c]]  ;;  %v1075_v38 = vstv %s2782_s6 }
 0x22d   :  { %v1100_v12 = vadd.f32 %v1099_v21, %v1096_v6  ;;  %s2821_s16 = sld [smem:[#allocation2 + $0x12f]]  ;;  %v1114_v40 = vstv %s2794_s10  ;;  %v1068_v6 = vmul.f32 %v1067_v37, %v2835_v22  ;;  %v1065_v10 = vadd.f32 %v1064_v41, %v1061_v44 }
 0x22e   :  { %s2825_s1 = sld [smem:[#allocation2 + $0x120]]  ;;  %v1115_v20 = vmul.f32 %v1114_v40, %v2615_v58  ;;  %v1118_v30 = vstv %s2799_s21  ;;  %v1006_v43 = vadd.f32 %v1005_v4, %v1002_v3 }
 0x22f   :  { %v1104_v18 = vadd.f32 %v1103_v7, %v1100_v12  ;;  %s2832_s20 = sld [smem:[#allocation2 + $0x121]]  ;;  %v1119_v53 = vmul.f32 %v1118_v30, %v2621_v63  ;;  %v1122_v27 = vstv %s2803_s13  ;;  %v1071_v7 = vstv %s2738_s8 }
 0x230   :  { %s2839_s4 = sld [smem:[#allocation2 + $0x122]]  ;;  %v1123_v49 = vmul.f32 %v1122_v27, %v2632_v8  ;;  %v2891_v12 = vmax.f32 %v955_v56, 0.0  ;;  %v1072_v40 = vmul.f32 %v1071_v7, %v2845_v29  ;;  %v1069_v24 = vadd.f32 %v1068_v6, %v1065_v10 }
 0x231   :  { %v1108_v26 = vadd.f32 %v1107_v13, %v1104_v18  ;;  %s2843_s25 = sld [smem:[#allocation2 + $0x123]]  ;;  %v1126_v13 = vstv %s2808_s19  ;;  %v1012_v18 = vstv %s2695_s3  ;;  %v1016_v30 = vstv %s2698_s7 }
 0x232   :  { %s2850_s24 = sld [smem:[#allocation2 + $0x124]]  ;;  %v1127_v25 = vmul.f32 %v1126_v13, %v2828_v60  ;;  %v1013_v56 = vmul.f32 %v1012_v18, %v2847_v54  ;;  %v1134_v32 = vstv %s2817_s12 }
 0x233   :  { %v1112_v28 = vadd.f32 %v1111_v19, %v1108_v26  ;;  %s2855_s29 = sld [smem:[#allocation2 + $0x125]]  ;;  %v1147_v0 = vstv %s2821_s16 }
 0x234   :  { %v1149_v42 = vstv %s2825_s1  ;;  %s2860_s17 = sld [smem:[#allocation2 + $0x126]] }
 0x235   :  { %s2863_s26 = sld [smem:[#allocation2 + $0x11d]]  ;;  %v1150_v48 = vmul.f32 %v1149_v42, %v2362_v47  ;;  %v1153_v34 = vstv %s2832_s20  ;;  %v1116_v50 = vadd.f32 %v1115_v20, %v1112_v28  ;;  %v1130_v20 = vstv %s2812_s14 }
 0x236   :  { %v1154_v45 = vmul.f32 %v1153_v34, %v2364_v2  ;;  %v1157_v57 = vstv %s2839_s4  ;;  %s2870_s0 = sld [smem:[#allocation2 + $0x127]]  ;;  %v1010_v28 = vadd.f32 %v1009_v16, %v1006_v43  ;;  %v1079_v34 = vstv %s2787_s2 }
 0x237   :  { %s2873_s28 = sld [smem:[#allocation2 + $0x11e]]  ;;  %v1151_v21 = vadd.f32 %v1150_v48, %v1147_v0  ;;  %v1158_v59 = vmul.f32 %v1157_v57, %v2369_v51  ;;  %v1161_v61 = vstv %s2843_s25  ;;  %v1120_v11 = vadd.f32 %v1119_v53, %v1116_v50 }
 0x238   :  { %v1165_v5 = vstv %s2850_s24  ;;  %s2880_s18 = sld [smem:[#allocation2 + $0x128]]  ;;  %v1162_v55 = vmul.f32 %v1161_v61, %v2381_v62  ;;  %v1076_v0 = vmul.f32 %v1075_v38, %v2847_v54  ;;  %v1073_v48 = vadd.f32 %v1072_v40, %v1069_v24 }
 0x239   :  { %v1155_v9 = vadd.f32 %v1154_v45, %v1151_v21  ;;  %s2885_s22 = sld [smem:[#allocation2 + $0x129]]  ;;  %v1169_v17 = vstv %s2855_s29  ;;  %v1166_v39 = vmul.f32 %v1165_v5, %v2422_v31  ;;  %v1124_v52 = vadd.f32 %v1123_v49, %v1120_v11 }
 0x23a   :  { %s2889_s5 = sld [smem:[#allocation2 + $0x12a]]  ;;  %v1173_v19 = vstv %s2860_s17  ;;  %v1170_v15 = vmul.f32 %v1169_v17, %v2484_v35  ;;  %v1131_v53 = vmul.f32 %v1130_v20, %v2835_v22  ;;  %v1135_v45 = vmul.f32 %v1134_v32, %v2845_v29 }
 0x23b   :  { %v1159_v14 = vadd.f32 %v1158_v59, %v1155_v9  ;;  %s2895_s8 = sld [smem:[#allocation2 + $0x12b]]  ;;  %v1174_v36 = vmul.f32 %v1173_v19, %v2605_v46  ;;  %v1128_v50 = vadd.f32 %v1127_v25, %v1124_v52  ;;  %v1138_v59 = vstv %s2863_s26 }
 0x23c   :  { %s2900_s27 = sld [smem:[#allocation2 + $0x12c]]  ;;  %v1177_v26 = vstv %s2870_s0  ;;  %v1077_v38 = vadd.f32 %v1076_v0, %v1073_v48 }
 0x23d   :  { %v1163_v33 = vadd.f32 %v1162_v55, %v1159_v14  ;;  %s2905_s9 = sld [smem:[#allocation2 + $0x13f]]  ;;  %v1178_v44 = vmul.f32 %v1177_v26, %v2615_v58  ;;  %v1132_v9 = vadd.f32 %v1131_v53, %v1128_v50 }
 0x23e   :  { %s2909_s3 = sld [smem:[#allocation2 + $0x130]]  ;;  %v1181_v41 = vstv %s2880_s18 }
 0x23f   :  { %v1167_v23 = vadd.f32 %v1166_v39, %v1163_v33  ;;  %s2914_s30 = sld [smem:[#allocation2 + $0x131]]  ;;  %v1185_v37 = vstv %s2885_s22  ;;  %v1182_v27 = vmul.f32 %v1181_v41, %v2621_v63  ;;  %v1014_v39 = vadd.f32 %v1013_v56, %v1010_v28 }
 0x240   :  { %s2919_s11 = sld [smem:[#allocation2 + $0x132]]  ;;  %v1189_v21 = vstv %s2889_s5  ;;  %v1186_v61 = vmul.f32 %v1185_v37, %v2632_v8  ;;  %v1139_v33 = vmul.f32 %v1138_v59, %v2847_v54  ;;  %v1136_v24 = vadd.f32 %v1135_v45, %v1132_v9 }
 0x241   :  { %v1171_v42 = vadd.f32 %v1170_v15, %v1167_v23  ;;  %s2924_s15 = sld [smem:[#allocation2 + $0x133]]  ;;  %v1193_v5 = vstv %s2895_s8  ;;  %v1190_v55 = vmul.f32 %v1189_v21, %v2828_v60  ;;  %v1142_v56 = vstv %s2873_s28 }
 0x242   :  { %s2928_s7 = sld [smem:[#allocation2 + $0x134]]  ;;  %v1194_v43 = vmul.f32 %v1193_v5, %v2835_v22  ;;  %v1197_v18 = vstv %s2900_s27  ;;  %v1140_v0 = vadd.f32 %v1139_v33, %v1136_v24 }
 0x243   :  { %v1175_v57 = vadd.f32 %v1174_v36, %v1171_v42  ;;  %s2933_s23 = sld [smem:[#allocation2 + $0x135]]  ;;  %v1210_v3 = vstv %s2905_s9  ;;  %v1198_v20 = vmul.f32 %v1197_v18, %v2845_v29  ;;  %v1143_v42 = vmul.f32 %v1142_v56, %v2891_v12 }
 0x244   :  { %v1212_v4 = vstv %s2909_s3  ;;  %s2939_s6 = sld [smem:[#allocation2 + $0x136]] }
 0x245   :  { %v1179_v1 = vadd.f32 %v1178_v44, %v1175_v57  ;;  %s2942_s2 = sld [smem:[#allocation2 + $0x12d]]  ;;  %v1213_v6 = vmul.f32 %v1212_v4, %v2362_v47  ;;  %v1216_v7 = vstv %s2914_s30  ;;  %v1017_v47 = vmul.f32 %v1016_v30, %v2891_v12 }
 0x246   :  { %v1217_v10 = vmul.f32 %v1216_v7, %v2364_v2  ;;  %v1220_v11 = vstv %s2919_s11  ;;  %s2949_s10 = sld [smem:[#allocation2 + $0x137]]  ;;  %v1144_v21 = vadd.f32 %v1143_v42, %v1140_v0 }
 0x247   :  { %v1183_v49 = vadd.f32 %v1182_v27, %v1179_v1  ;;  %s2951_s21 = sld [smem:[#allocation2 + $0x12e]]  ;;  %v1214_v17 = vadd.f32 %v1213_v6, %v1210_v3  ;;  %v1221_v13 = vmul.f32 %v1220_v11, %v2369_v51  ;;  %v1224_v14 = vstv %s2924_s15 }
 0x248   :  { %v1228_v16 = vstv %s2928_s7  ;;  %s2958_s13 = sld [smem:[#allocation2 + $0x138]]  ;;  %v1225_v40 = vmul.f32 %v1224_v14, %v2381_v62  ;;  %v1080_v51 = vmul.f32 %v1079_v34, %v2891_v12  ;;  %v1018_v62 = vadd.f32 %v1017_v47, %v1014_v39 }
 0x249   :  { %v1187_v2 = vadd.f32 %v1186_v61, %v1183_v49  ;;  %v1218_v19 = vadd.f32 %v1217_v10, %v1214_v17  ;;  %s2962_s19 = sld [smem:[#allocation2 + $0x139]]  ;;  %v1232_v15 = vstv %s2933_s23  ;;  %v1229_v26 = vmul.f32 %v1228_v16, %v2422_v31 }
 0x24a   :  { %s2967_s14 = sld [smem:[#allocation2 + $0x13a]]  ;;  %v1236_v23 = vstv %s2939_s6  ;;  %v1233_v32 = vmul.f32 %v1232_v15, %v2484_v35  ;;  %v1081_v41 = vadd.f32 %v1080_v51, %v1077_v38  ;;  %v1019_v48 = vmax.f32 %v1018_v62, 0.0 }
 0x24b   :  { %v1191_v52 = vadd.f32 %v1190_v55, %v1187_v2  ;;  %v1222_v25 = vadd.f32 %v1221_v13, %v1218_v19  ;;  %s2970_s12 = sld [smem:[#allocation2 + $0x13b]]  ;;  %v1201_v28 = vstv %s2942_s2  ;;  %v1237_v37 = vmul.f32 %v1236_v23, %v2605_v46 }
 0x24c   :  { %s2975_s16 = sld [smem:[#allocation2 + $0x13c]]  ;;  %v1240_v31 = vstv %s2949_s10  ;;  %v1202_v34 = vmul.f32 %v1201_v28, %v2847_v54  ;;  %v1082_v46 = vmax.f32 %v1081_v41, 0.0  ;;  %v1145_v49 = vmax.f32 %v1144_v21, 0.0 }
 0x24d   :  { %v1195_v36 = vadd.f32 %v1194_v43, %v1191_v52  ;;  %v1226_v30 = vadd.f32 %v1225_v40, %v1222_v25  ;;  %s2979_s1 = sld [smem:[#allocation2 + $0x145]]  ;;  %v1205_v50 = vstv %s2951_s21  ;;  %v1241_v57 = vmul.f32 %v1240_v31, %v2615_v58 }
 0x24e   :  { %s1621_s20 = sld [smem:[#allocation2 + $0x140]]  ;;  %v1244_v35 = vstv %s2958_s13  ;;  %v1206_v3 = vmul.f32 %v1205_v50, %v2891_v12 }
 0x24f   :  { %v1230_v44 = vadd.f32 %v1229_v26, %v1226_v30  ;;  %s2984_s4 = sld [smem:[#allocation2 + $0x141]]  ;;  %v1199_v53 = vadd.f32 %v1198_v20, %v1195_v36  ;;  %v1248_v27 = vstv %s2962_s19  ;;  %v1245_v61 = vmul.f32 %v1244_v35, %v2621_v63 }
 0x250   :  { %s2989_s25 = sld [smem:[#allocation2 + $0x13d]]  ;;  %v1249_v4 = vmul.f32 %v1248_v27, %v2632_v8  ;;  %v1252_v1 = vstv %s2967_s14 }
 0x251   :  { %v1234_v45 = vadd.f32 %v1233_v32, %v1230_v44  ;;  %s2993_s24 = sld [smem:[#allocation2 + $0x142]]  ;;  %v1203_v5 = vadd.f32 %v1202_v34, %v1199_v53  ;;  %v1256_v7 = vstv %s2970_s12  ;;  %v1253_v11 = vmul.f32 %v1252_v1, %v2828_v60 }
 0x252   :  { %s2999_s29 = sld [smem:[#allocation2 + $0x13e]]  ;;  %v1257_v8 = vmul.f32 %v1256_v7, %v2835_v22  ;;  %v1260_v17 = vstv %s2975_s16 }
 0x253   :  { %v1238_v59 = vadd.f32 %v1237_v37, %v1234_v45  ;;  %v1273_v55 = vstv %s2979_s1  ;;  %s1624_s17 = sld [smem:[#allocation2 + $0x143]]  ;;  %v1207_v14 = vadd.f32 %v1206_v3, %v1203_v5  ;;  %v1261_v18 = vmul.f32 %v1260_v17, %v2845_v29 }
 0x254   :  { %v1275_v58 = vstv %s1621_s20  ;;  %s1625_s26 = sld [smem:[#allocation2 + $0x144]] }
 0x255   :  { %v1242_v6 = vadd.f32 %v1241_v57, %v1238_v59  ;;  %v1276_v9 = vmul.f32 %v1275_v58, %v1019_v48  ;;  %v1279_v10 = vstv %s2984_s4  ;;  %v1208_v38 = vmax.f32 %v1207_v14, 0.0  ;;  %s3284_s18 = sld [smem:[#allocation70_spill]] }
 0x256   :  { %v1264_v13 = vstv %s2989_s25  ;;  %v1280_v43 = vmul.f32 %v1279_v10, %v1082_v46 }
 0x257   :  { %v1246_v63 = vadd.f32 %v1245_v61, %v1242_v6  ;;  %v1277_v47 = vadd.f32 %v1276_v9, %v1273_v55  ;;  %v1283_v16 = vstv %s2993_s24  ;;  %v1265_v19 = vmul.f32 %v1264_v13, %v2847_v54 }
 0x258   :  { %v1268_v40 = vstv %s2999_s29  ;;  %v1284_v33 = vmul.f32 %v1283_v16, %v1145_v49 }
 0x259   :  { %v1250_v39 = vadd.f32 %v1249_v4, %v1246_v63  ;;  %v1281_v60 = vadd.f32 %v1280_v43, %v1277_v47  ;;  %v1287_v15 = vstv %s1624_s17  ;;  %v1269_v24 = vmul.f32 %v1268_v40, %v2891_v12 }
 0x25a   :  { %v1288_v26 = vmul.f32 %v1287_v15, %v1208_v38  ;;  %v1291_v56 = vstv %s1625_s26 }
 0x25b   :  { %v1254_v2 = vadd.f32 %v1253_v11, %v1250_v39  ;;  %v1285_v25 = vadd.f32 %v1284_v33, %v1281_v60 }
 0x25d   :  { %v1258_v51 = vadd.f32 %v1257_v8, %v1254_v2  ;;  %v1289_v23 = vadd.f32 %v1288_v26, %v1285_v25 }
 0x25f   :  { %v1262_v22 = vadd.f32 %v1261_v18, %v1258_v51 }
 0x261   :  { %v1266_v52 = vadd.f32 %v1265_v19, %v1262_v22 }
 0x263   :  { %v1270_v62 = vadd.f32 %v1269_v24, %v1266_v52 }
 0x265   :  { %v1271_v20 = vmax.f32 %v1270_v62, 0.0 }
 0x267   :  { %v1292_v29 = vmul.f32 %v1291_v56, %v1271_v20 }
 0x269   :  { %v1293_v36 = vadd.f32 %v1292_v29, %v1289_v23 }
 0x26b   :  { %1294 = vst [vmem:[%s3284_s18] sm:$0xff] %v1293_v36 }
 0x26c   :  { %1299 = vsyncpa [#allocation3], 1 }

</bundles_post_ra>
